<compile_context>
chip_gen: v6e
topology: v6e:2x2x1
jax: 0.10.0
libtpu: 0.0.40
codegen_flags: <defaults>
</compile_context>

<pallas_src>
import jax
import jax.numpy as jnp
from jax.experimental import pallas as pl
from jax.experimental.pallas import tpu as pltpu


def _sigmoid(v):
    # exp -> EUP, approximate reciprocal -> EUP slot (nearly free vs VALU divide)
    return pl.reciprocal(1.0 + jnp.exp(-v), approx=True)


# ----------------------------------------------------------------------------
# Fused GEN kernel factory.
# ----------------------------------------------------------------------------
def make_gen_kernel(*, L, C, PAD, K, dilations, has_trans_flags):
    n_levels = len(dilations)

    def kernel(*refs):
        idx = 0
        emb_ref = refs[idx]; idx += 1                       # (1, L, E)
        label_ref = refs[idx]; idx += 1                     # (B, n_props)  (full)
        (w0a, b0a, w0g, b0g,
         w1a, b1a, w1g, b1g, w2, b2) = refs[idx:idx + 10]; idx += 10
        sel_emb = refs[idx]; idx += 1                       # (E, C)
        sel_pro = refs[idx]; idx += 1                       # (16, C)
        layer_refs = []
        for i in range(n_levels):
            n = 6 if has_trans_flags[i] else 4
            layer_refs.append(refs[idx:idx + n]); idx += n
        dec_w = refs[idx]; idx += 1                         # (C, DIC_PAD)
        dec_b = refs[idx]; idx += 1                         # (1, DIC_PAD)
        o_ref = refs[idx]; idx += 1                         # (1, L, DIC_PAD)
        xbuf = refs[idx]                                    # VMEM scratch (PAD+L, C)

        b = pl.program_id(0)

        # ---- NNet dense MLP on this batch row: GLU weights pre-split (no lane slicing)
        lab = label_ref[pl.ds(b, 1), :]                                     # (1, n_props)
        h = ((jnp.dot(lab, w0a[...], preferred_element_type=jnp.float32) + b0a[...])
             * _sigmoid(jnp.dot(lab, w0g[...], preferred_element_type=jnp.float32) + b0g[...]))
        h = ((jnp.dot(h, w1a[...], preferred_element_type=jnp.float32) + b1a[...])
             * _sigmoid(jnp.dot(h, w1g[...], preferred_element_type=jnp.float32) + b1g[...]))
        pro = jnp.dot(h, w2[...], preferred_element_type=jnp.float32) + b2[...]   # (1, 16)

        # ---- concat([emb, broadcast(pro)]) -> C channels via lane-aligned selection matmuls
        emb2 = emb_ref[0]                                                   # (L, E)
        x0 = (jnp.dot(emb2, sel_emb[...], preferred_element_type=jnp.float32)
              + jnp.dot(pro, sel_pro[...], preferred_element_type=jnp.float32))   # (L, C)

        # ---- stage into the causal-padded VMEM buffer; rows [0, PAD) stay zero
        xbuf[...] = jnp.zeros((PAD + L, C), jnp.float32)
        xbuf[pl.ds(PAD, L), :] = x0

        # ---- encoder: n_levels x (causal dilated conv -> GLU -> +residual), all in VMEM
        for i in range(n_levels):
            d = dilations[i]
            if has_trans_flags[i]:
                wa, ba, wg, bg, wt, bt = layer_refs[i]
            else:
                wa, ba, wg, bg = layer_refs[i]
                wt = bt = None

            acc_a = jnp.broadcast_to(ba[...], (L, C))       # hoisted once per layer
            acc_g = jnp.broadcast_to(bg[...], (L, C))
            for j in range(K):                              # static unrolled taps
                shift = (K - 1 - j) * d                     # causal shift of this tap
                xw = xbuf[pl.ds(PAD - shift, L), :]         # (L, C), static start
                acc_a = acc_a + jnp.dot(xw, wa[j], preferred_element_type=jnp.float32)
                acc_g = acc_g + jnp.dot(xw, wg[j], preferred_element_type=jnp.float32)
            glu = acc_a * _sigmoid(acc_g)                   # GLU over channels (pre-split)

            x_cur = xbuf[pl.ds(PAD, L), :]                  # unshifted input (for residual)
            if wt is not None:
                res = jnp.dot(x_cur, wt[...], preferred_element_type=jnp.float32) + bt[...]
            else:
                res = x_cur
            xbuf[pl.ds(PAD, L), :] = glu + res              # write back in place

        # ---- decoder Linear(hid, dic) with lane-dense (128-padded) output
        y = xbuf[pl.ds(PAD, L), :]
        o_ref[0] = (jnp.dot(y, dec_w[...], preferred_element_type=jnp.float32)
                    + dec_b[...]).astype(o_ref.dtype)

    return kernel


# ----------------------------------------------------------------------------
# Parameter init (deterministic). weight_norm is a reparametrization, so the
# effective weights are ordinary tensors.  Weights are produced directly in
# kernel-ready form: GLU halves split, channels zero-padded to C, decoder
# columns zero-padded to a multiple of 128.
# ----------------------------------------------------------------------------
def init_params(key, n_props, dic_size, emb_size, hid_size, n_levels, kernel_size):
    K = kernel_size
    C = max(hid_size, emb_size + 16)                      # fused activation channel width
    PAD = (K - 1) * 2 ** (n_levels - 1)                   # max causal pad over layers
    PAD = ((PAD + 7) // 8) * 8                            # keep data region sublane-aligned
    DIC_PAD = ((dic_size + 127) // 128) * 128             # lane-dense decoder output

    keys = jax.random.split(key, 64)
    it = iter(keys)

    def nrm(shape, scale=0.05):
        return scale * jax.random.normal(next(it), shape, dtype=jnp.float32)

    emb = nrm((dic_size, emb_size), 0.1).at[0].set(0.0)   # padding_idx=0

    # NNet(n_props, 16, hide=(8, 64)): Linear->GLU, Linear->GLU, Linear
    w0 = nrm((n_props, 16), 0.01); b0 = nrm((1, 16), 0.01)
    w1 = nrm((8, 128), 0.01);      b1 = nrm((1, 128), 0.01)
    w2 = nrm((64, 16), 0.01);      b2 = nrm((1, 16), 0.01)
    dense = dict(w0a=w0[:, :8],  b0a=b0[:, :8],  w0g=w0[:, 8:],  b0g=b0[:, 8:],
                 w1a=w1[:, :64], b1a=b1[:, :64], w1g=w1[:, 64:], b1g=b1[:, 64:],
                 w2=w2, b2=b2)

    # selection matmuls realizing concat([emb, pro]) into the first emb+16 channels
    sel_emb = jnp.zeros((emb_size, C), jnp.float32).at[:, :emb_size].set(jnp.eye(emb_size))
    sel_pro = jnp.zeros((16, C), jnp.float32).at[:, emb_size:emb_size + 16].set(jnp.eye(16))

    layers = []
    cin = emb_size + 16
    for i in range(n_levels):
        d = 2 ** i
        w_conv = nrm((K, cin, 2 * hid_size))              # (tap, in_ch, 2*out_ch)
        b_conv = nrm((1, 2 * hid_size))
        wa = jnp.zeros((K, C, C), jnp.float32).at[:, :cin, :hid_size].set(w_conv[:, :, :hid_size])
        wg = jnp.zeros((K, C, C), jnp.float32).at[:, :cin, :hid_size].set(w_conv[:, :, hid_size:])
        ba = jnp.zeros((1, C), jnp.float32).at[:, :hid_size].set(b_conv[:, :hid_size])
        bg = jnp.zeros((1, C), jnp.float32).at[:, :hid_size].set(b_conv[:, hid_size:])
        layer = dict(wa=wa, ba=ba, wg=wg, bg=bg, dilation=d)
        if cin != hid_size:                               # 1x1 residual projection
            w_t = nrm((cin, hid_size)); b_t = nrm((1, hid_size))
            layer["wt"] = jnp.zeros((C, C), jnp.float32).at[:cin, :hid_size].set(w_t)
            layer["bt"] = jnp.zeros((1, C), jnp.float32).at[:, :hid_size].set(b_t)
        layers.append(layer)
        cin = hid_size

    dec_w = nrm((hid_size, dic_size)); dec_b = nrm((1, dic_size))
    dec_w_p = jnp.zeros((C, DIC_PAD), jnp.float32).at[:hid_size, :dic_size].set(dec_w)
    dec_b_p = jnp.zeros((1, DIC_PAD), jnp.float32).at[:, :dic_size].set(dec_b)

    return dict(emb=emb, dense=dense, sel_emb=sel_emb, sel_pro=sel_pro, layers=layers,
                dec_w=dec_w_p, dec_b=dec_b_p,
                meta=dict(C=C, PAD=PAD, K=K, dic_size=dic_size, DIC_PAD=DIC_PAD,
                          emb_size=emb_size))


# ----------------------------------------------------------------------------
# Forward: one fused pallas_call (grid over batch, "parallel").
# ----------------------------------------------------------------------------
def gen_forward(params, input_ids, label):
    meta = params["meta"]
    C, PAD, K = meta["C"], meta["PAD"], meta["K"]
    DIC_PAD, dic_size, E = meta["DIC_PAD"], meta["dic_size"], meta["emb_size"]

    # Embedding lookup (gather) kept as JAX glue.
    emb = jnp.take(params["emb"], input_ids, axis=0)       # (B, L, E)
    B, L, _ = emb.shape

    d = params["dense"]
    flat = [emb, label,
            d["w0a"], d["b0a"], d["w0g"], d["b0g"],
            d["w1a"], d["b1a"], d["w1g"], d["b1g"], d["w2"], d["b2"],
            params["sel_emb"], params["sel_pro"]]
    dilations, has_trans = [], []
    for layer in params["layers"]:
        flat += [layer["wa"], layer["ba"], layer["wg"], layer["bg"]]
        if "wt" in layer:
            flat += [layer["wt"], layer["bt"]]
            has_trans.append(True)
        else:
            has_trans.append(False)
        dilations.append(layer["dilation"])
    flat += [params["dec_w"], params["dec_b"]]

    def const_spec(x):
        nd = x.ndim
        return pl.BlockSpec(x.shape, lambda b, _nd=nd: (0,) * _nd)

    in_specs = [pl.BlockSpec((1, L, E), lambda b: (b, 0, 0)),   # emb: per-batch block
                const_spec(label)]                              # label: full, indexed in-kernel
    in_specs += [const_spec(x) for x in flat[2:]]

    kernel = make_gen_kernel(L=L, C=C, PAD=PAD, K=K,
                             dilations=tuple(dilations),
                             has_trans_flags=tuple(has_trans))

    out = pl.pallas_call(
        kernel,
        out_shape=jax.ShapeDtypeStruct((B, L, DIC_PAD), jnp.float32),
        grid=(B,),
        in_specs=in_specs,
        out_specs=pl.BlockSpec((1, L, DIC_PAD), lambda b: (b, 0, 0)),
        scratch_shapes=[pltpu.VMEM((PAD + L, C), jnp.float32)],
        compiler_params=pltpu.CompilerParams(dimension_semantics=("parallel",)),
    )(*flat)

    return out[:, :, :dic_size]                            # drop decoder lane padding


if __name__ == "__main__":
    # small config consistent with the module
    B, L = 2, 16
    n_props, dic_size, emb_size, hid_size = 4, 50, 8, 32
    n_levels, kernel_size = 5, 3

    key = jax.random.PRNGKey(0)
    k_param, k_ids, k_lab = jax.random.split(key, 3)

    params = init_params(k_param, n_props, dic_size, emb_size, hid_size,
                         n_levels, kernel_size)
    input_ids = jax.random.randint(k_ids, (B, L), 0, dic_size, dtype=jnp.int32)
    label = jax.random.normal(k_lab, (B, n_props), dtype=jnp.float32)

    out = gen_forward(params, input_ids, label)
    out = jax.block_until_ready(out)
    assert out.shape == (B, L, dic_size), out.shape
    assert out.dtype == jnp.float32
    print("KERNEL_OK")
</pallas_src>

<mosaic_0001>
module attributes {stable_mosaic.version = 11 : i64} {
  func.func @kernel(%arg0: i32, %arg1: memref<1x16x8xf32, #tpu.memory_space<vmem>>, %arg2: memref<2x4xf32, #tpu.memory_space<vmem>>, %arg3: memref<4x8xf32, #tpu.memory_space<vmem>>, %arg4: memref<1x8xf32, #tpu.memory_space<vmem>>, %arg5: memref<4x8xf32, #tpu.memory_space<vmem>>, %arg6: memref<1x8xf32, #tpu.memory_space<vmem>>, %arg7: memref<8x64xf32, #tpu.memory_space<vmem>>, %arg8: memref<1x64xf32, #tpu.memory_space<vmem>>, %arg9: memref<8x64xf32, #tpu.memory_space<vmem>>, %arg10: memref<1x64xf32, #tpu.memory_space<vmem>>, %arg11: memref<64x16xf32, #tpu.memory_space<vmem>>, %arg12: memref<1x16xf32, #tpu.memory_space<vmem>>, %arg13: memref<8x32xf32, #tpu.memory_space<vmem>>, %arg14: memref<16x32xf32, #tpu.memory_space<vmem>>, %arg15: memref<3x32x32xf32, #tpu.memory_space<vmem>>, %arg16: memref<1x32xf32, #tpu.memory_space<vmem>>, %arg17: memref<3x32x32xf32, #tpu.memory_space<vmem>>, %arg18: memref<1x32xf32, #tpu.memory_space<vmem>>, %arg19: memref<32x32xf32, #tpu.memory_space<vmem>>, %arg20: memref<1x32xf32, #tpu.memory_space<vmem>>, %arg21: memref<3x32x32xf32, #tpu.memory_space<vmem>>, %arg22: memref<1x32xf32, #tpu.memory_space<vmem>>, %arg23: memref<3x32x32xf32, #tpu.memory_space<vmem>>, %arg24: memref<1x32xf32, #tpu.memory_space<vmem>>, %arg25: memref<3x32x32xf32, #tpu.memory_space<vmem>>, %arg26: memref<1x32xf32, #tpu.memory_space<vmem>>, %arg27: memref<3x32x32xf32, #tpu.memory_space<vmem>>, %arg28: memref<1x32xf32, #tpu.memory_space<vmem>>, %arg29: memref<3x32x32xf32, #tpu.memory_space<vmem>>, %arg30: memref<1x32xf32, #tpu.memory_space<vmem>>, %arg31: memref<3x32x32xf32, #tpu.memory_space<vmem>>, %arg32: memref<1x32xf32, #tpu.memory_space<vmem>>, %arg33: memref<3x32x32xf32, #tpu.memory_space<vmem>>, %arg34: memref<1x32xf32, #tpu.memory_space<vmem>>, %arg35: memref<3x32x32xf32, #tpu.memory_space<vmem>>, %arg36: memref<1x32xf32, #tpu.memory_space<vmem>>, %arg37: memref<32x128xf32, #tpu.memory_space<vmem>>, %arg38: memref<1x128xf32, #tpu.memory_space<vmem>>, %arg39: memref<1x16x128xf32, #tpu.memory_space<vmem>>, %arg40: memref<48x32xf32, #tpu.memory_space<vmem>>) attributes {dimension_semantics = [#tpu.dimension_semantics<parallel>], iteration_bounds = array<i64: 2>, scalar_prefetch = 0 : i64, scratch_operands = 1 : i64, tpu.core_type = #tpu.core_type<tc>, window_params = [{transform_indices = @transform_0, window_bounds = array<i64: 1, 16, 8>}, {pipeline_mode = #tpu.pipeline_mode<synchronous>, transform_indices = @transform_1, window_bounds = array<i64: 2, 4>}, {pipeline_mode = #tpu.pipeline_mode<synchronous>, transform_indices = @transform_2, window_bounds = array<i64: 4, 8>}, {pipeline_mode = #tpu.pipeline_mode<synchronous>, transform_indices = @transform_3, window_bounds = array<i64: 1, 8>}, {pipeline_mode = #tpu.pipeline_mode<synchronous>, transform_indices = @transform_4, window_bounds = array<i64: 4, 8>}, {pipeline_mode = #tpu.pipeline_mode<synchronous>, transform_indices = @transform_5, window_bounds = array<i64: 1, 8>}, {pipeline_mode = #tpu.pipeline_mode<synchronous>, transform_indices = @transform_6, window_bounds = array<i64: 8, 64>}, {pipeline_mode = #tpu.pipeline_mode<synchronous>, transform_indices = @transform_7, window_bounds = array<i64: 1, 64>}, {pipeline_mode = #tpu.pipeline_mode<synchronous>, transform_indices = @transform_8, window_bounds = array<i64: 8, 64>}, {pipeline_mode = #tpu.pipeline_mode<synchronous>, transform_indices = @transform_9, window_bounds = array<i64: 1, 64>}, {pipeline_mode = #tpu.pipeline_mode<synchronous>, transform_indices = @transform_10, window_bounds = array<i64: 64, 16>}, {pipeline_mode = #tpu.pipeline_mode<synchronous>, transform_indices = @transform_11, window_bounds = array<i64: 1, 16>}, {pipeline_mode = #tpu.pipeline_mode<synchronous>, transform_indices = @transform_12, window_bounds = array<i64: 8, 32>}, {pipeline_mode = #tpu.pipeline_mode<synchronous>, transform_indices = @transform_13, window_bounds = array<i64: 16, 32>}, {pipeline_mode = #tpu.pipeline_mode<synchronous>, transform_indices = @transform_14, window_bounds = array<i64: 3, 32, 32>}, {pipeline_mode = #tpu.pipeline_mode<synchronous>, transform_indices = @transform_15, window_bounds = array<i64: 1, 32>}, {pipeline_mode = #tpu.pipeline_mode<synchronous>, transform_indices = @transform_16, window_bounds = array<i64: 3, 32, 32>}, {pipeline_mode = #tpu.pipeline_mode<synchronous>, transform_indices = @transform_17, window_bounds = array<i64: 1, 32>}, {pipeline_mode = #tpu.pipeline_mode<synchronous>, transform_indices = @transform_18, window_bounds = array<i64: 32, 32>}, {pipeline_mode = #tpu.pipeline_mode<synchronous>, transform_indices = @transform_19, window_bounds = array<i64: 1, 32>}, {pipeline_mode = #tpu.pipeline_mode<synchronous>, transform_indices = @transform_20, window_bounds = array<i64: 3, 32, 32>}, {pipeline_mode = #tpu.pipeline_mode<synchronous>, transform_indices = @transform_21, window_bounds = array<i64: 1, 32>}, {pipeline_mode = #tpu.pipeline_mode<synchronous>, transform_indices = @transform_22, window_bounds = array<i64: 3, 32, 32>}, {pipeline_mode = #tpu.pipeline_mode<synchronous>, transform_indices = @transform_23, window_bounds = array<i64: 1, 32>}, {pipeline_mode = #tpu.pipeline_mode<synchronous>, transform_indices = @transform_24, window_bounds = array<i64: 3, 32, 32>}, {pipeline_mode = #tpu.pipeline_mode<synchronous>, transform_indices = @transform_25, window_bounds = array<i64: 1, 32>}, {pipeline_mode = #tpu.pipeline_mode<synchronous>, transform_indices = @transform_26, window_bounds = array<i64: 3, 32, 32>}, {pipeline_mode = #tpu.pipeline_mode<synchronous>, transform_indices = @transform_27, window_bounds = array<i64: 1, 32>}, {pipeline_mode = #tpu.pipeline_mode<synchronous>, transform_indices = @transform_28, window_bounds = array<i64: 3, 32, 32>}, {pipeline_mode = #tpu.pipeline_mode<synchronous>, transform_indices = @transform_29, window_bounds = array<i64: 1, 32>}, {pipeline_mode = #tpu.pipeline_mode<synchronous>, transform_indices = @transform_30, window_bounds = array<i64: 3, 32, 32>}, {pipeline_mode = #tpu.pipeline_mode<synchronous>, transform_indices = @transform_31, window_bounds = array<i64: 1, 32>}, {pipeline_mode = #tpu.pipeline_mode<synchronous>, transform_indices = @transform_32, window_bounds = array<i64: 3, 32, 32>}, {pipeline_mode = #tpu.pipeline_mode<synchronous>, transform_indices = @transform_33, window_bounds = array<i64: 1, 32>}, {pipeline_mode = #tpu.pipeline_mode<synchronous>, transform_indices = @transform_34, window_bounds = array<i64: 3, 32, 32>}, {pipeline_mode = #tpu.pipeline_mode<synchronous>, transform_indices = @transform_35, window_bounds = array<i64: 1, 32>}, {pipeline_mode = #tpu.pipeline_mode<synchronous>, transform_indices = @transform_36, window_bounds = array<i64: 32, 128>}, {pipeline_mode = #tpu.pipeline_mode<synchronous>, transform_indices = @transform_37, window_bounds = array<i64: 1, 128>}, {transform_indices = @transform_38, window_bounds = array<i64: 1, 16, 128>}]} {
    %0 = arith.index_cast %arg0 : i32 to index
    %c0 = arith.constant 0 : index
    %1 = vector.load %arg2[%0, %c0] : memref<2x4xf32, #tpu.memory_space<vmem>>, vector<1x4xf32>
    %c0_0 = arith.constant 0 : index
    %c0_1 = arith.constant 0 : index
    %2 = vector.load %arg3[%c0_0, %c0_1] : memref<4x8xf32, #tpu.memory_space<vmem>>, vector<4x8xf32>
    %cst = arith.constant dense<0.000000e+00> : vector<1x8xf32>
    %3 = tpu.matmul %1, %2, %cst {dimension_numbers = #tpu.dot_dimension_numbers<[1], [0], [0], [1], [0, 0, 1, 1], [], []>} : vector<1x4xf32>, vector<4x8xf32>, vector<1x8xf32> -> vector<1x8xf32>
    %c0_2 = arith.constant 0 : index
    %c0_3 = arith.constant 0 : index
    %4 = vector.load %arg4[%c0_2, %c0_3] : memref<1x8xf32, #tpu.memory_space<vmem>>, vector<1x8xf32>
    %5 = arith.addf %3, %4 : vector<1x8xf32>
    %c0_4 = arith.constant 0 : index
    %c0_5 = arith.constant 0 : index
    %6 = vector.load %arg5[%c0_4, %c0_5] : memref<4x8xf32, #tpu.memory_space<vmem>>, vector<4x8xf32>
    %cst_6 = arith.constant dense<0.000000e+00> : vector<1x8xf32>
    %7 = tpu.matmul %1, %6, %cst_6 {dimension_numbers = #tpu.dot_dimension_numbers<[1], [0], [0], [1], [0, 0, 1, 1], [], []>} : vector<1x4xf32>, vector<4x8xf32>, vector<1x8xf32> -> vector<1x8xf32>
    %c0_7 = arith.constant 0 : index
    %c0_8 = arith.constant 0 : index
    %8 = vector.load %arg6[%c0_7, %c0_8] : memref<1x8xf32, #tpu.memory_space<vmem>>, vector<1x8xf32>
    %9 = arith.addf %7, %8 : vector<1x8xf32>
    %cst_9 = arith.constant 0.000000e+00 : f32
    %10 = vector.broadcast %cst_9 : f32 to vector<1x8xf32>
    %11 = arith.subf %10, %9 : vector<1x8xf32>
    %12 = math.exp %11 : vector<1x8xf32>
    %cst_10 = arith.constant 1.000000e+00 : f32
    %13 = vector.broadcast %cst_10 : f32 to vector<1x8xf32>
    %14 = arith.addf %13, %12 : vector<1x8xf32>
    %15 = tpu.reciprocal %14 {approx = true} : vector<1x8xf32> -> vector<1x8xf32>
    %16 = arith.mulf %5, %15 : vector<1x8xf32>
    %c0_11 = arith.constant 0 : index
    %c0_12 = arith.constant 0 : index
    %17 = vector.load %arg7[%c0_11, %c0_12] : memref<8x64xf32, #tpu.memory_space<vmem>>, vector<8x64xf32>
    %cst_13 = arith.constant dense<0.000000e+00> : vector<1x64xf32>
    %18 = tpu.matmul %16, %17, %cst_13 {dimension_numbers = #tpu.dot_dimension_numbers<[1], [0], [0], [1], [0, 0, 1, 1], [], []>} : vector<1x8xf32>, vector<8x64xf32>, vector<1x64xf32> -> vector<1x64xf32>
    %c0_14 = arith.constant 0 : index
    %c0_15 = arith.constant 0 : index
    %19 = vector.load %arg8[%c0_14, %c0_15] : memref<1x64xf32, #tpu.memory_space<vmem>>, vector<1x64xf32>
    %20 = arith.addf %18, %19 : vector<1x64xf32>
    %c0_16 = arith.constant 0 : index
    %c0_17 = arith.constant 0 : index
    %21 = vector.load %arg9[%c0_16, %c0_17] : memref<8x64xf32, #tpu.memory_space<vmem>>, vector<8x64xf32>
    %cst_18 = arith.constant dense<0.000000e+00> : vector<1x64xf32>
    %22 = tpu.matmul %16, %21, %cst_18 {dimension_numbers = #tpu.dot_dimension_numbers<[1], [0], [0], [1], [0, 0, 1, 1], [], []>} : vector<1x8xf32>, vector<8x64xf32>, vector<1x64xf32> -> vector<1x64xf32>
    %c0_19 = arith.constant 0 : index
    %c0_20 = arith.constant 0 : index
    %23 = vector.load %arg10[%c0_19, %c0_20] : memref<1x64xf32, #tpu.memory_space<vmem>>, vector<1x64xf32>
    %24 = arith.addf %22, %23 : vector<1x64xf32>
    %cst_21 = arith.constant 0.000000e+00 : f32
    %25 = vector.broadcast %cst_21 : f32 to vector<1x64xf32>
    %26 = arith.subf %25, %24 : vector<1x64xf32>
    %27 = math.exp %26 : vector<1x64xf32>
    %cst_22 = arith.constant 1.000000e+00 : f32
    %28 = vector.broadcast %cst_22 : f32 to vector<1x64xf32>
    %29 = arith.addf %28, %27 : vector<1x64xf32>
    %30 = tpu.reciprocal %29 {approx = true} : vector<1x64xf32> -> vector<1x64xf32>
    %31 = arith.mulf %20, %30 : vector<1x64xf32>
    %c0_23 = arith.constant 0 : index
    %c0_24 = arith.constant 0 : index
    %32 = vector.load %arg11[%c0_23, %c0_24] : memref<64x16xf32, #tpu.memory_space<vmem>>, vector<64x16xf32>
    %cst_25 = arith.constant dense<0.000000e+00> : vector<1x16xf32>
    %33 = tpu.matmul %31, %32, %cst_25 {dimension_numbers = #tpu.dot_dimension_numbers<[1], [0], [0], [1], [0, 0, 1, 1], [], []>} : vector<1x64xf32>, vector<64x16xf32>, vector<1x16xf32> -> vector<1x16xf32>
    %c0_26 = arith.constant 0 : index
    %c0_27 = arith.constant 0 : index
    %34 = vector.load %arg12[%c0_26, %c0_27] : memref<1x16xf32, #tpu.memory_space<vmem>>, vector<1x16xf32>
    %35 = arith.addf %33, %34 : vector<1x16xf32>
    %c0_28 = arith.constant 0 : index
    %c0_29 = arith.constant 0 : index
    %c0_30 = arith.constant 0 : index
    %36 = vector.load %arg1[%c0_28, %c0_29, %c0_30] : memref<1x16x8xf32, #tpu.memory_space<vmem>>, vector<1x16x8xf32>
    %37 = vector.shape_cast %36 : vector<1x16x8xf32> to vector<16x8xf32>
    %c0_31 = arith.constant 0 : index
    %c0_32 = arith.constant 0 : index
    %38 = vector.load %arg13[%c0_31, %c0_32] : memref<8x32xf32, #tpu.memory_space<vmem>>, vector<8x32xf32>
    %cst_33 = arith.constant dense<0.000000e+00> : vector<16x32xf32>
    %39 = tpu.matmul %37, %38, %cst_33 {dimension_numbers = #tpu.dot_dimension_numbers<[1], [0], [0], [1], [0, 0, 1, 1], [], []>} : vector<16x8xf32>, vector<8x32xf32>, vector<16x32xf32> -> vector<16x32xf32>
    %c0_34 = arith.constant 0 : index
    %c0_35 = arith.constant 0 : index
    %40 = vector.load %arg14[%c0_34, %c0_35] : memref<16x32xf32, #tpu.memory_space<vmem>>, vector<16x32xf32>
    %cst_36 = arith.constant dense<0.000000e+00> : vector<1x32xf32>
    %41 = tpu.matmul %35, %40, %cst_36 {dimension_numbers = #tpu.dot_dimension_numbers<[1], [0], [0], [1], [0, 0, 1, 1], [], []>} : vector<1x16xf32>, vector<16x32xf32>, vector<1x32xf32> -> vector<1x32xf32>
    %42 = vector.broadcast %41 : vector<1x32xf32> to vector<16x32xf32>
    %43 = arith.addf %39, %42 : vector<16x32xf32>
    %cst_37 = arith.constant 0.000000e+00 : f32
    %44 = vector.broadcast %cst_37 : f32 to vector<48x32xf32>
    %c0_38 = arith.constant 0 : index
    %c0_39 = arith.constant 0 : index
    %45 = vector.load %arg40[%c0_38, %c0_39] : memref<48x32xf32, #tpu.memory_space<vmem>>, vector<48x32xf32>
    tpu.vector_store %arg40[%c0_38, %c0_39], %44 {strides = array<i32>} : memref<48x32xf32, #tpu.memory_space<vmem>>, vector<48x32xf32>,
    %c32 = arith.constant 32 : index
    %c0_40 = arith.constant 0 : index
    %46 = vector.load %arg40[%c32, %c0_40] : memref<48x32xf32, #tpu.memory_space<vmem>>, vector<16x32xf32>
    tpu.vector_store %arg40[%c32, %c0_40], %43 {strides = array<i32>} : memref<48x32xf32, #tpu.memory_space<vmem>>, vector<16x32xf32>,
    %c0_41 = arith.constant 0 : index
    %c0_42 = arith.constant 0 : index
    %47 = vector.load %arg16[%c0_41, %c0_42] : memref<1x32xf32, #tpu.memory_space<vmem>>, vector<1x32xf32>
    %48 = vector.shape_cast %47 : vector<1x32xf32> to vector<1x32xf32>
    %49 = vector.broadcast %48 : vector<1x32xf32> to vector<16x32xf32>
    %c0_43 = arith.constant 0 : index
    %c0_44 = arith.constant 0 : index
    %50 = vector.load %arg18[%c0_43, %c0_44] : memref<1x32xf32, #tpu.memory_space<vmem>>, vector<1x32xf32>
    %51 = vector.shape_cast %50 : vector<1x32xf32> to vector<1x32xf32>
    %52 = vector.broadcast %51 : vector<1x32xf32> to vector<16x32xf32>
    %c30 = arith.constant 30 : index
    %c0_45 = arith.constant 0 : index
    %53 = vector.load %arg40[%c30, %c0_45] : memref<48x32xf32, #tpu.memory_space<vmem>>, vector<16x32xf32>
    %c0_46 = arith.constant 0 : index
    %c0_47 = arith.constant 0 : index
    %c0_48 = arith.constant 0 : index
    %54 = vector.load %arg15[%c0_46, %c0_47, %c0_48] : memref<3x32x32xf32, #tpu.memory_space<vmem>>, vector<1x32x32xf32>
    %55 = vector.shape_cast %54 : vector<1x32x32xf32> to vector<32x32xf32>
    %cst_49 = arith.constant dense<0.000000e+00> : vector<16x32xf32>
    %56 = tpu.matmul %53, %55, %cst_49 {dimension_numbers = #tpu.dot_dimension_numbers<[1], [0], [0], [1], [0, 0, 1, 1], [], []>} : vector<16x32xf32>, vector<32x32xf32>, vector<16x32xf32> -> vector<16x32xf32>
    %57 = arith.addf %49, %56 : vector<16x32xf32>
    %c0_50 = arith.constant 0 : index
    %c0_51 = arith.constant 0 : index
    %c0_52 = arith.constant 0 : index
    %58 = vector.load %arg17[%c0_50, %c0_51, %c0_52] : memref<3x32x32xf32, #tpu.memory_space<vmem>>, vector<1x32x32xf32>
    %59 = vector.shape_cast %58 : vector<1x32x32xf32> to vector<32x32xf32>
    %cst_53 = arith.constant dense<0.000000e+00> : vector<16x32xf32>
    %60 = tpu.matmul %53, %59, %cst_53 {dimension_numbers = #tpu.dot_dimension_numbers<[1], [0], [0], [1], [0, 0, 1, 1], [], []>} : vector<16x32xf32>, vector<32x32xf32>, vector<16x32xf32> -> vector<16x32xf32>
    %61 = arith.addf %52, %60 : vector<16x32xf32>
    %c31 = arith.constant 31 : index
    %c0_54 = arith.constant 0 : index
    %62 = vector.load %arg40[%c31, %c0_54] : memref<48x32xf32, #tpu.memory_space<vmem>>, vector<16x32xf32>
    %c1 = arith.constant 1 : index
    %c0_55 = arith.constant 0 : index
    %c0_56 = arith.constant 0 : index
    %63 = vector.load %arg15[%c1, %c0_55, %c0_56] : memref<3x32x32xf32, #tpu.memory_space<vmem>>, vector<1x32x32xf32>
    %64 = vector.shape_cast %63 : vector<1x32x32xf32> to vector<32x32xf32>
    %cst_57 = arith.constant dense<0.000000e+00> : vector<16x32xf32>
    %65 = tpu.matmul %62, %64, %cst_57 {dimension_numbers = #tpu.dot_dimension_numbers<[1], [0], [0], [1], [0, 0, 1, 1], [], []>} : vector<16x32xf32>, vector<32x32xf32>, vector<16x32xf32> -> vector<16x32xf32>
    %66 = arith.addf %57, %65 : vector<16x32xf32>
    %c1_58 = arith.constant 1 : index
    %c0_59 = arith.constant 0 : index
    %c0_60 = arith.constant 0 : index
    %67 = vector.load %arg17[%c1_58, %c0_59, %c0_60] : memref<3x32x32xf32, #tpu.memory_space<vmem>>, vector<1x32x32xf32>
    %68 = vector.shape_cast %67 : vector<1x32x32xf32> to vector<32x32xf32>
    %cst_61 = arith.constant dense<0.000000e+00> : vector<16x32xf32>
    %69 = tpu.matmul %62, %68, %cst_61 {dimension_numbers = #tpu.dot_dimension_numbers<[1], [0], [0], [1], [0, 0, 1, 1], [], []>} : vector<16x32xf32>, vector<32x32xf32>, vector<16x32xf32> -> vector<16x32xf32>
    %70 = arith.addf %61, %69 : vector<16x32xf32>
    %c32_62 = arith.constant 32 : index
    %c0_63 = arith.constant 0 : index
    %71 = vector.load %arg40[%c32_62, %c0_63] : memref<48x32xf32, #tpu.memory_space<vmem>>, vector<16x32xf32>
    %c2 = arith.constant 2 : index
    %c0_64 = arith.constant 0 : index
    %c0_65 = arith.constant 0 : index
    %72 = vector.load %arg15[%c2, %c0_64, %c0_65] : memref<3x32x32xf32, #tpu.memory_space<vmem>>, vector<1x32x32xf32>
    %73 = vector.shape_cast %72 : vector<1x32x32xf32> to vector<32x32xf32>
    %cst_66 = arith.constant dense<0.000000e+00> : vector<16x32xf32>
    %74 = tpu.matmul %71, %73, %cst_66 {dimension_numbers = #tpu.dot_dimension_numbers<[1], [0], [0], [1], [0, 0, 1, 1], [], []>} : vector<16x32xf32>, vector<32x32xf32>, vector<16x32xf32> -> vector<16x32xf32>
    %75 = arith.addf %66, %74 : vector<16x32xf32>
    %c2_67 = arith.constant 2 : index
    %c0_68 = arith.constant 0 : index
    %c0_69 = arith.constant 0 : index
    %76 = vector.load %arg17[%c2_67, %c0_68, %c0_69] : memref<3x32x32xf32, #tpu.memory_space<vmem>>, vector<1x32x32xf32>
    %77 = vector.shape_cast %76 : vector<1x32x32xf32> to vector<32x32xf32>
    %cst_70 = arith.constant dense<0.000000e+00> : vector<16x32xf32>
    %78 = tpu.matmul %71, %77, %cst_70 {dimension_numbers = #tpu.dot_dimension_numbers<[1], [0], [0], [1], [0, 0, 1, 1], [], []>} : vector<16x32xf32>, vector<32x32xf32>, vector<16x32xf32> -> vector<16x32xf32>
    %79 = arith.addf %70, %78 : vector<16x32xf32>
    %cst_71 = arith.constant 0.000000e+00 : f32
    %80 = vector.broadcast %cst_71 : f32 to vector<16x32xf32>
    %81 = arith.subf %80, %79 : vector<16x32xf32>
    %82 = math.exp %81 : vector<16x32xf32>
    %cst_72 = arith.constant 1.000000e+00 : f32
    %83 = vector.broadcast %cst_72 : f32 to vector<16x32xf32>
    %84 = arith.addf %83, %82 : vector<16x32xf32>
    %85 = tpu.reciprocal %84 {approx = true} : vector<16x32xf32> -> vector<16x32xf32>
    %86 = arith.mulf %75, %85 : vector<16x32xf32>
    %c32_73 = arith.constant 32 : index
    %c0_74 = arith.constant 0 : index
    %87 = vector.load %arg40[%c32_73, %c0_74] : memref<48x32xf32, #tpu.memory_space<vmem>>, vector<16x32xf32>
    %c0_75 = arith.constant 0 : index
    %c0_76 = arith.constant 0 : index
    %88 = vector.load %arg19[%c0_75, %c0_76] : memref<32x32xf32, #tpu.memory_space<vmem>>, vector<32x32xf32>
    %cst_77 = arith.constant dense<0.000000e+00> : vector<16x32xf32>
    %89 = tpu.matmul %87, %88, %cst_77 {dimension_numbers = #tpu.dot_dimension_numbers<[1], [0], [0], [1], [0, 0, 1, 1], [], []>} : vector<16x32xf32>, vector<32x32xf32>, vector<16x32xf32> -> vector<16x32xf32>
    %c0_78 = arith.constant 0 : index
    %c0_79 = arith.constant 0 : index
    %90 = vector.load %arg20[%c0_78, %c0_79] : memref<1x32xf32, #tpu.memory_space<vmem>>, vector<1x32xf32>
    %91 = vector.broadcast %90 : vector<1x32xf32> to vector<16x32xf32>
    %92 = arith.addf %89, %91 : vector<16x32xf32>
    %93 = arith.addf %86, %92 : vector<16x32xf32>
    %c32_80 = arith.constant 32 : index
    %c0_81 = arith.constant 0 : index
    %94 = vector.load %arg40[%c32_80, %c0_81] : memref<48x32xf32, #tpu.memory_space<vmem>>, vector<16x32xf32>
    tpu.vector_store %arg40[%c32_80, %c0_81], %93 {strides = array<i32>} : memref<48x32xf32, #tpu.memory_space<vmem>>, vector<16x32xf32>,
    %c0_82 = arith.constant 0 : index
    %c0_83 = arith.constant 0 : index
    %95 = vector.load %arg22[%c0_82, %c0_83] : memref<1x32xf32, #tpu.memory_space<vmem>>, vector<1x32xf32>
    %96 = vector.shape_cast %95 : vector<1x32xf32> to vector<1x32xf32>
    %97 = vector.broadcast %96 : vector<1x32xf32> to vector<16x32xf32>
    %c0_84 = arith.constant 0 : index
    %c0_85 = arith.constant 0 : index
    %98 = vector.load %arg24[%c0_84, %c0_85] : memref<1x32xf32, #tpu.memory_space<vmem>>, vector<1x32xf32>
    %99 = vector.shape_cast %98 : vector<1x32xf32> to vector<1x32xf32>
    %100 = vector.broadcast %99 : vector<1x32xf32> to vector<16x32xf32>
    %c28 = arith.constant 28 : index
    %c0_86 = arith.constant 0 : index
    %101 = vector.load %arg40[%c28, %c0_86] : memref<48x32xf32, #tpu.memory_space<vmem>>, vector<16x32xf32>
    %c0_87 = arith.constant 0 : index
    %c0_88 = arith.constant 0 : index
    %c0_89 = arith.constant 0 : index
    %102 = vector.load %arg21[%c0_87, %c0_88, %c0_89] : memref<3x32x32xf32, #tpu.memory_space<vmem>>, vector<1x32x32xf32>
    %103 = vector.shape_cast %102 : vector<1x32x32xf32> to vector<32x32xf32>
    %cst_90 = arith.constant dense<0.000000e+00> : vector<16x32xf32>
    %104 = tpu.matmul %101, %103, %cst_90 {dimension_numbers = #tpu.dot_dimension_numbers<[1], [0], [0], [1], [0, 0, 1, 1], [], []>} : vector<16x32xf32>, vector<32x32xf32>, vector<16x32xf32> -> vector<16x32xf32>
    %105 = arith.addf %97, %104 : vector<16x32xf32>
    %c0_91 = arith.constant 0 : index
    %c0_92 = arith.constant 0 : index
    %c0_93 = arith.constant 0 : index
    %106 = vector.load %arg23[%c0_91, %c0_92, %c0_93] : memref<3x32x32xf32, #tpu.memory_space<vmem>>, vector<1x32x32xf32>
    %107 = vector.shape_cast %106 : vector<1x32x32xf32> to vector<32x32xf32>
    %cst_94 = arith.constant dense<0.000000e+00> : vector<16x32xf32>
    %108 = tpu.matmul %101, %107, %cst_94 {dimension_numbers = #tpu.dot_dimension_numbers<[1], [0], [0], [1], [0, 0, 1, 1], [], []>} : vector<16x32xf32>, vector<32x32xf32>, vector<16x32xf32> -> vector<16x32xf32>
    %109 = arith.addf %100, %108 : vector<16x32xf32>
    %c30_95 = arith.constant 30 : index
    %c0_96 = arith.constant 0 : index
    %110 = vector.load %arg40[%c30_95, %c0_96] : memref<48x32xf32, #tpu.memory_space<vmem>>, vector<16x32xf32>
    %c1_97 = arith.constant 1 : index
    %c0_98 = arith.constant 0 : index
    %c0_99 = arith.constant 0 : index
    %111 = vector.load %arg21[%c1_97, %c0_98, %c0_99] : memref<3x32x32xf32, #tpu.memory_space<vmem>>, vector<1x32x32xf32>
    %112 = vector.shape_cast %111 : vector<1x32x32xf32> to vector<32x32xf32>
    %cst_100 = arith.constant dense<0.000000e+00> : vector<16x32xf32>
    %113 = tpu.matmul %110, %112, %cst_100 {dimension_numbers = #tpu.dot_dimension_numbers<[1], [0], [0], [1], [0, 0, 1, 1], [], []>} : vector<16x32xf32>, vector<32x32xf32>, vector<16x32xf32> -> vector<16x32xf32>
    %114 = arith.addf %105, %113 : vector<16x32xf32>
    %c1_101 = arith.constant 1 : index
    %c0_102 = arith.constant 0 : index
    %c0_103 = arith.constant 0 : index
    %115 = vector.load %arg23[%c1_101, %c0_102, %c0_103] : memref<3x32x32xf32, #tpu.memory_space<vmem>>, vector<1x32x32xf32>
    %116 = vector.shape_cast %115 : vector<1x32x32xf32> to vector<32x32xf32>
    %cst_104 = arith.constant dense<0.000000e+00> : vector<16x32xf32>
    %117 = tpu.matmul %110, %116, %cst_104 {dimension_numbers = #tpu.dot_dimension_numbers<[1], [0], [0], [1], [0, 0, 1, 1], [], []>} : vector<16x32xf32>, vector<32x32xf32>, vector<16x32xf32> -> vector<16x32xf32>
    %118 = arith.addf %109, %117 : vector<16x32xf32>
    %c32_105 = arith.constant 32 : index
    %c0_106 = arith.constant 0 : index
    %119 = vector.load %arg40[%c32_105, %c0_106] : memref<48x32xf32, #tpu.memory_space<vmem>>, vector<16x32xf32>
    %c2_107 = arith.constant 2 : index
    %c0_108 = arith.constant 0 : index
    %c0_109 = arith.constant 0 : index
    %120 = vector.load %arg21[%c2_107, %c0_108, %c0_109] : memref<3x32x32xf32, #tpu.memory_space<vmem>>, vector<1x32x32xf32>
    %121 = vector.shape_cast %120 : vector<1x32x32xf32> to vector<32x32xf32>
    %cst_110 = arith.constant dense<0.000000e+00> : vector<16x32xf32>
    %122 = tpu.matmul %119, %121, %cst_110 {dimension_numbers = #tpu.dot_dimension_numbers<[1], [0], [0], [1], [0, 0, 1, 1], [], []>} : vector<16x32xf32>, vector<32x32xf32>, vector<16x32xf32> -> vector<16x32xf32>
    %123 = arith.addf %114, %122 : vector<16x32xf32>
    %c2_111 = arith.constant 2 : index
    %c0_112 = arith.constant 0 : index
    %c0_113 = arith.constant 0 : index
    %124 = vector.load %arg23[%c2_111, %c0_112, %c0_113] : memref<3x32x32xf32, #tpu.memory_space<vmem>>, vector<1x32x32xf32>
    %125 = vector.shape_cast %124 : vector<1x32x32xf32> to vector<32x32xf32>
    %cst_114 = arith.constant dense<0.000000e+00> : vector<16x32xf32>
    %126 = tpu.matmul %119, %125, %cst_114 {dimension_numbers = #tpu.dot_dimension_numbers<[1], [0], [0], [1], [0, 0, 1, 1], [], []>} : vector<16x32xf32>, vector<32x32xf32>, vector<16x32xf32> -> vector<16x32xf32>
    %127 = arith.addf %118, %126 : vector<16x32xf32>
    %cst_115 = arith.constant 0.000000e+00 : f32
    %128 = vector.broadcast %cst_115 : f32 to vector<16x32xf32>
    %129 = arith.subf %128, %127 : vector<16x32xf32>
    %130 = math.exp %129 : vector<16x32xf32>
    %cst_116 = arith.constant 1.000000e+00 : f32
    %131 = vector.broadcast %cst_116 : f32 to vector<16x32xf32>
    %132 = arith.addf %131, %130 : vector<16x32xf32>
    %133 = tpu.reciprocal %132 {approx = true} : vector<16x32xf32> -> vector<16x32xf32>
    %134 = arith.mulf %123, %133 : vector<16x32xf32>
    %c32_117 = arith.constant 32 : index
    %c0_118 = arith.constant 0 : index
    %135 = vector.load %arg40[%c32_117, %c0_118] : memref<48x32xf32, #tpu.memory_space<vmem>>, vector<16x32xf32>
    %136 = arith.addf %134, %135 : vector<16x32xf32>
    %c32_119 = arith.constant 32 : index
    %c0_120 = arith.constant 0 : index
    %137 = vector.load %arg40[%c32_119, %c0_120] : memref<48x32xf32, #tpu.memory_space<vmem>>, vector<16x32xf32>
    tpu.vector_store %arg40[%c32_119, %c0_120], %136 {strides = array<i32>} : memref<48x32xf32, #tpu.memory_space<vmem>>, vector<16x32xf32>,
    %c0_121 = arith.constant 0 : index
    %c0_122 = arith.constant 0 : index
    %138 = vector.load %arg26[%c0_121, %c0_122] : memref<1x32xf32, #tpu.memory_space<vmem>>, vector<1x32xf32>
    %139 = vector.shape_cast %138 : vector<1x32xf32> to vector<1x32xf32>
    %140 = vector.broadcast %139 : vector<1x32xf32> to vector<16x32xf32>
    %c0_123 = arith.constant 0 : index
    %c0_124 = arith.constant 0 : index
    %141 = vector.load %arg28[%c0_123, %c0_124] : memref<1x32xf32, #tpu.memory_space<vmem>>, vector<1x32xf32>
    %142 = vector.shape_cast %141 : vector<1x32xf32> to vector<1x32xf32>
    %143 = vector.broadcast %142 : vector<1x32xf32> to vector<16x32xf32>
    %c24 = arith.constant 24 : index
    %c0_125 = arith.constant 0 : index
    %144 = vector.load %arg40[%c24, %c0_125] : memref<48x32xf32, #tpu.memory_space<vmem>>, vector<16x32xf32>
    %c0_126 = arith.constant 0 : index
    %c0_127 = arith.constant 0 : index
    %c0_128 = arith.constant 0 : index
    %145 = vector.load %arg25[%c0_126, %c0_127, %c0_128] : memref<3x32x32xf32, #tpu.memory_space<vmem>>, vector<1x32x32xf32>
    %146 = vector.shape_cast %145 : vector<1x32x32xf32> to vector<32x32xf32>
    %cst_129 = arith.constant dense<0.000000e+00> : vector<16x32xf32>
    %147 = tpu.matmul %144, %146, %cst_129 {dimension_numbers = #tpu.dot_dimension_numbers<[1], [0], [0], [1], [0, 0, 1, 1], [], []>} : vector<16x32xf32>, vector<32x32xf32>, vector<16x32xf32> -> vector<16x32xf32>
    %148 = arith.addf %140, %147 : vector<16x32xf32>
    %c0_130 = arith.constant 0 : index
    %c0_131 = arith.constant 0 : index
    %c0_132 = arith.constant 0 : index
    %149 = vector.load %arg27[%c0_130, %c0_131, %c0_132] : memref<3x32x32xf32, #tpu.memory_space<vmem>>, vector<1x32x32xf32>
    %150 = vector.shape_cast %149 : vector<1x32x32xf32> to vector<32x32xf32>
    %cst_133 = arith.constant dense<0.000000e+00> : vector<16x32xf32>
    %151 = tpu.matmul %144, %150, %cst_133 {dimension_numbers = #tpu.dot_dimension_numbers<[1], [0], [0], [1], [0, 0, 1, 1], [], []>} : vector<16x32xf32>, vector<32x32xf32>, vector<16x32xf32> -> vector<16x32xf32>
    %152 = arith.addf %143, %151 : vector<16x32xf32>
    %c28_134 = arith.constant 28 : index
    %c0_135 = arith.constant 0 : index
    %153 = vector.load %arg40[%c28_134, %c0_135] : memref<48x32xf32, #tpu.memory_space<vmem>>, vector<16x32xf32>
    %c1_136 = arith.constant 1 : index
    %c0_137 = arith.constant 0 : index
    %c0_138 = arith.constant 0 : index
    %154 = vector.load %arg25[%c1_136, %c0_137, %c0_138] : memref<3x32x32xf32, #tpu.memory_space<vmem>>, vector<1x32x32xf32>
    %155 = vector.shape_cast %154 : vector<1x32x32xf32> to vector<32x32xf32>
    %cst_139 = arith.constant dense<0.000000e+00> : vector<16x32xf32>
    %156 = tpu.matmul %153, %155, %cst_139 {dimension_numbers = #tpu.dot_dimension_numbers<[1], [0], [0], [1], [0, 0, 1, 1], [], []>} : vector<16x32xf32>, vector<32x32xf32>, vector<16x32xf32> -> vector<16x32xf32>
    %157 = arith.addf %148, %156 : vector<16x32xf32>
    %c1_140 = arith.constant 1 : index
    %c0_141 = arith.constant 0 : index
    %c0_142 = arith.constant 0 : index
    %158 = vector.load %arg27[%c1_140, %c0_141, %c0_142] : memref<3x32x32xf32, #tpu.memory_space<vmem>>, vector<1x32x32xf32>
    %159 = vector.shape_cast %158 : vector<1x32x32xf32> to vector<32x32xf32>
    %cst_143 = arith.constant dense<0.000000e+00> : vector<16x32xf32>
    %160 = tpu.matmul %153, %159, %cst_143 {dimension_numbers = #tpu.dot_dimension_numbers<[1], [0], [0], [1], [0, 0, 1, 1], [], []>} : vector<16x32xf32>, vector<32x32xf32>, vector<16x32xf32> -> vector<16x32xf32>
    %161 = arith.addf %152, %160 : vector<16x32xf32>
    %c32_144 = arith.constant 32 : index
    %c0_145 = arith.constant 0 : index
    %162 = vector.load %arg40[%c32_144, %c0_145] : memref<48x32xf32, #tpu.memory_space<vmem>>, vector<16x32xf32>
    %c2_146 = arith.constant 2 : index
    %c0_147 = arith.constant 0 : index
    %c0_148 = arith.constant 0 : index
    %163 = vector.load %arg25[%c2_146, %c0_147, %c0_148] : memref<3x32x32xf32, #tpu.memory_space<vmem>>, vector<1x32x32xf32>
    %164 = vector.shape_cast %163 : vector<1x32x32xf32> to vector<32x32xf32>
    %cst_149 = arith.constant dense<0.000000e+00> : vector<16x32xf32>
    %165 = tpu.matmul %162, %164, %cst_149 {dimension_numbers = #tpu.dot_dimension_numbers<[1], [0], [0], [1], [0, 0, 1, 1], [], []>} : vector<16x32xf32>, vector<32x32xf32>, vector<16x32xf32> -> vector<16x32xf32>
    %166 = arith.addf %157, %165 : vector<16x32xf32>
    %c2_150 = arith.constant 2 : index
    %c0_151 = arith.constant 0 : index
    %c0_152 = arith.constant 0 : index
    %167 = vector.load %arg27[%c2_150, %c0_151, %c0_152] : memref<3x32x32xf32, #tpu.memory_space<vmem>>, vector<1x32x32xf32>
    %168 = vector.shape_cast %167 : vector<1x32x32xf32> to vector<32x32xf32>
    %cst_153 = arith.constant dense<0.000000e+00> : vector<16x32xf32>
    %169 = tpu.matmul %162, %168, %cst_153 {dimension_numbers = #tpu.dot_dimension_numbers<[1], [0], [0], [1], [0, 0, 1, 1], [], []>} : vector<16x32xf32>, vector<32x32xf32>, vector<16x32xf32> -> vector<16x32xf32>
    %170 = arith.addf %161, %169 : vector<16x32xf32>
    %cst_154 = arith.constant 0.000000e+00 : f32
    %171 = vector.broadcast %cst_154 : f32 to vector<16x32xf32>
    %172 = arith.subf %171, %170 : vector<16x32xf32>
    %173 = math.exp %172 : vector<16x32xf32>
    %cst_155 = arith.constant 1.000000e+00 : f32
    %174 = vector.broadcast %cst_155 : f32 to vector<16x32xf32>
    %175 = arith.addf %174, %173 : vector<16x32xf32>
    %176 = tpu.reciprocal %175 {approx = true} : vector<16x32xf32> -> vector<16x32xf32>
    %177 = arith.mulf %166, %176 : vector<16x32xf32>
    %c32_156 = arith.constant 32 : index
    %c0_157 = arith.constant 0 : index
    %178 = vector.load %arg40[%c32_156, %c0_157] : memref<48x32xf32, #tpu.memory_space<vmem>>, vector<16x32xf32>
    %179 = arith.addf %177, %178 : vector<16x32xf32>
    %c32_158 = arith.constant 32 : index
    %c0_159 = arith.constant 0 : index
    %180 = vector.load %arg40[%c32_158, %c0_159] : memref<48x32xf32, #tpu.memory_space<vmem>>, vector<16x32xf32>
    tpu.vector_store %arg40[%c32_158, %c0_159], %179 {strides = array<i32>} : memref<48x32xf32, #tpu.memory_space<vmem>>, vector<16x32xf32>,
    %c0_160 = arith.constant 0 : index
    %c0_161 = arith.constant 0 : index
    %181 = vector.load %arg30[%c0_160, %c0_161] : memref<1x32xf32, #tpu.memory_space<vmem>>, vector<1x32xf32>
    %182 = vector.shape_cast %181 : vector<1x32xf32> to vector<1x32xf32>
    %183 = vector.broadcast %182 : vector<1x32xf32> to vector<16x32xf32>
    %c0_162 = arith.constant 0 : index
    %c0_163 = arith.constant 0 : index
    %184 = vector.load %arg32[%c0_162, %c0_163] : memref<1x32xf32, #tpu.memory_space<vmem>>, vector<1x32xf32>
    %185 = vector.shape_cast %184 : vector<1x32xf32> to vector<1x32xf32>
    %186 = vector.broadcast %185 : vector<1x32xf32> to vector<16x32xf32>
    %c16 = arith.constant 16 : index
    %c0_164 = arith.constant 0 : index
    %187 = vector.load %arg40[%c16, %c0_164] : memref<48x32xf32, #tpu.memory_space<vmem>>, vector<16x32xf32>
    %c0_165 = arith.constant 0 : index
    %c0_166 = arith.constant 0 : index
    %c0_167 = arith.constant 0 : index
    %188 = vector.load %arg29[%c0_165, %c0_166, %c0_167] : memref<3x32x32xf32, #tpu.memory_space<vmem>>, vector<1x32x32xf32>
    %189 = vector.shape_cast %188 : vector<1x32x32xf32> to vector<32x32xf32>
    %cst_168 = arith.constant dense<0.000000e+00> : vector<16x32xf32>
    %190 = tpu.matmul %187, %189, %cst_168 {dimension_numbers = #tpu.dot_dimension_numbers<[1], [0], [0], [1], [0, 0, 1, 1], [], []>} : vector<16x32xf32>, vector<32x32xf32>, vector<16x32xf32> -> vector<16x32xf32>
    %191 = arith.addf %183, %190 : vector<16x32xf32>
    %c0_169 = arith.constant 0 : index
    %c0_170 = arith.constant 0 : index
    %c0_171 = arith.constant 0 : index
    %192 = vector.load %arg31[%c0_169, %c0_170, %c0_171] : memref<3x32x32xf32, #tpu.memory_space<vmem>>, vector<1x32x32xf32>
    %193 = vector.shape_cast %192 : vector<1x32x32xf32> to vector<32x32xf32>
    %cst_172 = arith.constant dense<0.000000e+00> : vector<16x32xf32>
    %194 = tpu.matmul %187, %193, %cst_172 {dimension_numbers = #tpu.dot_dimension_numbers<[1], [0], [0], [1], [0, 0, 1, 1], [], []>} : vector<16x32xf32>, vector<32x32xf32>, vector<16x32xf32> -> vector<16x32xf32>
    %195 = arith.addf %186, %194 : vector<16x32xf32>
    %c24_173 = arith.constant 24 : index
    %c0_174 = arith.constant 0 : index
    %196 = vector.load %arg40[%c24_173, %c0_174] : memref<48x32xf32, #tpu.memory_space<vmem>>, vector<16x32xf32>
    %c1_175 = arith.constant 1 : index
    %c0_176 = arith.constant 0 : index
    %c0_177 = arith.constant 0 : index
    %197 = vector.load %arg29[%c1_175, %c0_176, %c0_177] : memref<3x32x32xf32, #tpu.memory_space<vmem>>, vector<1x32x32xf32>
    %198 = vector.shape_cast %197 : vector<1x32x32xf32> to vector<32x32xf32>
    %cst_178 = arith.constant dense<0.000000e+00> : vector<16x32xf32>
    %199 = tpu.matmul %196, %198, %cst_178 {dimension_numbers = #tpu.dot_dimension_numbers<[1], [0], [0], [1], [0, 0, 1, 1], [], []>} : vector<16x32xf32>, vector<32x32xf32>, vector<16x32xf32> -> vector<16x32xf32>
    %200 = arith.addf %191, %199 : vector<16x32xf32>
    %c1_179 = arith.constant 1 : index
    %c0_180 = arith.constant 0 : index
    %c0_181 = arith.constant 0 : index
    %201 = vector.load %arg31[%c1_179, %c0_180, %c0_181] : memref<3x32x32xf32, #tpu.memory_space<vmem>>, vector<1x32x32xf32>
    %202 = vector.shape_cast %201 : vector<1x32x32xf32> to vector<32x32xf32>
    %cst_182 = arith.constant dense<0.000000e+00> : vector<16x32xf32>
    %203 = tpu.matmul %196, %202, %cst_182 {dimension_numbers = #tpu.dot_dimension_numbers<[1], [0], [0], [1], [0, 0, 1, 1], [], []>} : vector<16x32xf32>, vector<32x32xf32>, vector<16x32xf32> -> vector<16x32xf32>
    %204 = arith.addf %195, %203 : vector<16x32xf32>
    %c32_183 = arith.constant 32 : index
    %c0_184 = arith.constant 0 : index
    %205 = vector.load %arg40[%c32_183, %c0_184] : memref<48x32xf32, #tpu.memory_space<vmem>>, vector<16x32xf32>
    %c2_185 = arith.constant 2 : index
    %c0_186 = arith.constant 0 : index
    %c0_187 = arith.constant 0 : index
    %206 = vector.load %arg29[%c2_185, %c0_186, %c0_187] : memref<3x32x32xf32, #tpu.memory_space<vmem>>, vector<1x32x32xf32>
    %207 = vector.shape_cast %206 : vector<1x32x32xf32> to vector<32x32xf32>
    %cst_188 = arith.constant dense<0.000000e+00> : vector<16x32xf32>
    %208 = tpu.matmul %205, %207, %cst_188 {dimension_numbers = #tpu.dot_dimension_numbers<[1], [0], [0], [1], [0, 0, 1, 1], [], []>} : vector<16x32xf32>, vector<32x32xf32>, vector<16x32xf32> -> vector<16x32xf32>
    %209 = arith.addf %200, %208 : vector<16x32xf32>
    %c2_189 = arith.constant 2 : index
    %c0_190 = arith.constant 0 : index
    %c0_191 = arith.constant 0 : index
    %210 = vector.load %arg31[%c2_189, %c0_190, %c0_191] : memref<3x32x32xf32, #tpu.memory_space<vmem>>, vector<1x32x32xf32>
    %211 = vector.shape_cast %210 : vector<1x32x32xf32> to vector<32x32xf32>
    %cst_192 = arith.constant dense<0.000000e+00> : vector<16x32xf32>
    %212 = tpu.matmul %205, %211, %cst_192 {dimension_numbers = #tpu.dot_dimension_numbers<[1], [0], [0], [1], [0, 0, 1, 1], [], []>} : vector<16x32xf32>, vector<32x32xf32>, vector<16x32xf32> -> vector<16x32xf32>
    %213 = arith.addf %204, %212 : vector<16x32xf32>
    %cst_193 = arith.constant 0.000000e+00 : f32
    %214 = vector.broadcast %cst_193 : f32 to vector<16x32xf32>
    %215 = arith.subf %214, %213 : vector<16x32xf32>
    %216 = math.exp %215 : vector<16x32xf32>
    %cst_194 = arith.constant 1.000000e+00 : f32
    %217 = vector.broadcast %cst_194 : f32 to vector<16x32xf32>
    %218 = arith.addf %217, %216 : vector<16x32xf32>
    %219 = tpu.reciprocal %218 {approx = true} : vector<16x32xf32> -> vector<16x32xf32>
    %220 = arith.mulf %209, %219 : vector<16x32xf32>
    %c32_195 = arith.constant 32 : index
    %c0_196 = arith.constant 0 : index
    %221 = vector.load %arg40[%c32_195, %c0_196] : memref<48x32xf32, #tpu.memory_space<vmem>>, vector<16x32xf32>
    %222 = arith.addf %220, %221 : vector<16x32xf32>
    %c32_197 = arith.constant 32 : index
    %c0_198 = arith.constant 0 : index
    %223 = vector.load %arg40[%c32_197, %c0_198] : memref<48x32xf32, #tpu.memory_space<vmem>>, vector<16x32xf32>
    tpu.vector_store %arg40[%c32_197, %c0_198], %222 {strides = array<i32>} : memref<48x32xf32, #tpu.memory_space<vmem>>, vector<16x32xf32>,
    %c0_199 = arith.constant 0 : index
    %c0_200 = arith.constant 0 : index
    %224 = vector.load %arg34[%c0_199, %c0_200] : memref<1x32xf32, #tpu.memory_space<vmem>>, vector<1x32xf32>
    %225 = vector.shape_cast %224 : vector<1x32xf32> to vector<1x32xf32>
    %226 = vector.broadcast %225 : vector<1x32xf32> to vector<16x32xf32>
    %c0_201 = arith.constant 0 : index
    %c0_202 = arith.constant 0 : index
    %227 = vector.load %arg36[%c0_201, %c0_202] : memref<1x32xf32, #tpu.memory_space<vmem>>, vector<1x32xf32>
    %228 = vector.shape_cast %227 : vector<1x32xf32> to vector<1x32xf32>
    %229 = vector.broadcast %228 : vector<1x32xf32> to vector<16x32xf32>
    %c0_203 = arith.constant 0 : index
    %c0_204 = arith.constant 0 : index
    %230 = vector.load %arg40[%c0_203, %c0_204] : memref<48x32xf32, #tpu.memory_space<vmem>>, vector<16x32xf32>
    %c0_205 = arith.constant 0 : index
    %c0_206 = arith.constant 0 : index
    %c0_207 = arith.constant 0 : index
    %231 = vector.load %arg33[%c0_205, %c0_206, %c0_207] : memref<3x32x32xf32, #tpu.memory_space<vmem>>, vector<1x32x32xf32>
    %232 = vector.shape_cast %231 : vector<1x32x32xf32> to vector<32x32xf32>
    %cst_208 = arith.constant dense<0.000000e+00> : vector<16x32xf32>
    %233 = tpu.matmul %230, %232, %cst_208 {dimension_numbers = #tpu.dot_dimension_numbers<[1], [0], [0], [1], [0, 0, 1, 1], [], []>} : vector<16x32xf32>, vector<32x32xf32>, vector<16x32xf32> -> vector<16x32xf32>
    %234 = arith.addf %226, %233 : vector<16x32xf32>
    %c0_209 = arith.constant 0 : index
    %c0_210 = arith.constant 0 : index
    %c0_211 = arith.constant 0 : index
    %235 = vector.load %arg35[%c0_209, %c0_210, %c0_211] : memref<3x32x32xf32, #tpu.memory_space<vmem>>, vector<1x32x32xf32>
    %236 = vector.shape_cast %235 : vector<1x32x32xf32> to vector<32x32xf32>
    %cst_212 = arith.constant dense<0.000000e+00> : vector<16x32xf32>
    %237 = tpu.matmul %230, %236, %cst_212 {dimension_numbers = #tpu.dot_dimension_numbers<[1], [0], [0], [1], [0, 0, 1, 1], [], []>} : vector<16x32xf32>, vector<32x32xf32>, vector<16x32xf32> -> vector<16x32xf32>
    %238 = arith.addf %229, %237 : vector<16x32xf32>
    %c16_213 = arith.constant 16 : index
    %c0_214 = arith.constant 0 : index
    %239 = vector.load %arg40[%c16_213, %c0_214] : memref<48x32xf32, #tpu.memory_space<vmem>>, vector<16x32xf32>
    %c1_215 = arith.constant 1 : index
    %c0_216 = arith.constant 0 : index
    %c0_217 = arith.constant 0 : index
    %240 = vector.load %arg33[%c1_215, %c0_216, %c0_217] : memref<3x32x32xf32, #tpu.memory_space<vmem>>, vector<1x32x32xf32>
    %241 = vector.shape_cast %240 : vector<1x32x32xf32> to vector<32x32xf32>
    %cst_218 = arith.constant dense<0.000000e+00> : vector<16x32xf32>
    %242 = tpu.matmul %239, %241, %cst_218 {dimension_numbers = #tpu.dot_dimension_numbers<[1], [0], [0], [1], [0, 0, 1, 1], [], []>} : vector<16x32xf32>, vector<32x32xf32>, vector<16x32xf32> -> vector<16x32xf32>
    %243 = arith.addf %234, %242 : vector<16x32xf32>
    %c1_219 = arith.constant 1 : index
    %c0_220 = arith.constant 0 : index
    %c0_221 = arith.constant 0 : index
    %244 = vector.load %arg35[%c1_219, %c0_220, %c0_221] : memref<3x32x32xf32, #tpu.memory_space<vmem>>, vector<1x32x32xf32>
    %245 = vector.shape_cast %244 : vector<1x32x32xf32> to vector<32x32xf32>
    %cst_222 = arith.constant dense<0.000000e+00> : vector<16x32xf32>
    %246 = tpu.matmul %239, %245, %cst_222 {dimension_numbers = #tpu.dot_dimension_numbers<[1], [0], [0], [1], [0, 0, 1, 1], [], []>} : vector<16x32xf32>, vector<32x32xf32>, vector<16x32xf32> -> vector<16x32xf32>
    %247 = arith.addf %238, %246 : vector<16x32xf32>
    %c32_223 = arith.constant 32 : index
    %c0_224 = arith.constant 0 : index
    %248 = vector.load %arg40[%c32_223, %c0_224] : memref<48x32xf32, #tpu.memory_space<vmem>>, vector<16x32xf32>
    %c2_225 = arith.constant 2 : index
    %c0_226 = arith.constant 0 : index
    %c0_227 = arith.constant 0 : index
    %249 = vector.load %arg33[%c2_225, %c0_226, %c0_227] : memref<3x32x32xf32, #tpu.memory_space<vmem>>, vector<1x32x32xf32>
    %250 = vector.shape_cast %249 : vector<1x32x32xf32> to vector<32x32xf32>
    %cst_228 = arith.constant dense<0.000000e+00> : vector<16x32xf32>
    %251 = tpu.matmul %248, %250, %cst_228 {dimension_numbers = #tpu.dot_dimension_numbers<[1], [0], [0], [1], [0, 0, 1, 1], [], []>} : vector<16x32xf32>, vector<32x32xf32>, vector<16x32xf32> -> vector<16x32xf32>
    %252 = arith.addf %243, %251 : vector<16x32xf32>
    %c2_229 = arith.constant 2 : index
    %c0_230 = arith.constant 0 : index
    %c0_231 = arith.constant 0 : index
    %253 = vector.load %arg35[%c2_229, %c0_230, %c0_231] : memref<3x32x32xf32, #tpu.memory_space<vmem>>, vector<1x32x32xf32>
    %254 = vector.shape_cast %253 : vector<1x32x32xf32> to vector<32x32xf32>
    %cst_232 = arith.constant dense<0.000000e+00> : vector<16x32xf32>
    %255 = tpu.matmul %248, %254, %cst_232 {dimension_numbers = #tpu.dot_dimension_numbers<[1], [0], [0], [1], [0, 0, 1, 1], [], []>} : vector<16x32xf32>, vector<32x32xf32>, vector<16x32xf32> -> vector<16x32xf32>
    %256 = arith.addf %247, %255 : vector<16x32xf32>
    %cst_233 = arith.constant 0.000000e+00 : f32
    %257 = vector.broadcast %cst_233 : f32 to vector<16x32xf32>
    %258 = arith.subf %257, %256 : vector<16x32xf32>
    %259 = math.exp %258 : vector<16x32xf32>
    %cst_234 = arith.constant 1.000000e+00 : f32
    %260 = vector.broadcast %cst_234 : f32 to vector<16x32xf32>
    %261 = arith.addf %260, %259 : vector<16x32xf32>
    %262 = tpu.reciprocal %261 {approx = true} : vector<16x32xf32> -> vector<16x32xf32>
    %263 = arith.mulf %252, %262 : vector<16x32xf32>
    %c32_235 = arith.constant 32 : index
    %c0_236 = arith.constant 0 : index
    %264 = vector.load %arg40[%c32_235, %c0_236] : memref<48x32xf32, #tpu.memory_space<vmem>>, vector<16x32xf32>
    %265 = arith.addf %263, %264 : vector<16x32xf32>
    %c32_237 = arith.constant 32 : index
    %c0_238 = arith.constant 0 : index
    %266 = vector.load %arg40[%c32_237, %c0_238] : memref<48x32xf32, #tpu.memory_space<vmem>>, vector<16x32xf32>
    tpu.vector_store %arg40[%c32_237, %c0_238], %265 {strides = array<i32>} : memref<48x32xf32, #tpu.memory_space<vmem>>, vector<16x32xf32>,
    %c32_239 = arith.constant 32 : index
    %c0_240 = arith.constant 0 : index
    %267 = vector.load %arg40[%c32_239, %c0_240] : memref<48x32xf32, #tpu.memory_space<vmem>>, vector<16x32xf32>
    %c0_241 = arith.constant 0 : index
    %c0_242 = arith.constant 0 : index
    %268 = vector.load %arg37[%c0_241, %c0_242] : memref<32x128xf32, #tpu.memory_space<vmem>>, vector<32x128xf32>
    %cst_243 = arith.constant dense<0.000000e+00> : vector<16x128xf32>
    %269 = tpu.matmul %267, %268, %cst_243 {dimension_numbers = #tpu.dot_dimension_numbers<[1], [0], [0], [1], [0, 0, 1, 1], [], []>} : vector<16x32xf32>, vector<32x128xf32>, vector<16x128xf32> -> vector<16x128xf32>
    %c0_244 = arith.constant 0 : index
    %c0_245 = arith.constant 0 : index
    %270 = vector.load %arg38[%c0_244, %c0_245] : memref<1x128xf32, #tpu.memory_space<vmem>>, vector<1x128xf32>
    %271 = vector.broadcast %270 : vector<1x128xf32> to vector<16x128xf32>
    %272 = arith.addf %269, %271 : vector<16x128xf32>
    %c0_246 = arith.constant 0 : index
    %c0_247 = arith.constant 0 : index
    %c0_248 = arith.constant 0 : index
    %273 = vector.load %arg39[%c0_246, %c0_247, %c0_248] : memref<1x16x128xf32, #tpu.memory_space<vmem>>, vector<1x16x128xf32>
    %274 = vector.shape_cast %273 : vector<1x16x128xf32> to vector<16x128xf32>
    %275 = vector.shape_cast %272 : vector<16x128xf32> to vector<1x16x128xf32>
    tpu.vector_store %arg39[%c0_246, %c0_247, %c0_248], %275 {strides = array<i32>} : memref<1x16x128xf32, #tpu.memory_space<vmem>>, vector<1x16x128xf32>,
    return
  }
  func.func @transform_0(%arg0: i32) -> (i32, i32, i32) {
    %c0_i32 = arith.constant 0 : i32
    %c0_i32_0 = arith.constant 0 : i32
    %c0_i32_1 = arith.constant 0 : i32
    return %arg0, %c0_i32, %c0_i32_0 : i32, i32, i32
  }
  func.func @transform_1(%arg0: i32) -> (i32, i32) {
    %c0_i32 = arith.constant 0 : i32
    %c0_i32_0 = arith.constant 0 : i32
    %c0_i32_1 = arith.constant 0 : i32
    return %c0_i32, %c0_i32_0 : i32, i32
  }
  func.func @transform_2(%arg0: i32) -> (i32, i32) {
    %c0_i32 = arith.constant 0 : i32
    %c0_i32_0 = arith.constant 0 : i32
    %c0_i32_1 = arith.constant 0 : i32
    return %c0_i32, %c0_i32_0 : i32, i32
  }
  func.func @transform_3(%arg0: i32) -> (i32, i32) {
    %c0_i32 = arith.constant 0 : i32
    %c0_i32_0 = arith.constant 0 : i32
    %c0_i32_1 = arith.constant 0 : i32
    return %c0_i32, %c0_i32_0 : i32, i32
  }
  func.func @transform_4(%arg0: i32) -> (i32, i32) {
    %c0_i32 = arith.constant 0 : i32
    %c0_i32_0 = arith.constant 0 : i32
    %c0_i32_1 = arith.constant 0 : i32
    return %c0_i32, %c0_i32_0 : i32, i32
  }
  func.func @transform_5(%arg0: i32) -> (i32, i32) {
    %c0_i32 = arith.constant 0 : i32
    %c0_i32_0 = arith.constant 0 : i32
    %c0_i32_1 = arith.constant 0 : i32
    return %c0_i32, %c0_i32_0 : i32, i32
  }
  func.func @transform_6(%arg0: i32) -> (i32, i32) {
    %c0_i32 = arith.constant 0 : i32
    %c0_i32_0 = arith.constant 0 : i32
    %c0_i32_1 = arith.constant 0 : i32
    return %c0_i32, %c0_i32_0 : i32, i32
  }
  func.func @transform_7(%arg0: i32) -> (i32, i32) {
    %c0_i32 = arith.constant 0 : i32
    %c0_i32_0 = arith.constant 0 : i32
    %c0_i32_1 = arith.constant 0 : i32
    return %c0_i32, %c0_i32_0 : i32, i32
  }
  func.func @transform_8(%arg0: i32) -> (i32, i32) {
    %c0_i32 = arith.constant 0 : i32
    %c0_i32_0 = arith.constant 0 : i32
    %c0_i32_1 = arith.constant 0 : i32
    return %c0_i32, %c0_i32_0 : i32, i32
  }
  func.func @transform_9(%arg0: i32) -> (i32, i32) {
    %c0_i32 = arith.constant 0 : i32
    %c0_i32_0 = arith.constant 0 : i32
    %c0_i32_1 = arith.constant 0 : i32
    return %c0_i32, %c0_i32_0 : i32, i32
  }
  func.func @transform_10(%arg0: i32) -> (i32, i32) {
    %c0_i32 = arith.constant 0 : i32
    %c0_i32_0 = arith.constant 0 : i32
    %c0_i32_1 = arith.constant 0 : i32
    return %c0_i32, %c0_i32_0 : i32, i32
  }
  func.func @transform_11(%arg0: i32) -> (i32, i32) {
    %c0_i32 = arith.constant 0 : i32
    %c0_i32_0 = arith.constant 0 : i32
    %c0_i32_1 = arith.constant 0 : i32
    return %c0_i32, %c0_i32_0 : i32, i32
  }
  func.func @transform_12(%arg0: i32) -> (i32, i32) {
    %c0_i32 = arith.constant 0 : i32
    %c0_i32_0 = arith.constant 0 : i32
    %c0_i32_1 = arith.constant 0 : i32
    return %c0_i32, %c0_i32_0 : i32, i32
  }
  func.func @transform_13(%arg0: i32) -> (i32, i32) {
    %c0_i32 = arith.constant 0 : i32
    %c0_i32_0 = arith.constant 0 : i32
    %c0_i32_1 = arith.constant 0 : i32
    return %c0_i32, %c0_i32_0 : i32, i32
  }
  func.func @transform_14(%arg0: i32) -> (i32, i32, i32) {
    %c0_i32 = arith.constant 0 : i32
    %c0_i32_0 = arith.constant 0 : i32
    %c0_i32_1 = arith.constant 0 : i32
    %c0_i32_2 = arith.constant 0 : i32
    return %c0_i32, %c0_i32_0, %c0_i32_1 : i32, i32, i32
  }
  func.func @transform_15(%arg0: i32) -> (i32, i32) {
    %c0_i32 = arith.constant 0 : i32
    %c0_i32_0 = arith.constant 0 : i32
    %c0_i32_1 = arith.constant 0 : i32
    return %c0_i32, %c0_i32_0 : i32, i32
  }
  func.func @transform_16(%arg0: i32) -> (i32, i32, i32) {
    %c0_i32 = arith.constant 0 : i32
    %c0_i32_0 = arith.constant 0 : i32
    %c0_i32_1 = arith.constant 0 : i32
    %c0_i32_2 = arith.constant 0 : i32
    return %c0_i32, %c0_i32_0, %c0_i32_1 : i32, i32, i32
  }
  func.func @transform_17(%arg0: i32) -> (i32, i32) {
    %c0_i32 = arith.constant 0 : i32
    %c0_i32_0 = arith.constant 0 : i32
    %c0_i32_1 = arith.constant 0 : i32
    return %c0_i32, %c0_i32_0 : i32, i32
  }
  func.func @transform_18(%arg0: i32) -> (i32, i32) {
    %c0_i32 = arith.constant 0 : i32
    %c0_i32_0 = arith.constant 0 : i32
    %c0_i32_1 = arith.constant 0 : i32
    return %c0_i32, %c0_i32_0 : i32, i32
  }
  func.func @transform_19(%arg0: i32) -> (i32, i32) {
    %c0_i32 = arith.constant 0 : i32
    %c0_i32_0 = arith.constant 0 : i32
    %c0_i32_1 = arith.constant 0 : i32
    return %c0_i32, %c0_i32_0 : i32, i32
  }
  func.func @transform_20(%arg0: i32) -> (i32, i32, i32) {
    %c0_i32 = arith.constant 0 : i32
    %c0_i32_0 = arith.constant 0 : i32
    %c0_i32_1 = arith.constant 0 : i32
    %c0_i32_2 = arith.constant 0 : i32
    return %c0_i32, %c0_i32_0, %c0_i32_1 : i32, i32, i32
  }
  func.func @transform_21(%arg0: i32) -> (i32, i32) {
    %c0_i32 = arith.constant 0 : i32
    %c0_i32_0 = arith.constant 0 : i32
    %c0_i32_1 = arith.constant 0 : i32
    return %c0_i32, %c0_i32_0 : i32, i32
  }
  func.func @transform_22(%arg0: i32) -> (i32, i32, i32) {
    %c0_i32 = arith.constant 0 : i32
    %c0_i32_0 = arith.constant 0 : i32
    %c0_i32_1 = arith.constant 0 : i32
    %c0_i32_2 = arith.constant 0 : i32
    return %c0_i32, %c0_i32_0, %c0_i32_1 : i32, i32, i32
  }
  func.func @transform_23(%arg0: i32) -> (i32, i32) {
    %c0_i32 = arith.constant 0 : i32
    %c0_i32_0 = arith.constant 0 : i32
    %c0_i32_1 = arith.constant 0 : i32
    return %c0_i32, %c0_i32_0 : i32, i32
  }
  func.func @transform_24(%arg0: i32) -> (i32, i32, i32) {
    %c0_i32 = arith.constant 0 : i32
    %c0_i32_0 = arith.constant 0 : i32
    %c0_i32_1 = arith.constant 0 : i32
    %c0_i32_2 = arith.constant 0 : i32
    return %c0_i32, %c0_i32_0, %c0_i32_1 : i32, i32, i32
  }
  func.func @transform_25(%arg0: i32) -> (i32, i32) {
    %c0_i32 = arith.constant 0 : i32
    %c0_i32_0 = arith.constant 0 : i32
    %c0_i32_1 = arith.constant 0 : i32
    return %c0_i32, %c0_i32_0 : i32, i32
  }
  func.func @transform_26(%arg0: i32) -> (i32, i32, i32) {
    %c0_i32 = arith.constant 0 : i32
    %c0_i32_0 = arith.constant 0 : i32
    %c0_i32_1 = arith.constant 0 : i32
    %c0_i32_2 = arith.constant 0 : i32
    return %c0_i32, %c0_i32_0, %c0_i32_1 : i32, i32, i32
  }
  func.func @transform_27(%arg0: i32) -> (i32, i32) {
    %c0_i32 = arith.constant 0 : i32
    %c0_i32_0 = arith.constant 0 : i32
    %c0_i32_1 = arith.constant 0 : i32
    return %c0_i32, %c0_i32_0 : i32, i32
  }
  func.func @transform_28(%arg0: i32) -> (i32, i32, i32) {
    %c0_i32 = arith.constant 0 : i32
    %c0_i32_0 = arith.constant 0 : i32
    %c0_i32_1 = arith.constant 0 : i32
    %c0_i32_2 = arith.constant 0 : i32
    return %c0_i32, %c0_i32_0, %c0_i32_1 : i32, i32, i32
  }
  func.func @transform_29(%arg0: i32) -> (i32, i32) {
    %c0_i32 = arith.constant 0 : i32
    %c0_i32_0 = arith.constant 0 : i32
    %c0_i32_1 = arith.constant 0 : i32
    return %c0_i32, %c0_i32_0 : i32, i32
  }
  func.func @transform_30(%arg0: i32) -> (i32, i32, i32) {
    %c0_i32 = arith.constant 0 : i32
    %c0_i32_0 = arith.constant 0 : i32
    %c0_i32_1 = arith.constant 0 : i32
    %c0_i32_2 = arith.constant 0 : i32
    return %c0_i32, %c0_i32_0, %c0_i32_1 : i32, i32, i32
  }
  func.func @transform_31(%arg0: i32) -> (i32, i32) {
    %c0_i32 = arith.constant 0 : i32
    %c0_i32_0 = arith.constant 0 : i32
    %c0_i32_1 = arith.constant 0 : i32
    return %c0_i32, %c0_i32_0 : i32, i32
  }
  func.func @transform_32(%arg0: i32) -> (i32, i32, i32) {
    %c0_i32 = arith.constant 0 : i32
    %c0_i32_0 = arith.constant 0 : i32
    %c0_i32_1 = arith.constant 0 : i32
    %c0_i32_2 = arith.constant 0 : i32
    return %c0_i32, %c0_i32_0, %c0_i32_1 : i32, i32, i32
  }
  func.func @transform_33(%arg0: i32) -> (i32, i32) {
    %c0_i32 = arith.constant 0 : i32
    %c0_i32_0 = arith.constant 0 : i32
    %c0_i32_1 = arith.constant 0 : i32
    return %c0_i32, %c0_i32_0 : i32, i32
  }
  func.func @transform_34(%arg0: i32) -> (i32, i32, i32) {
    %c0_i32 = arith.constant 0 : i32
    %c0_i32_0 = arith.constant 0 : i32
    %c0_i32_1 = arith.constant 0 : i32
    %c0_i32_2 = arith.constant 0 : i32
    return %c0_i32, %c0_i32_0, %c0_i32_1 : i32, i32, i32
  }
  func.func @transform_35(%arg0: i32) -> (i32, i32) {
    %c0_i32 = arith.constant 0 : i32
    %c0_i32_0 = arith.constant 0 : i32
    %c0_i32_1 = arith.constant 0 : i32
    return %c0_i32, %c0_i32_0 : i32, i32
  }
  func.func @transform_36(%arg0: i32) -> (i32, i32) {
    %c0_i32 = arith.constant 0 : i32
    %c0_i32_0 = arith.constant 0 : i32
    %c0_i32_1 = arith.constant 0 : i32
    return %c0_i32, %c0_i32_0 : i32, i32
  }
  func.func @transform_37(%arg0: i32) -> (i32, i32) {
    %c0_i32 = arith.constant 0 : i32
    %c0_i32_0 = arith.constant 0 : i32
    %c0_i32_1 = arith.constant 0 : i32
    return %c0_i32, %c0_i32_0 : i32, i32
  }
  func.func @transform_38(%arg0: i32) -> (i32, i32, i32) {
    %c0_i32 = arith.constant 0 : i32
    %c0_i32_0 = arith.constant 0 : i32
    %c0_i32_1 = arith.constant 0 : i32
    return %arg0, %c0_i32, %c0_i32_0 : i32, i32, i32
  }
}

</mosaic_0001>

<bundles_post_ra>
// kernel: tpu_custom_call.1
= control target key start
LH: loop header
LB: loop body
LE: loop exit
PB: predicated region body
PF: predicated region fallthrough
CT: control target
= control target key end

     0   :  { %s7118_s6 = smov 1   ;;  %s7119_s10 = smov 2   ;;  %s7908_s0 = inlined_call_operand.smem [shape: u32[39], index: -1, kind: input, shape index: {}] }
   0x1   :  { %s7194_s5 = sld [smem:[%s7908_s0]]   ;;  %s7120_s14 = smov 3  }
   0x2   :  { %s7199_s9 = sld [smem:[%s7908_s0 + %s7118_s6]]   ;;  %s7121_s18 = smov 4  }
   0x3   :  { %s7204_s13 = sld [smem:[%s7908_s0 + %s7119_s10]]   ;;  %s7122_s22 = smov 5  }
   0x4   :  { %s7209_s17 = sld [smem:[%s7908_s0 + %s7120_s14]]   ;;  %s7123_s26 = smov 6  }
   0x5   :  { %s7214_s21 = sld [smem:[%s7908_s0 + %s7121_s18]]   ;;  %s7124_s30 = smov 7  }
   0x6   :  { %s7219_s25 = sld [smem:[%s7908_s0 + %s7122_s22]]   ;;  %s7125_s4 = smov 8  }
   0x7   :  { %7924 = sst [smem:[#allocation53_spill]] %s7194_s5  ;;  %s7126_s10 = smov 9  }
   0x8   :  { %7925 = sst [smem:[#allocation54_spill]] %s7199_s9  ;;  %s7127_s15 = smov 10  }
   0x9   :  { %7926 = sst [smem:[#allocation55_spill]] %s7204_s13  ;;  %s7128_s20 = smov 11  }
   0xa   :  { %s7224_s29 = sld [smem:[%s7908_s0 + %s7123_s26]]   ;;  %s7129_s26 = smov 12  }
   0xb   :  { %s7229_s3 = sld [smem:[%s7908_s0 + %s7124_s30]]   ;;  %s7130_s1 = smov 13  }
   0xc   :  { %s7234_s8 = sld [smem:[%s7908_s0 + %s7125_s4]]   ;;  %s7131_s7 = smov 14  }
   0xd   :  { %s7239_s14 = sld [smem:[%s7908_s0 + %s7126_s10]]   ;;  %s7133_s22 = smov 16  }
   0xe   :  { %s7244_s19 = sld [smem:[%s7908_s0 + %s7127_s15]]   ;;  %s7132_s15 = smov 15  }
   0xf   :  { %s7249_s24 = sld [smem:[%s7908_s0 + %s7128_s20]]   ;;  %s7134_s28 = smov 17  }
  0x10   :  { %s7254_s30 = sld [smem:[%s7908_s0 + %s7129_s26]]  }
  0x11   :  { %7927 = sst [smem:[#allocation56_spill]] %s7229_s3 }
  0x12   :  { %7928 = sst [smem:[#allocation57_spill]] %s7234_s8 }
  0x13   :  { %7929 = sst [smem:[#allocation58_spill]] %s7239_s14 }
  0x14   :  { %7930 = sst [smem:[#allocation59_spill]] %s7244_s19 }
  0x15   :  { %s7259_s6 = sld [smem:[%s7908_s0 + %s7130_s1]]  }
  0x16   :  { %7931 = sst [smem:[#allocation60_spill]] %s7254_s30 }
  0x17   :  { %s7264_s12 = sld [smem:[%s7908_s0 + %s7131_s7]]   ;;  %s7135_s7 = smov 18  }
  0x18   :  { %s7269_s20 = sld [smem:[%s7908_s0 + %s7132_s15]]   ;;  %s7136_s15 = smov 19  }
  0x19   :  { %s7274_s27 = sld [smem:[%s7908_s0 + %s7133_s22]]   ;;  %s7137_s22 = smov 20  }
  0x1a   :  { %s7279_s4 = sld [smem:[%s7908_s0 + %s7134_s28]]   ;;  %s7138_s28 = smov 21  }
  0x1b   :  { %7932 = sst [smem:[#allocation61_spill]] %s7259_s6 }
  0x1c   :  { %s7289_s5 = sld [smem:[%s7908_s0 + %s7136_s15]]   ;;  %s7140_s15 = smov 23  }
  0x1d   :  { %7933 = sst [smem:[#allocation62_spill]] %s7264_s12 }
  0x1e   :  { %7934 = sst [smem:[#allocation63_spill]] %s7269_s20 }
  0x1f   :  { %s7284_s12 = sld [smem:[%s7908_s0 + %s7135_s7]]   ;;  %s7139_s7 = smov 22  }
  0x20   :  { %7935 = sst [smem:[#allocation64_spill]] %s7279_s4 }
  0x21   :  { %s7294_s19 = sld [smem:[%s7908_s0 + %s7137_s22]]   ;;  %s7141_s22 = smov 24  }
  0x22   :  { %7937 = sst [smem:[#allocation66_spill]] %s7289_s5 }
  0x23   :  { %s7299_s4 = sld [smem:[%s7908_s0 + %s7138_s28]]   ;;  %s7142_s28 = smov 25  }
  0x24   :  { %s7309_s5 = sld [smem:[%s7908_s0 + %s7140_s15]]   ;;  %s7144_s15 = smov 27  }
  0x25   :  { %7936 = sst [smem:[#allocation65_spill]] %s7284_s12 }
  0x26   :  { %s7304_s12 = sld [smem:[%s7908_s0 + %s7139_s7]]   ;;  %s7143_s7 = smov 26  }
  0x27   :  { %s7314_s20 = sld [smem:[%s7908_s0 + %s7141_s22]]   ;;  %s7145_s22 = smov 28  }
  0x28   :  { %s7334_s30 = sld [smem:[%s7908_s0 + %s7145_s22]]   ;;  %s7149_s22 = smov 32  }
  0x29   :  { %7938 = sst [smem:[#allocation67_spill]] %s7299_s4 }
  0x2a   :  { %7940 = sst [smem:[#allocation69_spill]] %s7309_s5 }
  0x2b   :  { %s7319_s4 = sld [smem:[%s7908_s0 + %s7142_s28]]   ;;  %s7146_s28 = smov 29  }
  0x2c   :  { %7939 = sst [smem:[#allocation68_spill]] %s7304_s12 }
  0x2d   :  { %s7324_s12 = sld [smem:[%s7908_s0 + %s7143_s7]]   ;;  %s7147_s7 = smov 30  }
  0x2e   :  { %s7329_s5 = sld [smem:[%s7908_s0 + %s7144_s15]]   ;;  %s7148_s15 = smov 31  }
  0x2f   :  { %s7354_s14 = sld [smem:[%s7908_s0 + %s7149_s22]]   ;;  %s7153_s22 = smov 36  }
  0x30   :  { %s7374_s3 = sld [smem:[%s7908_s0 + %s7153_s22]]  }
  0x31   :  { %7941 = sst [smem:[#allocation70_spill]] %s7319_s4 }
  0x32   :  { %s7339_s4 = sld [smem:[%s7908_s0 + %s7146_s28]]   ;;  %s7150_s28 = smov 33  }
  0x33   :  { %7942 = sst [smem:[#allocation71_spill]] %s7324_s12 }
  0x34   :  { %7943 = sst [smem:[#allocation72_spill]] %s7329_s5 }
  0x35   :  { %s7344_s12 = sld [smem:[%s7908_s0 + %s7147_s7]]   ;;  %s7151_s7 = smov 34  }
  0x36   :  { %s7349_s5 = sld [smem:[%s7908_s0 + %s7148_s15]]   ;;  %s7152_s15 = smov 35  }
  0x38   :  { %7944 = sst [smem:[#allocation73_spill]] %s7339_s4 }
  0x39   :  { %s7359_s4 = sld [smem:[%s7908_s0 + %s7150_s28]]   ;;  %s7154_s28 = smov 37  }
  0x3b   :  { %7945 = sst [smem:[#allocation74_spill]] %s7344_s12 }
  0x3c   :  { %7946 = sst [smem:[#allocation75_spill]] %s7349_s5 }
  0x3d   :  { %s7364_s12 = sld [smem:[%s7908_s0 + %s7151_s7]]   ;;  %s7155_s7 = smov 38  }
  0x3e   :  { %s7369_s5 = sld [smem:[%s7908_s0 + %s7152_s15]]  }
  0x3f   :  { %7947 = sst [smem:[#allocation76_spill]] %s7359_s4 }
  0x40   :  { %s7379_s4 = sld [smem:[%s7908_s0 + %s7154_s28]]  }
  0x43   :  { %7948 = sst [smem:[#allocation77_spill]] %s7364_s12 }
  0x44   :  { %s7384_s12 = sld [smem:[%s7908_s0 + %s7155_s7]]  }
  0x45   :  { %82 = vsyncpa [#allocation4], 0 }
  0x46   :  { %83 = vsyncpa [#allocation7], 0 }
  0x47   :  { %84 = vsyncpa [#allocation10], 0 }
  0x48   :  { %85 = vsyncpa [#allocation13], 0 }
  0x49   :  { %86 = vsyncpa [#allocation16], 0 }
  0x4a   :  { %87 = vsyncpa [#allocation19], 0 }
  0x4b   :  { %88 = vsyncpa [#allocation22], 0 }
  0x4c   :  { %89 = vsyncpa [#allocation25], 0 }
  0x4d   :  { %90 = vsyncpa [#allocation28], 0 }
  0x4e   :  { %91 = vsyncpa [#allocation31], 0 }
  0x4f   :  { %92 = vsyncpa [#allocation34], 0 }
  0x50   :  { %93 = vsyncpa [#allocation37], 0 }
  0x51   :  { %94 = vsyncpa [#allocation5], 0 }
  0x52   :  { %96 = vsyncpa [#allocation5 + $0x1], 0  ;;  %s7386_s15 = smov 0   ;;  %s7388_s16 = smov 0  }
  0x53   :  { %s7390_s0 = smov 0   ;;  %s7392_s18 = smov 0  }
  0x54 LB: > { %7949 = sst [smem:[#allocation78_spill]] %s7104_s15  ;;  %s7407_s22 = sadd.s32 4294967295, %s7116_s18   ;;  %s7116_s18 = sphi %s7392_s18, %s8015_s18   ;;  %s7112_s0 = sphi %s7390_s0, %s8017_s0   ;;  %s7108_s16 = sphi %s7388_s16, %s8019_s16   ;;  %s7104_s15 = sphi %s7386_s15, %s8018_s15  }
  0x55   : > { %7950 = sst [smem:[#allocation79_spill]] %s7112_s0  ;;  %s5272_s23 = sadd.s32 4294967294, %s7116_s18  }
  0x56   : > { %s7411_s26 = sadd.s32 1, %s7116_s18   ;;  %s912_s28 = sadd.s32 1, %s7112_s0 }
  0x57   : > { %7951 = sst [smem:[#allocation80_spill]] %s7411_s26  ;;  %s909_s1 = ssub.s32 %s7116_s18, %s7411_s26 }
  0x58   : > { %p922_p0 = scmp.ne.s32.totalorder %s7112_s0, %s7108_s16  ;;  %p910_p1 = scmp.eq.s32.totalorder %s909_s1, 0 }
  0x59   : > { %p923_p2 = scmp.eq.s32.totalorder %s7407_s22, 1  ;;  %p928_p3 = scmp.ne.s32.totalorder %s7108_s16, %s7104_s15 }
  0x5a   : > { %p929_p4 = scmp.eq.s32.totalorder %s5272_s23, 1  ;;  %p5273_p7 = scmp.ge.s32.totalorder %s7116_s18, 1 }
  0x5b   : > { %s7422_s2 = scalar_select %p910_p1, %s7112_s0, %s912_s28  }
  0x5c   : > { %p7424_p5 = por %p923_p2, %p922_p0  ;;  %p7428_p6 = por %p929_p4, %p928_p3 }
  0x5d   : > { %7952 = sst [smem:[#allocation81_spill]] %s7422_s2  ;;  %p936_p8 = scmp.lt.s32.totalorder %s7116_s18, 3 }
  0x5e   : > { %s7953_s7 = scalar_select %p7424_p5, 1, 0 }
  0x5f   : > { %s7954_s10 = scalar_select %p7428_p6, 1, 0 }
  0x60   : > { %p7917_p9 = scmp.eq.s32.totalorder %s7407_s22, 0  ;;  %p7435_p10 = pnand %p5273_p7, %p936_p8 }
  0x61   : > { %7955 = sst [smem:[#allocation82_spill]] %s7954_s10  ;;  %s7156_s1 = smov [#allocation6]  }
  0x62   : > { %s7956_s11 = scalar_select %p7435_p10, 1, 0 }
  0x63   : > { %s960_s23 = sshll.u32 %s7156_s1, 4  ;;  %p6142_p11 = pneg %p7435_p10  ;;  %s961_s23 = int_to_ptr.vmem [resolvable:$true] %s960_s23 }
  0x64   : > { %s7157_s28 = smov [#allocation9]   ;;  %s7158_s26 = smov [#allocation12]  }
  0x65   : > { %s982_s2 = sshll.u32 %s7157_s28, 4  ;;  %p7443_p12 = pnand %p7917_p9, %p6142_p11  ;;  %s983_s2 = int_to_ptr.vmem [resolvable:$true] %s982_s2 }
  0x66   : > { %s1004_s10 = sshll.u32 %s7158_s26, 4  ;;  %s6421_s1 = scalar_lea.vmem %s961_s23, 64  ;;  %s7447_s10 = int_to_ptr.vmem [resolvable:$true] %s1004_s10 }
  0x67   : > { %p7451_p13 = pneg %p7443_p12  ;;  %p6422_p0 = scmp.ne.s32.totalorder %s961_s23, %s6421_s1 }
  0x68   : > { %p6429_p3 = scmp.lt.s32.totalorder %s961_s23, %s961_s23  ;;  %p6430_p4 = scmp.lt.s32.totalorder %s6421_s1, %s6421_s1 }
  0x69   : > { %p6424_p1 = pnand %p6422_p0, %p7451_p13 }
  0x6a   : > { %p6431_p7 = por %p6430_p4, %p6429_p3 }
  0x6b   : > { %p6425_p2 = pneg %p6424_p1 }
  0x6d   : > { %p6432_p8 = pnand %p6431_p7, %p6425_p2 }
  0x6f   : > { %6435 = shalt.err (!%p6432_p8)
}
  0x70   : > { %s7959_s13 = sld [smem:[#allocation55_spill]]  ;;  %s6447_s26 = scalar_lea.vmem %s983_s2, 64 }
  0x71   : > { %p6448_p11 = scmp.ne.s32.totalorder %s983_s2, %s6447_s26  ;;  %p6455_p5 = scmp.lt.s32.totalorder %s983_s2, %s983_s2 }
  0x72   : > { %p6456_p10 = scmp.lt.s32.totalorder %s6447_s26, %s6447_s26 }
  0x73   : > { %p6450_p9 = pnand %p6448_p11, %p7451_p13 }
  0x74   : > { %p6457_p0 = por %p6456_p10, %p6455_p5 }
  0x75   : > { %p6451_p6 = pneg %p6450_p9 }
  0x76   : > { %6148 = dma.hbm_to_vmem [thread:$0]  (!%p7443_p12), %s7959_s13, 64, %s961_s23, [#allocation7]  }
  0x77   : > { %p6458_p1 = pnand %p6457_p0, %p6451_p6 }
  0x79   : > { %6461 = shalt.err (!%p6458_p1)
}
  0x7a   : > { %6154 = dma.hbm_to_vmem [thread:$0]  (!%p7443_p12), %s7214_s21, 64, %s983_s2, [#allocation10]  }
  0x7b   : > { %s6473_s28 = scalar_lea.vmem %s7447_s10, 128  ;;  %p6481_p9 = scmp.lt.s32.totalorder %s7447_s10, %s7447_s10 }
  0x7c   : > { %p6474_p2 = scmp.ne.s32.totalorder %s7447_s10, %s6473_s28  ;;  %p6482_p7 = scmp.lt.s32.totalorder %s6473_s28, %s6473_s28 }
  0x7e   : > { %p6476_p3 = pnand %p6474_p2, %p7451_p13  ;;  %p6483_p8 = por %p6482_p7, %p6481_p9 }
  0x80   : > { %p6477_p4 = pneg %p6476_p3 }
  0x82   : > { %p6484_p5 = pnand %p6483_p8, %p6477_p4 }
  0x84   : > { %6487 = shalt.err (!%p6484_p5)
}
  0x85   : > { %6160 = dma.hbm_to_vmem [thread:$0]  (!%p7443_p12), %s7224_s29, 128, %s7447_s10, [#allocation13]  }
  0x86   : > { %s7159_s23 = smov [#allocation15]   ;;  %s7160_s2 = smov [#allocation18]  }
  0x87   : > { %s1026_s1 = sshll.u32 %s7159_s23, 4  ;;  %s1051_s26 = sshll.u32 %s7160_s2, 4  ;;  %s1027_s1 = int_to_ptr.vmem [resolvable:$true] %s1026_s1  ;;  %s1052_s26 = int_to_ptr.vmem [resolvable:$true] %s1051_s26 }
  0x88   : > { %s6499_s13 = scalar_lea.vmem %s1027_s1, 128  ;;  %p6507_p0 = scmp.lt.s32.totalorder %s1027_s1, %s1027_s1 }
  0x89   : > { %p6500_p6 = scmp.ne.s32.totalorder %s1027_s1, %s6499_s13  ;;  %p6508_p1 = scmp.lt.s32.totalorder %s6499_s13, %s6499_s13 }
  0x8b   : > { %p6502_p10 = pnand %p6500_p6, %p7451_p13  ;;  %p6509_p2 = por %p6508_p1, %p6507_p0 }
  0x8d   : > { %p6503_p11 = pneg %p6502_p10 }
  0x8f   : > { %p6510_p3 = pnand %p6509_p2, %p6503_p11 }
  0x91   : > { %6513 = shalt.err (!%p6510_p3)
}
  0x92   : > { %s7960_s8 = sld [smem:[#allocation57_spill]]  ;;  %s6525_s10 = scalar_lea.vmem %s1052_s26, 16 }
  0x93   : > { %p6526_p4 = scmp.ne.s32.totalorder %s1052_s26, %s6525_s10  ;;  %s6532_s28 = scalar_lea.vmem %s1052_s26, 32 }
  0x94   : > { %p6533_p8 = scmp.lt.s32.totalorder %s1052_s26, %s1052_s26  ;;  %p6534_p5 = scmp.lt.s32.totalorder %s6532_s28, %s6525_s10 }
  0x95   : > { %p6528_p9 = pnand %p6526_p4, %p7451_p13 }
  0x96   : > { %p6535_p6 = por %p6534_p5, %p6533_p8 }
  0x97   : > { %p6529_p7 = pneg %p6528_p9 }
  0x98   : > { %6166 = dma.hbm_to_vmem [thread:$0]  (!%p7443_p12), %s7960_s8, 128, %s1027_s1, [#allocation16]  }
  0x99   : > { %p6536_p10 = pnand %p6535_p6, %p6529_p7 }
  0x9b   : > { %6539 = shalt.err (!%p6536_p10)
}
  0x9c   : > { %6172 = dma.hbm_to_vmem [thread:$0]  (!%p7443_p12), %s7249_s24, 16, %s1052_s26, [#allocation19]  }
  0x9d   : > { %s7161_s13 = smov [#allocation21]  }
  0x9e   : > { %s1072_s23 = sshll.u32 %s7161_s13, 4  ;;  %s1073_s23 = int_to_ptr.vmem [resolvable:$true] %s1072_s23 }
  0x9f   : > { %s6551_s1 = scalar_lea.vmem %s1073_s23, 256  ;;  %p6559_p2 = scmp.lt.s32.totalorder %s1073_s23, %s1073_s23 }
  0xa0   : > { %p6552_p11 = scmp.ne.s32.totalorder %s1073_s23, %s6551_s1  ;;  %p6560_p3 = scmp.lt.s32.totalorder %s6551_s1, %s6551_s1 }
  0xa2   : > { %p6554_p0 = pnand %p6552_p11, %p7451_p13  ;;  %p6561_p4 = por %p6560_p3, %p6559_p2 }
  0xa4   : > { %p6555_p1 = pneg %p6554_p0 }
  0xa6   : > { %p6562_p9 = pnand %p6561_p4, %p6555_p1 }
  0xa8   : > { %6565 = shalt.err (!%p6562_p9)
}
  0xa9   : > { %s7920_s2 = smov 128   ;;  %s7961_s6 = sld [smem:[#allocation61_spill]] }
  0xaa   : > { %s7922_s10 = smov 8   ;;  %s7164_s26 = smov [#allocation24]  }
  0xab   : > { %s1099_s28 = sshll.u32 %s7164_s26, 4  ;;  %s7165_s13 = smov [#allocation27]   ;;  %s1100_s28 = int_to_ptr.vmem [resolvable:$true] %s1099_s28 }
  0xac   : > { %s1129_s8 = sshll.u32 %s7165_s13, 4  ;;  %s6577_s1 = scalar_lea.vmem %s1100_s28, 1536  ;;  %s1130_s8 = int_to_ptr.vmem [resolvable:$true] %s1129_s8 }
  0xad   : > { %p6578_p7 = scmp.ne.s32.totalorder %s1100_s28, %s6577_s1  ;;  %p6585_p6 = scmp.lt.s32.totalorder %s1100_s28, %s1100_s28 }
  0xae   : > { %p6586_p10 = scmp.lt.s32.totalorder %s6577_s1, %s6577_s1 }
  0xaf   : > { %6178 = dma.hbm_to_vmem [thread:$0]  (!%p7443_p12), %s7961_s6, 256, %s1073_s23, [#allocation22], %s7920_s2, %s7920_s2, %s7922_s10  }
  0xb0   : > { %p6580_p8 = pnand %p6578_p7, %p7451_p13  ;;  %p6587_p11 = por %p6586_p10, %p6585_p6 }
  0xb2   : > { %p6581_p5 = pneg %p6580_p8 }
  0xb4   : > { %p6588_p0 = pnand %p6587_p11, %p6581_p5 }
  0xb6   : > { %6591 = shalt.err (!%p6588_p0)
}
  0xb7   : > { %6184 = dma.hbm_to_vmem [thread:$0]  (!%p7443_p12), %s7274_s27, 1536, %s1100_s28, [#allocation25], %s7920_s2, %s7920_s2, %s7922_s10  }
  0xb8   : > { %s6603_s23 = scalar_lea.vmem %s1130_s8, 1536  ;;  %p6611_p4 = scmp.lt.s32.totalorder %s1130_s8, %s1130_s8 }
  0xb9   : > { %p6604_p1 = scmp.ne.s32.totalorder %s1130_s8, %s6603_s23  ;;  %p6612_p9 = scmp.lt.s32.totalorder %s6603_s23, %s6603_s23 }
  0xbb   : > { %p6606_p2 = pnand %p6604_p1, %p7451_p13  ;;  %p6613_p7 = por %p6612_p9, %p6611_p4 }
  0xbd   : > { %p6607_p3 = pneg %p6606_p2 }
  0xbf   : > { %p6614_p8 = pnand %p6613_p7, %p6607_p3 }
  0xc1   : > { %6617 = shalt.err (!%p6614_p8)
}
  0xc2   : > { %6190 = dma.hbm_to_vmem [thread:$0]  (!%p7443_p12), %s7294_s19, 1536, %s1130_s8, [#allocation28], %s7920_s2, %s7920_s2, %s7922_s10  }
  0xc3   : > { %s7166_s26 = smov [#allocation30]   ;;  %s7167_s13 = smov [#allocation33]  }
  0xc4   : > { %s1161_s28 = sshll.u32 %s7166_s26, 4  ;;  %s1193_s1 = sshll.u32 %s7167_s13, 4  ;;  %s1162_s28 = int_to_ptr.vmem [resolvable:$true] %s1161_s28  ;;  %s1194_s1 = int_to_ptr.vmem [resolvable:$true] %s1193_s1 }
  0xc5   : > { %s6629_s6 = scalar_lea.vmem %s1162_s28, 1536  ;;  %p6637_p11 = scmp.lt.s32.totalorder %s1162_s28, %s1162_s28 }
  0xc6   : > { %p6630_p5 = scmp.ne.s32.totalorder %s1162_s28, %s6629_s6  ;;  %p6638_p0 = scmp.lt.s32.totalorder %s6629_s6, %s6629_s6 }
  0xc8   : > { %p6632_p6 = pnand %p6630_p5, %p7451_p13  ;;  %p6639_p1 = por %p6638_p0, %p6637_p11 }
  0xca   : > { %p6633_p10 = pneg %p6632_p6 }
  0xcc   : > { %p6640_p2 = pnand %p6639_p1, %p6633_p10 }
  0xce   : > { %6643 = shalt.err (!%p6640_p2)
}
  0xcf   : > { %6196 = dma.hbm_to_vmem [thread:$0]  (!%p7443_p12), %s7314_s20, 1536, %s1162_s28, [#allocation31], %s7920_s2, %s7920_s2, %s7922_s10  }
  0xd0   : > { %s6655_s8 = scalar_lea.vmem %s1194_s1, 1536  ;;  %p6663_p7 = scmp.lt.s32.totalorder %s1194_s1, %s1194_s1 }
  0xd1   : > { %p6656_p3 = scmp.ne.s32.totalorder %s1194_s1, %s6655_s8  ;;  %p6664_p8 = scmp.lt.s32.totalorder %s6655_s8, %s6655_s8 }
  0xd3   : > { %p6658_p4 = pnand %p6656_p3, %p7451_p13  ;;  %p6665_p5 = por %p6664_p8, %p6663_p7 }
  0xd5   : > { %p6659_p9 = pneg %p6658_p4 }
  0xd7   : > { %p6666_p6 = pnand %p6665_p5, %p6659_p9 }
  0xd9   : > { %6669 = shalt.err (!%p6666_p6)
}
  0xda   : > { %6202 = dma.hbm_to_vmem [thread:$0]  (!%p7443_p12), %s7334_s30, 1536, %s1194_s1, [#allocation34], %s7920_s2, %s7920_s2, %s7922_s10  }
  0xdb   : > { %s7168_s6 = smov [#allocation36]   ;;  %s7169_s26 = smov [#allocation3]  }
  0xdc   : > { %s1225_s23 = sshll.u32 %s7168_s6, 4  ;;  %s949_s28 = sshll.u32 %s7169_s26, 4  ;;  %s1226_s23 = int_to_ptr.vmem [resolvable:$true] %s1225_s23  ;;  %s950_s28 = int_to_ptr.vmem [resolvable:$true] %s949_s28 }
  0xdd   : > { %s6681_s13 = scalar_lea.vmem %s1226_s23, 1536  ;;  %p6689_p1 = scmp.lt.s32.totalorder %s1226_s23, %s1226_s23 }
  0xde   : > { %p6682_p10 = scmp.ne.s32.totalorder %s1226_s23, %s6681_s13  ;;  %p6690_p2 = scmp.lt.s32.totalorder %s6681_s13, %s6681_s13 }
  0xe0   : > { %p6684_p11 = pnand %p6682_p10, %p7451_p13  ;;  %p6691_p3 = por %p6690_p2, %p6689_p1 }
  0xe2   : > { %p6685_p0 = pneg %p6684_p11 }
  0xe4   : > { %p6692_p4 = pnand %p6691_p3, %p6685_p0 }
  0xe6   : > { %6695 = shalt.err (!%p6692_p4)
}
  0xe7   : > { %6208 = dma.hbm_to_vmem [thread:$0]  (!%p7443_p12), %s7354_s14, 1536, %s1226_s23, [#allocation37], %s7920_s2, %s7920_s2, %s7922_s10  }
  0xe8   : > { %s6707_s1 = scalar_lea.vmem %s950_s28, 32  ;;  %p6715_p5 = scmp.lt.s32.totalorder %s950_s28, %s950_s28 }
  0xe9   : > { %p6708_p9 = scmp.ne.s32.totalorder %s950_s28, %s6707_s1  ;;  %p6716_p6 = scmp.lt.s32.totalorder %s6707_s1, %s6707_s1 }
  0xeb   : > { %p6710_p7 = pnand %p6708_p9, %p7451_p13  ;;  %p6717_p10 = por %p6716_p6, %p6715_p5 }
  0xed   : > { %p6711_p8 = pneg %p6710_p7 }
  0xef   : > { %p6718_p11 = pnand %p6717_p10, %p6711_p8 }
  0xf1   : > { %6721 = shalt.err (!%p6718_p11)
}
  0xf2   : > { %s7962_s9 = sld [smem:[#allocation54_spill]]  ;;  %s7170_s8 = smov [#allocation8]  }
  0xf3   : > { %s971_s6 = sshll.u32 %s7170_s8, 4  ;;  %s7171_s26 = smov [#allocation11]   ;;  %s972_s6 = int_to_ptr.vmem [resolvable:$true] %s971_s6 }
  0xf4   : > { %s993_s13 = sshll.u32 %s7171_s26, 4  ;;  %s6733_s23 = scalar_lea.vmem %s972_s6, 16  ;;  %s994_s13 = int_to_ptr.vmem [resolvable:$true] %s993_s13 }
  0xf5   : > { %p6734_p0 = scmp.ne.s32.totalorder %s972_s6, %s6733_s23  ;;  %s6740_s1 = scalar_lea.vmem %s972_s6, 32 }
  0xf6   : > { %p6741_p3 = scmp.lt.s32.totalorder %s972_s6, %s972_s6  ;;  %p6742_p4 = scmp.lt.s32.totalorder %s6740_s1, %s6733_s23 }
  0xf7   : > { %p6736_p1 = pnand %p6734_p0, %p7451_p13 }
  0xf8   : > { %6145 = dma.hbm_to_vmem [thread:$0]  (!%p7443_p12), %s7962_s9, 32, %s950_s28, [#allocation4]  }
  0xf9   : > { %p6737_p2 = pneg %p6736_p1  ;;  %p6743_p9 = por %p6742_p4, %p6741_p3 }
  0xfb   : > { %p6744_p7 = pnand %p6743_p9, %p6737_p2 }
  0xfd   : > { %6747 = shalt.err (!%p6744_p7)
}
  0xfe   : > { %6151 = dma.hbm_to_vmem [thread:$0]  (!%p7443_p12), %s7209_s17, 16, %s972_s6, [#allocation7]  }
  0xff   : > { %s6759_s28 = scalar_lea.vmem %s994_s13, 16  ;;  %s6766_s8 = scalar_lea.vmem %s994_s13, 32 }
 0x100   : > { %p6760_p8 = scmp.ne.s32.totalorder %s994_s13, %s6759_s28  ;;  %p6767_p10 = scmp.lt.s32.totalorder %s994_s13, %s994_s13 }
 0x101   : > { %p6768_p11 = scmp.lt.s32.totalorder %s6766_s8, %s6759_s28 }
 0x102   : > { %p6762_p5 = pnand %p6760_p8, %p7451_p13 }
 0x103   : > { %p6769_p0 = por %p6768_p11, %p6767_p10 }
 0x104   : > { %p6763_p6 = pneg %p6762_p5 }
 0x106   : > { %p6770_p1 = pnand %p6769_p0, %p6763_p6 }
 0x108   : > { %6773 = shalt.err (!%p6770_p1)
}
 0x109   : > { %6157 = dma.hbm_to_vmem [thread:$0]  (!%p7443_p12), %s7219_s25, 16, %s994_s13, [#allocation10]  }
 0x10a   : > { %s7172_s26 = smov [#allocation14]   ;;  %s7173_s1 = smov [#allocation17]  }
 0x10b   : > { %s1015_s23 = sshll.u32 %s7172_s26, 4  ;;  %s1037_s6 = sshll.u32 %s7173_s1, 4  ;;  %s1016_s23 = int_to_ptr.vmem [resolvable:$true] %s1015_s23  ;;  %s1038_s6 = int_to_ptr.vmem [resolvable:$true] %s1037_s6 }
 0x10c   : > { %s6785_s2 = scalar_lea.vmem %s1016_s23, 16  ;;  %s6792_s28 = scalar_lea.vmem %s1016_s23, 32 }
 0x10d   : > { %p6786_p2 = scmp.ne.s32.totalorder %s1016_s23, %s6785_s2  ;;  %p6793_p9 = scmp.lt.s32.totalorder %s1016_s23, %s1016_s23 }
 0x10e   : > { %p6794_p7 = scmp.lt.s32.totalorder %s6792_s28, %s6785_s2 }
 0x10f   : > { %p6788_p3 = pnand %p6786_p2, %p7451_p13 }
 0x110   : > { %p6795_p8 = por %p6794_p7, %p6793_p9 }
 0x111   : > { %p6789_p4 = pneg %p6788_p3 }
 0x113   : > { %p6796_p5 = pnand %p6795_p8, %p6789_p4 }
 0x115   : > { %6799 = shalt.err (!%p6796_p5)
}
 0x116   : > { %s7963_s13 = sld [smem:[#allocation56_spill]]  ;;  %s6811_s8 = scalar_lea.vmem %s1038_s6, 16 }
 0x117   : > { %p6812_p6 = scmp.ne.s32.totalorder %s1038_s6, %s6811_s8  ;;  %s6818_s26 = scalar_lea.vmem %s1038_s6, 32 }
 0x118   : > { %p6819_p0 = scmp.lt.s32.totalorder %s1038_s6, %s1038_s6  ;;  %p6820_p1 = scmp.lt.s32.totalorder %s6818_s26, %s6811_s8 }
 0x119   : > { %p6814_p10 = pnand %p6812_p6, %p7451_p13 }
 0x11a   : > { %p6821_p2 = por %p6820_p1, %p6819_p0 }
 0x11b   : > { %p6815_p11 = pneg %p6814_p10 }
 0x11c   : > { %6163 = dma.hbm_to_vmem [thread:$0]  (!%p7443_p12), %s7963_s13, 16, %s1016_s23, [#allocation13]  }
 0x11d   : > { %p6822_p3 = pnand %p6821_p2, %p6815_p11 }
 0x11f   : > { %6825 = shalt.err (!%p6822_p3)
}
 0x120   : > { %s7964_s2 = sld [smem:[#allocation58_spill]]  ;;  %s7174_s1 = smov [#allocation20]  }
 0x121   : > { %s1062_s28 = sshll.u32 %s7174_s1, 4  ;;  %s7175_s10 = smov [#allocation23]   ;;  %s1063_s28 = int_to_ptr.vmem [resolvable:$true] %s1062_s28 }
 0x122   : > { %s1089_s23 = sshll.u32 %s7175_s10, 4  ;;  %s6837_s13 = scalar_lea.vmem %s1063_s28, 128  ;;  %s1090_s23 = int_to_ptr.vmem [resolvable:$true] %s1089_s23 }
 0x123   : > { %p6838_p4 = scmp.ne.s32.totalorder %s1063_s28, %s6837_s13  ;;  %p6845_p8 = scmp.lt.s32.totalorder %s1063_s28, %s1063_s28 }
 0x124   : > { %p6846_p5 = scmp.lt.s32.totalorder %s6837_s13, %s6837_s13 }
 0x125   : > { %p6840_p9 = pnand %p6838_p4, %p7451_p13 }
 0x126   : > { %6169 = dma.hbm_to_vmem [thread:$0]  (!%p7443_p12), %s7964_s2, 16, %s1038_s6, [#allocation16]  }
 0x127   : > { %p6841_p7 = pneg %p6840_p9  ;;  %p6847_p6 = por %p6846_p5, %p6845_p8 }
 0x129   : > { %p6848_p10 = pnand %p6847_p6, %p6841_p7 }
 0x12b   : > { %6851 = shalt.err (!%p6848_p10)
}
 0x12c   : > { %s7965_s8 = sld [smem:[#allocation60_spill]]  ;;  %s6863_s6 = scalar_lea.vmem %s1090_s23, 16 }
 0x12d   : > { %p6864_p11 = scmp.ne.s32.totalorder %s1090_s23, %s6863_s6  ;;  %s6870_s10 = scalar_lea.vmem %s1090_s23, 32 }
 0x12e   : > { %p6871_p2 = scmp.lt.s32.totalorder %s1090_s23, %s1090_s23  ;;  %p6872_p3 = scmp.lt.s32.totalorder %s6870_s10, %s6863_s6 }
 0x12f   : > { %p6866_p0 = pnand %p6864_p11, %p7451_p13 }
 0x130   : > { %p6873_p4 = por %p6872_p3, %p6871_p2 }
 0x131   : > { %p6867_p1 = pneg %p6866_p0 }
 0x132   : > { %6175 = dma.hbm_to_vmem [thread:$0]  (!%p7443_p12), %s7965_s8, 128, %s1063_s28, [#allocation19]  }
 0x133   : > { %p6874_p9 = pnand %p6873_p4, %p6867_p1 }
 0x135   : > { %6877 = shalt.err (!%p6874_p9)
}
 0x136   : > { %s7966_s26 = sld [smem:[#allocation63_spill]]  ;;  %s7176_s2 = smov [#allocation26]  }
 0x137   : > { %s1113_s1 = sshll.u32 %s7176_s2, 4  ;;  %s7177_s13 = smov [#allocation29]   ;;  %s1114_s1 = int_to_ptr.vmem [resolvable:$true] %s1113_s1 }
 0x138   : > { %s1145_s28 = sshll.u32 %s7177_s13, 4  ;;  %s6889_s8 = scalar_lea.vmem %s1114_s1, 16  ;;  %s1146_s28 = int_to_ptr.vmem [resolvable:$true] %s1145_s28 }
 0x139   : > { %p6890_p7 = scmp.ne.s32.totalorder %s1114_s1, %s6889_s8  ;;  %s6896_s6 = scalar_lea.vmem %s1114_s1, 32 }
 0x13a   : > { %p6897_p6 = scmp.lt.s32.totalorder %s1114_s1, %s1114_s1  ;;  %p6898_p10 = scmp.lt.s32.totalorder %s6896_s6, %s6889_s8 }
 0x13b   : > { %p6892_p8 = pnand %p6890_p7, %p7451_p13 }
 0x13c   : > { %6181 = dma.hbm_to_vmem [thread:$0]  (!%p7443_p12), %s7966_s26, 16, %s1090_s23, [#allocation22]  }
 0x13d   : > { %p6893_p5 = pneg %p6892_p8  ;;  %p6899_p11 = por %p6898_p10, %p6897_p6 }
 0x13f   : > { %p6900_p0 = pnand %p6899_p11, %p6893_p5 }
 0x141   : > { %6903 = shalt.err (!%p6900_p0)
}
 0x142   : > { %s7967_s23 = sld [smem:[#allocation64_spill]]  ;;  %s6915_s10 = scalar_lea.vmem %s1146_s28, 1536 }
 0x143   : > { %p6916_p1 = scmp.ne.s32.totalorder %s1146_s28, %s6915_s10  ;;  %p6923_p4 = scmp.lt.s32.totalorder %s1146_s28, %s1146_s28 }
 0x144   : > { %p6924_p9 = scmp.lt.s32.totalorder %s6915_s10, %s6915_s10 }
 0x145   : > { %p6918_p2 = pnand %p6916_p1, %p7451_p13 }
 0x146   : > { %p6925_p7 = por %p6924_p9, %p6923_p4 }
 0x147   : > { %p6919_p3 = pneg %p6918_p2 }
 0x148   : > { %6187 = dma.hbm_to_vmem [thread:$0]  (!%p7443_p12), %s7967_s23, 16, %s1114_s1, [#allocation25]  }
 0x149   : > { %p6926_p8 = pnand %p6925_p7, %p6919_p3 }
 0x14b   : > { %6929 = shalt.err (!%p6926_p8)
}
 0x14c   : > { %s7968_s26 = smov 8   ;;  %s7969_s2 = smov 128  }
 0x14d   : > { %s7970_s13 = sld [smem:[#allocation68_spill]]  ;;  %s7178_s8 = smov [#allocation32]  }
 0x14e   : > { %s1177_s1 = sshll.u32 %s7178_s8, 4  ;;  %s7179_s6 = smov [#allocation35]   ;;  %s1178_s1 = int_to_ptr.vmem [resolvable:$true] %s1177_s1 }
 0x14f   : > { %s1209_s23 = sshll.u32 %s7179_s6, 4  ;;  %s6941_s9 = scalar_lea.vmem %s1178_s1, 1536  ;;  %s1210_s23 = int_to_ptr.vmem [resolvable:$true] %s1209_s23 }
 0x150   : > { %p6942_p5 = scmp.ne.s32.totalorder %s1178_s1, %s6941_s9  ;;  %p6949_p11 = scmp.lt.s32.totalorder %s1178_s1, %s1178_s1 }
 0x151   : > { %p6950_p0 = scmp.lt.s32.totalorder %s6941_s9, %s6941_s9 }
 0x152   : > { %p6944_p6 = pnand %p6942_p5, %p7451_p13 }
 0x153   : > { %6193 = dma.hbm_to_vmem [thread:$0]  (!%p7443_p12), %s7970_s13, 1536, %s1146_s28, [#allocation28], %s7969_s2, %s7969_s2, %s7968_s26  }
 0x154   : > { %p6945_p10 = pneg %p6944_p6  ;;  %p6951_p1 = por %p6950_p0, %p6949_p11 }
 0x156   : > { %p6952_p2 = pnand %p6951_p1, %p6945_p10 }
 0x158   : > { %6955 = shalt.err (!%p6952_p2)
}
 0x159   : > { %s7971_s28 = sld [smem:[#allocation71_spill]]  ;;  %s6967_s10 = scalar_lea.vmem %s1210_s23, 1536 }
 0x15a   : > { %p6968_p3 = scmp.ne.s32.totalorder %s1210_s23, %s6967_s10  ;;  %p6975_p7 = scmp.lt.s32.totalorder %s1210_s23, %s1210_s23 }
 0x15b   : > { %p6976_p8 = scmp.lt.s32.totalorder %s6967_s10, %s6967_s10 }
 0x15c   : > { %p6970_p4 = pnand %p6968_p3, %p7451_p13 }
 0x15d   : > { %p6977_p5 = por %p6976_p8, %p6975_p7 }
 0x15e   : > { %p6971_p9 = pneg %p6970_p4 }
 0x15f   : > { %6199 = dma.hbm_to_vmem [thread:$0]  (!%p7443_p12), %s7971_s28, 1536, %s1178_s1, [#allocation31], %s7969_s2, %s7969_s2, %s7968_s26  }
 0x160   : > { %p6978_p6 = pnand %p6977_p5, %p6971_p9 }
 0x162   : > { %6981 = shalt.err (!%p6978_p6)
}
 0x163   : > { %s7972_s9 = sld [smem:[#allocation74_spill]]  ;;  %s7180_s13 = smov [#allocation38]  }
 0x164   : > { %s1241_s8 = sshll.u32 %s7180_s13, 4  ;;  %s1242_s8 = int_to_ptr.vmem [resolvable:$true] %s1241_s8 }
 0x165   : > { %s6993_s1 = scalar_lea.vmem %s1242_s8, 1536  ;;  %p7001_p1 = scmp.lt.s32.totalorder %s1242_s8, %s1242_s8 }
 0x166   : > { %p6994_p10 = scmp.ne.s32.totalorder %s1242_s8, %s6993_s1  ;;  %p7002_p2 = scmp.lt.s32.totalorder %s6993_s1, %s6993_s1 }
 0x168   : > { %p6996_p11 = pnand %p6994_p10, %p7451_p13  ;;  %p7003_p3 = por %p7002_p2, %p7001_p1 }
 0x169   : > { %6205 = dma.hbm_to_vmem [thread:$0]  (!%p7443_p12), %s7972_s9, 1536, %s1210_s23, [#allocation34], %s7969_s2, %s7969_s2, %s7968_s26  }
 0x16a   : > { %p6997_p0 = pneg %p6996_p11 }
 0x16c   : > { %p7004_p4 = pnand %p7003_p3, %p6997_p0 }
 0x16e   : > { %7007 = shalt.err (!%p7004_p4)
}
 0x16f   : > { %s7973_s6 = sld [smem:[#allocation77_spill]]  ;;  %p7974_p9 = scmp.ne.s32.totalorder %s7956_s11, 0 }
 0x170   : > { %p7975_p7 = scmp.eq.s32.totalorder (!%p7974_p9), %s7407_s22, 0 }
 0x171   : > { %1274 = sbr.rel (%p7974_p9) target bundleno = 2779 (0xadb), region = 172 }
 0x175   : > { %6211 = dma.hbm_to_vmem [thread:$0]  (!%p7443_p12), %s7973_s6, 1536, %s1242_s8, [#allocation37], %s7969_s2, %s7969_s2, %s7968_s26  }
 0x176   : > { %7051 = dma.done.wait (%p7975_p7), [#allocation4], 32   ;;  %p7976_p13 = pmov %p7975_p7 }
 0x177   : > { %p7977_p8 = pmov %p7975_p7 }
 0x178   : > { %7053 = vsyncadd (%p7976_p13), [#allocation4], 4294967264 }
 0x179   : > { %7055 = dma.done.wait (%p7977_p8), [#allocation7], 80   ;;  %p7978_p5 = pmov %p7975_p7 }
 0x17b   : > { %7057 = vsyncadd (%p7978_p5), [#allocation7], 4294967216  ;;  %p7979_p6 = pmov %p7978_p5 }
 0x17c   : > { %p7980_p12 = pmov %p7978_p5 }
 0x17d   : > { %7059 = dma.done.wait (%p7979_p6), [#allocation10], 80  }
 0x17e   : > { %7061 = vsyncadd (%p7980_p12), [#allocation10], 4294967216  ;;  %p7981_p10 = pmov %p7978_p5 }
 0x17f   : > { %p7982_p11 = pmov %p7978_p5 }
 0x180   : > { %7063 = dma.done.wait (%p7981_p10), [#allocation13], 144  }
 0x181   : > { %7065 = vsyncadd (%p7982_p11), [#allocation13], 4294967152  ;;  %p7983_p0 = pmov %p7978_p5 }
 0x183   : > { %7067 = dma.done.wait (%p7983_p0), [#allocation16], 144   ;;  %p7984_p1 = pmov %p7983_p0 }
 0x184   : > { %p7985_p2 = pmov %p7983_p0 }
 0x185   : > { %7069 = vsyncadd (%p7984_p1), [#allocation16], 4294967152 }
 0x186   : > { %7071 = dma.done.wait (%p7985_p2), [#allocation19], 144   ;;  %p7986_p3 = pmov %p7983_p0 }
 0x187   : > { %p7987_p4 = pmov %p7983_p0 }
 0x188   : > { %7073 = vsyncadd (%p7986_p3), [#allocation19], 4294967152 }
 0x189   : > { %7075 = dma.done.wait (%p7987_p4), [#allocation22], 272   ;;  %p7988_p9 = pmov %p7983_p0 }
 0x18a   : > { %p7989_p7 = pmov %p7983_p0 }
 0x18b   : > { %7077 = vsyncadd (%p7988_p9), [#allocation22], 4294967024 }
 0x18c   : > { %7079 = dma.done.wait (%p7989_p7), [#allocation25], 1552   ;;  %p7990_p13 = pmov %p7983_p0 }
 0x18d   : > { %p7991_p8 = pmov %p7983_p0 }
 0x18e   : > { %7081 = vsyncadd (%p7990_p13), [#allocation25], 4294965744 }
 0x18f   : > { %7083 = dma.done.wait (%p7991_p8), [#allocation28], 3072   ;;  %p7992_p5 = pmov %p7983_p0 }
 0x190   : > { %p7993_p6 = pmov %p7983_p0 }
 0x191   : > { %7085 = vsyncadd (%p7992_p5), [#allocation28], 4294964224 }
 0x192   : > { %7087 = dma.done.wait (%p7993_p6), [#allocation31], 3072   ;;  %p7994_p12 = pmov %p7983_p0 }
 0x193   : > { %p7995_p10 = pmov %p7983_p0 }
 0x194   : > { %7089 = vsyncadd (%p7994_p12), [#allocation31], 4294964224 }
 0x195   : > { %7091 = dma.done.wait (%p7995_p10), [#allocation34], 3072   ;;  %p7996_p11 = pmov %p7983_p0 }
 0x197   : > { %7093 = vsyncadd (%p7996_p11), [#allocation34], 4294964224 }
 0x198   : > { %7095 = dma.done.wait (%p7983_p0), [#allocation37], 3072   ;;  %p7997_p1 = pmov %p7983_p0 }
 0x199   : > { %v7181_v0 = vmov 0.0   ;;  %vm7182_vm0 = vmmov 0   ;;  %vm1469_vm1 = vcmask 1043456   ;;  %vm1465_vm2 = vcmask 31744   ;;  %v1463_v1 = vld [vmem:[#allocation6] sm:$0xf] }
 0x19a   : > { %7097 = vsyncadd (%p7997_p1), [#allocation37], 4294964224  ;;  %5645 = vmatprep.subr.mxu1 %v7181_v0  ;;  %5647 = vmatprep.mubr.msk.f32.mxu1 %vm7182_vm0, %v7181_v0  ;;  %s5426_s15 = scalar_lea.vmem [#allocation3], %s7116_s18  ;;  %v1543_v3 = vld [vmem:[#allocation9] sm:$0xf]  ;;  %v1700_v4 = vld [vmem:[#allocation15] sm:$0xff]  ;;  %v1940_v61 = vlaneseq }
 0x19b   : > { %5655 = vmatprep.subr.mxu0 %v7181_v0  ;;  %5657 = vmatprep.mubr.msk.f32.mxu0 %vm7182_vm0, %v7181_v0  ;;  %v5428_v2 = vld [vmem:[%s5426_s15 - $0x1] sm:$0x1]  ;;  %v1544_v8 = vld [vmem:[#allocation11] sm:$0x1]  ;;  %s7998_s0 = sld [smem:[#allocation59_spill]]  ;;  %vm1626_vm3 = vcmask 64512  }
 0x19c   : > { %5646 = vmatpush3.msk.msra.mxu1 %vm1469_vm1, %v1463_v1  ;;  %v1624_v5 = vld [vmem:[#allocation12] sm:$0xff]  ;;  %v1464_v16 = vld [vmem:[#allocation8] sm:$0x1]  ;;  %v1701_v28 = vld [vmem:[#allocation17] sm:$0x1]  ;;  %s8000_s26 = sld [smem:[#allocation53_spill]] }
 0x19d   : > { %5648 = vmatmul.mubr.msk.f32.vlgmr.msra.gmra.mxu1 %vm1465_vm2, %v5428_v2  ;;  %5650 = vmatprep.subr.mxu1 %v7181_v0  ;;  %v1625_v38 = vld [vmem:[#allocation14] sm:$0x1]  ;;  %vm1787_vm4 = vcmask 523264   ;;  %v1864_v43 = vld [vmem:[#allocation21] sm:$0xff]  ;;  %v1863_v44 = vld [vmem:[#allocation20] sm:$0xff]  ;;  %p1456_p2 = scmp.lt.s32.totalorder %s7407_s22, 1 }
 0x19e   : > { %5651 = vmatpush3.msk.msra.mxu1 %vm1469_vm1, %v1543_v3  ;;  %5652 = vmatprep.mubr.msk.f32.mxu1 %vm7182_vm0, %v7181_v0  ;;  %v1865_v42 = vld [vmem:[#allocation21 + $0x8] sm:$0xff]  ;;  %v1786_v45 = vld [vmem:[#allocation18] sm:$0x1]  ;;  %vm1866_vm5 = vcmask 130048   ;;  %s8001_s10 = sld [smem:[#allocation62_spill]]  ;;  %vm2025_vm6 = vcmask 261120  }
 0x19f   : > { %5660 = vmatprep.subr.mxu1 %v7181_v0  ;;  %5656 = vmatpush3.msra.mxu0 %v1624_v5  ;;  %s1457_s2 = scalar_select %p1456_p2, %s7407_s22, 1  ;;  %2031 = vst.msk [vmem:[#allocation2 + $0x28] sm:$0xff] %vm2025_vm6, %v7181_v0  ;;  %2026 = vst.msk [vmem:[#allocation2] sm:$0xff] %vm2025_vm6, %v7181_v0  ;;  %v2140_v52 = vld [vmem:[#allocation24 + $0x18] sm:$0xff]  ;;  %v2139_v54 = vld [vmem:[#allocation24 + $0x10] sm:$0xff]  ;;  %v1941_v62 = vshrl.u32 %v1940_v61, 7 }
 0x1a0   : > { %5665 = vmatprep.subr.mxu0 %v7181_v0  ;;  %2027 = vst.msk [vmem:[#allocation2 + $0x8] sm:$0xff] %vm2025_vm6, %v7181_v0  ;;  %2028 = vst.msk [vmem:[#allocation2 + $0x10] sm:$0xff] %vm2025_vm6, %v7181_v0  ;;  %v2138_v56 = vld [vmem:[#allocation24 + $0x8] sm:$0xff]  ;;  %v2137_v58 = vld [vmem:[#allocation24] sm:$0xff]  ;;  %s8002_s9 = sld [smem:[#allocation65_spill]]  ;;  %p8011_p4 = scmp.ne.s32.totalorder %s7953_s7, 0 }
 0x1a1   : > { %5653 = vmatmul.mubr.msk.f32.vlgmr.msra.gmra.mxu1 %vm1465_vm2, %v5428_v2  ;;  %s7999_s11 = smov %s7998_s0  ;;  %v1785_v20 = vld [vmem:[%s7998_s0 + $0x38] sm:$0xff]  ;;  %s5425_s23 = sshll.u32 %s1457_s2, 4  ;;  %2029 = vst.msk [vmem:[#allocation2 + $0x18] sm:$0xff] %vm2025_vm6, %v7181_v0  ;;  %2030 = vst.msk [vmem:[#allocation2 + $0x20] sm:$0xff] %vm2025_vm6, %v7181_v0  ;;  %v2312_v60 = vld [vmem:[#allocation24 + $0x38] sm:$0xff]  ;;  %v1942_v63 = vsub.s32 0, %v1941_v62 }
 0x1a2   : > { %5662 = vmatprep.mubr.msk.f32.mxu1 %vm7182_vm0, %v7181_v0  ;;  %5661 = vmatpush3.msra.mxu1 %v1700_v4  ;;  %v1784_v21 = vld [vmem:[%s7999_s11 + $0x30] sm:$0xff]  ;;  %v1783_v22 = vld [vmem:[%s7999_s11 + $0x28] sm:$0xff]  ;;  %v1782_v23 = vld [vmem:[%s7999_s11 + $0x20] sm:$0xff]  ;;  %s1460_s28 = scalar_lea.vmem %s8000_s26, %s5425_s23  ;;  %s8003_s13 = sld [smem:[#allocation66_spill]] }
 0x1a3   : > { %5684 = vmatprep.subr.mxu1 %v7181_v0  ;;  %v1781_v24 = vld [vmem:[%s7999_s11 + $0x18] sm:$0xff]  ;;  %v1780_v25 = vld [vmem:[%s7999_s11 + $0x10] sm:$0xff]  ;;  %v1779_v26 = vld [vmem:[%s7999_s11 + $0x8] sm:$0xff]  ;;  %s8004_s8 = sld [smem:[#allocation69_spill]]  ;;  %s1453_s23 = sand.u32 1, %s7108_s16  }
 0x1a4   : > { %v1778_v27 = vld [vmem:[%s7999_s11] sm:$0xff]  ;;  %v1862_v50 = vld [vmem:[%s1460_s28 + $0x8] sm:$0xff]  ;;  %v2053_v51 = vld [vmem:[%s8001_s10 + $0x18] sm:$0xff]  ;;  %s8005_s1 = sld [smem:[#allocation67_spill]] }
 0x1a5   : > { %v1861_v48 = vld [vmem:[%s1460_s28] sm:$0xff]  ;;  %v2052_v53 = vld [vmem:[%s8001_s10 + $0x10] sm:$0xff]  ;;  %v2051_v55 = vld [vmem:[%s8001_s10 + $0x8] sm:$0xff]  ;;  %s8006_s6 = sld [smem:[#allocation72_spill]]  ;;  %s5322_s28 = sshll.u32 %s1453_s23, 4 }
 0x1a6   : > { %v2050_v57 = vld [vmem:[%s8001_s10] sm:$0xff]  ;;  %v5345_v59 = vld [vmem:[%s8001_s10 + $0x38] sm:$0xff]  ;;  %s8007_s15 = sld [smem:[#allocation70_spill]] }
 0x1a7   : > { %s8008_s0 = sld [smem:[#allocation75_spill]] }
 0x1a8   : > { %s8009_s26 = sld [smem:[#allocation73_spill]] }
 0x1a9   : > { %s8010_s2 = sld [smem:[#allocation76_spill]] }
 0x25d   : > { %v1539_v6 = vpop.f32.mrf.mxu1 }
 0x25e   : > { %v1540_v17 = vadd.f32 %v1539_v6, %v1464_v16  ;;  %v5353_v16 = vld [vmem:[%s8001_s10 + $0x58] sm:$0xff] }
 0x25f   : > { %v5649_v7 = vpop.f32.mrf.mxu1 }
 0x261   : > { %v1614_v9 = vpop.f32.mrf.mxu1 }
 0x262   : > { %v1615_v10 = vadd.f32 %v1614_v9, %v1544_v8  ;;  %v5344_v9 = vld [vmem:[%s8001_s10 + $0x30] sm:$0xff] }
 0x263   : > { %v5654_v11 = vpop.f32.mrf.mxu1 }
 0x264   : > { %v1618_v12 = vsub.f32 0.0, %v1615_v10  ;;  %v2311_v10 = vld [vmem:[#allocation24 + $0x30] sm:$0xff] }
 0x266   : > { %v1619_v13 = vmul.f32 1.442695, %v1618_v12  ;;  %v5343_v12 = vld [vmem:[%s8001_s10 + $0x28] sm:$0xff] }
 0x268   : > { %6362 = vpow2.f32 %v1619_v13  ;;  %v2310_v13 = vld [vmem:[#allocation24 + $0x28] sm:$0xff] }
 0x275   : > { %v6363_v14 = vpop.eup %6362 }
 0x276   : > { %v1621_v15 = vadd.f32 1.0, %v6363_v14  ;;  %v5342_v14 = vld [vmem:[%s8001_s10 + $0x20] sm:$0xff] }
 0x278   : > { %6364 = vrcp.f32 %v1621_v15  ;;  %v2309_v15 = vld [vmem:[#allocation24 + $0x20] sm:$0xff] }
 0x285   : > { %v6365_v18 = vpop.eup %6364 }
 0x286   : > { %v1623_v19 = vmul.f32 %v6365_v18, %v1540_v17  ;;  %v2484_v17 = vld [vmem:[#allocation24 + $0x58] sm:$0xff] }
 0x288   : > { %5658 = vmatmul.mubr.msk.f32.vlgmr.msra.gmra.mxu0 %vm1626_vm3, %v1623_v19  ;;  %5663 = vmatmul.mubr.msk.f32.vlgmr.msra.gmra.mxu1 %vm1626_vm3, %v1623_v19 }
 0x289   : > { %5681 = vmatprep.mubr.msk.f32.mxu0 %vm7182_vm0, %v7181_v0  ;;  %5688 = vmatprep.mubr.msk.f32.mxu1 %vm7182_vm0, %v7181_v0 }
 0x28a   : > { %5666 = vmatpush3.msra.mxu0 %v1785_v20  ;;  %5685 = vmatpush3.msra.mxu1 %v1865_v42  ;;  %v5352_v20 = vld [vmem:[%s8001_s10 + $0x50] sm:$0xff] }
 0x28b   : > { %5667 = vmatprep.subr.mxu0 %v7181_v0  ;;  %5686 = vmatprep.subr.mxu1 %v7181_v0 }
 0x28c   : > { %5668 = vmatpush3.msra.mxu0 %v1784_v21  ;;  %5687 = vmatpush3.msra.mxu1 %v1864_v43  ;;  %v2483_v21 = vld [vmem:[#allocation24 + $0x50] sm:$0xff]  ;;  %v5337_v43 = vld [vmem:[#allocation26] ss:$0 sm:$0xff] }
 0x28d   : > { %5669 = vmatprep.subr.mxu0 %v7181_v0  ;;  %5691 = vmatprep.subr.mxu1 %v1863_v44 }
 0x28e   : > { %5670 = vmatpush3.msra.mxu0 %v1783_v22  ;;  %v5351_v22 = vld [vmem:[%s8001_s10 + $0x48] sm:$0xff] }
 0x28f   : > { %5671 = vmatprep.subr.mxu0 %v7181_v0 }
 0x290   : > { %5672 = vmatpush3.msra.mxu0 %v1782_v23  ;;  %v2482_v23 = vld [vmem:[#allocation24 + $0x48] sm:$0xff] }
 0x291   : > { %5673 = vmatprep.subr.mxu0 %v7181_v0 }
 0x292   : > { %5674 = vmatpush3.msra.mxu0 %v1781_v24  ;;  %v5350_v24 = vld [vmem:[%s8001_s10 + $0x40] sm:$0xff] }
 0x293   : > { %5675 = vmatprep.subr.mxu0 %v7181_v0 }
 0x294   : > { %5676 = vmatpush3.msra.mxu0 %v1780_v25  ;;  %v2481_v25 = vld [vmem:[#allocation24 + $0x40] sm:$0xff] }
 0x295   : > { %5677 = vmatprep.subr.mxu0 %v7181_v0 }
 0x296   : > { %5678 = vmatpush3.msra.mxu0 %v1779_v26  ;;  %v2577_v26 = vld [vmem:[%s8002_s9 + $0x18] sm:$0xff] }
 0x297   : > { %5679 = vmatprep.subr.mxu0 %v7181_v0 }
 0x298   : > { %5680 = vmatpush3.msra.mxu0 %v1778_v27 }
 0x299   : > { %5707 = vmatprep.subr.mxu0 %v2140_v52 }
 0x348   : > { %v1696_v29 = vpop.f32.mrf.mxu0  ;;  %v1768_v30 = vpop.f32.mrf.mxu1 }
 0x349   : > { %v1769_v31 = vadd.f32 %v1768_v30, %v1701_v28  ;;  %v1697_v39 = vadd.f32 %v1696_v29, %v1625_v38  ;;  %v2576_v28 = vld [vmem:[%s8002_s9 + $0x10] sm:$0xff]  ;;  %v2575_v29 = vld [vmem:[%s8002_s9 + $0x8] sm:$0xff]  ;;  %v2574_v30 = vld [vmem:[%s8002_s9] sm:$0xff] }
 0x34a   : > { %v5659_v32 = vpop.f32.mrf.mxu0  ;;  %v5664_v33 = vpop.f32.mrf.mxu1  ;;  %v2767_v38 = vld [vmem:[#allocation29] sm:$0xff] }
 0x34b   : > { %v1772_v34 = vsub.f32 0.0, %v1769_v31  ;;  %v2683_v31 = vld [vmem:[#allocation27 + $0x18] sm:$0xff]  ;;  %v2682_v33 = vld [vmem:[#allocation27 + $0x10] sm:$0xff] }
 0x34c   : > { %v2770_v32 = vld [vmem:[#allocation29 + $0x18] sm:$0xff] }
 0x34d   : > { %v1773_v35 = vmul.f32 1.442695, %v1772_v34  ;;  %v2769_v34 = vld [vmem:[#allocation29 + $0x10] sm:$0xff] }
 0x34f   : > { %6366 = vpow2.f32 %v1773_v35  ;;  %v2681_v35 = vld [vmem:[#allocation27 + $0x8] sm:$0xff] }
 0x35c   : > { %v6367_v36 = vpop.eup %6366 }
 0x35d   : > { %v1775_v37 = vadd.f32 1.0, %v6367_v36  ;;  %v2768_v36 = vld [vmem:[#allocation29 + $0x8] sm:$0xff] }
 0x35f   : > { %6368 = vrcp.f32 %v1775_v37  ;;  %v2680_v37 = vld [vmem:[#allocation27] sm:$0xff] }
 0x36c   : > { %v6369_v40 = vpop.eup %6368 }
 0x36d   : > { %v1777_v41 = vmul.f32 %v6369_v40, %v1697_v39  ;;  %v2854_v39 = vld [vmem:[#allocation27 + $0x38] sm:$0xff] }
 0x36e   : > { %v2942_v40 = vld [vmem:[#allocation29 + $0x38] sm:$0xff] }
 0x36f   : > { %5682 = vmatmul.mubr.msk.f32.vlgmr.msra.gmra.mxu0 %vm1787_vm4, %v1777_v41 }
 0x370   : > { %5708 = vmatpush3.msra.mxu0 %v2140_v52 }
 0x371   : > { %5709 = vmatprep.subr.mxu0 %v2139_v54 }
 0x372   : > { %5710 = vmatpush3.msra.mxu0 %v2139_v54 }
 0x373   : > { %5711 = vmatprep.subr.mxu0 %v2138_v56 }
 0x374   : > { %5712 = vmatpush3.msra.mxu0 %v2138_v56 }
 0x375   : > { %5713 = vmatprep.subr.mxu0 %v2137_v58 }
 0x376   : > { %5714 = vmatpush3.msra.mxu0 %v2137_v58 }
 0x377   : > { %5729 = vmatprep.subr.mxu0 %v2312_v60 }
 0x42f   : > { %v1857_v46 = vpop.f32.mrf.mxu0 }
 0x430   : > { %v1858_v47 = vadd.f32 %v1857_v46, %v1786_v45 }
 0x431   : > { %v5683_v49 = vpop.f32.mrf.mxu0 }
 0x432   : > { %5689 = vmatmul.mubr.msk.f32.vlgmr.msra.gmra.mxu1 %vm1866_vm5, %v1858_v47 }
 0x433   : > { %5692 = vmatpush3.msra.mxu1 %v1863_v44  ;;  %5693 = vmatprep.mubr.msk.f32.mxu1 %vm1626_vm3, %v1861_v48 }
 0x434   : > { %5696 = vmatprep.subr.mxu1 %v2053_v51 }
 0x436   : > { %5694 = vmatmul.mubr.msk.f32.vlgmr.msra.gmra.mxu1 %vm1626_vm3, %v1862_v50 }
 0x437   : > { %5697 = vmatpush3.msra.mxu1 %v2053_v51 }
 0x438   : > { %5698 = vmatprep.subr.mxu1 %v2052_v53 }
 0x439   : > { %5699 = vmatpush3.msra.mxu1 %v2052_v53 }
 0x43a   : > { %5700 = vmatprep.subr.mxu1 %v2051_v55 }
 0x43b   : > { %5701 = vmatpush3.msra.mxu1 %v2051_v55 }
 0x43c   : > { %5702 = vmatprep.subr.mxu1 %v2050_v57 }
 0x43d   : > { %5703 = vmatpush3.msra.mxu1 %v2050_v57 }
 0x43e   : > { %5718 = vmatprep.subr.mxu1 %v5345_v59 }
 0x4f2   : > { %v1936_v0 = vpop.f32.mrf.mxu1 }
 0x4f3   : > { %v1943_v2 = vrot.slane %v1936_v0, %v1942_v63 }
 0x4f4   : > { %v5690_v1 = vpop.f32.mrf.mxu1 }
 0x4f6   : > { %v5695_v3 = vpop.f32.mrf.mxu1 }
 0x4f7   : > { %v2022_v4 = vadd.f32 %v5695_v3, %v1943_v2  ;;  %v5336_v3 = vld [vmem:[#allocation23] ss:$0 sm:$0xff] }
 0x4f8   : > { %v2016_v5 = vpop.f32.mrf.mxu1 }
 0x4f9   : > { %2033 = vst.msk [vmem:[#allocation2 + $0x28] sm:$0xff] %vm2025_vm6, %v2022_v4  ;;  %v2017_v6 = vadd.f32 %v2016_v5, %v1943_v2 }
 0x4fb   : > { %2032 = vst.msk [vmem:[#allocation2 + $0x20] sm:$0xff] %vm2025_vm6, %v2017_v6 }
 0x500   : > { %v2391_v27 = vld [vmem:[#allocation2 + $0x28] sm:$0xff] }
 0x502   : > { %v2048_v7 = vld [vmem:[#allocation2 + $0x1e] sm:$0xff]  ;;  %v2049_v8 = vld [vmem:[#allocation2 + $0x26] sm:$0xff] }
 0x503   : > { %5704 = vmatprep.mubr.msk.f32.mxu1 %vm2025_vm6, %v2048_v7  ;;  %5715 = vmatprep.mubr.msk.f32.mxu0 %vm2025_vm6, %v2048_v7  ;;  %v2218_v11 = vld [vmem:[#allocation2 + $0x1f] sm:$0xff]  ;;  %v2219_v18 = vld [vmem:[#allocation2 + $0x27] sm:$0xff] }
 0x504   : > { %5705 = vmatmul.mubr.msk.f32.vlgmr.msra.gmra.mxu1 %vm2025_vm6, %v2049_v8  ;;  %5716 = vmatmul.mubr.msk.f32.vlgmr.msra.gmra.mxu0 %vm2025_vm6, %v2049_v8  ;;  %v2390_v19 = vld [vmem:[#allocation2 + $0x20] sm:$0xff] }
 0x505   : > { %5719 = vmatpush3.msra.mxu1 %v5345_v59  ;;  %5730 = vmatpush3.msra.mxu0 %v2312_v60 }
 0x506   : > { %5720 = vmatprep.subr.mxu1 %v5344_v9  ;;  %5726 = vmatprep.mubr.msk.f32.mxu1 %vm2025_vm6, %v2218_v11 }
 0x507   : > { %5731 = vmatprep.subr.mxu0 %v2311_v10  ;;  %5737 = vmatprep.mubr.msk.f32.mxu0 %vm2025_vm6, %v2218_v11 }
 0x508   : > { %5721 = vmatpush3.msra.mxu1 %v5344_v9  ;;  %5732 = vmatpush3.msra.mxu0 %v2311_v10  ;;  %v5358_v9 = vld [vmem:[%s8003_s13] ss:$0 sm:$0xff]  ;;  %s1455_s13 = scalar_lea.vmem [#allocation39], %s5322_s28 }
 0x509   : > { %5722 = vmatprep.subr.mxu1 %v5343_v12  ;;  %5733 = vmatprep.subr.mxu0 %v2310_v13 }
 0x50a   : > { %5723 = vmatpush3.msra.mxu1 %v5343_v12  ;;  %5734 = vmatpush3.msra.mxu0 %v2310_v13 }
 0x50b   : > { %5724 = vmatprep.subr.mxu1 %v5342_v14  ;;  %5735 = vmatprep.subr.mxu0 %v2309_v15 }
 0x50c   : > { %5725 = vmatpush3.msra.mxu1 %v5342_v14  ;;  %5736 = vmatpush3.msra.mxu0 %v2309_v15 }
 0x50d   : > { %5727 = vmatmul.mubr.msk.f32.vlgmr.msra.gmra.mxu1 %vm2025_vm6, %v2219_v18  ;;  %5738 = vmatmul.mubr.msk.f32.vlgmr.msra.gmra.mxu0 %vm2025_vm6, %v2219_v18 }
 0x50e   : > { %5740 = vmatprep.subr.mxu1 %v5353_v16  ;;  %5751 = vmatprep.subr.mxu0 %v2484_v17 }
 0x50f   : > { %5741 = vmatpush3.msra.mxu1 %v5353_v16  ;;  %5748 = vmatprep.mubr.msk.f32.mxu1 %vm2025_vm6, %v2390_v19 }
 0x510   : > { %5752 = vmatpush3.msra.mxu0 %v2484_v17  ;;  %5759 = vmatprep.mubr.msk.f32.mxu0 %vm2025_vm6, %v2390_v19 }
 0x511   : > { %5742 = vmatprep.subr.mxu1 %v5352_v20  ;;  %5753 = vmatprep.subr.mxu0 %v2483_v21 }
 0x512   : > { %5743 = vmatpush3.msra.mxu1 %v5352_v20  ;;  %5754 = vmatpush3.msra.mxu0 %v2483_v21 }
 0x513   : > { %5744 = vmatprep.subr.mxu1 %v5351_v22  ;;  %5755 = vmatprep.subr.mxu0 %v2482_v23 }
 0x514   : > { %5745 = vmatpush3.msra.mxu1 %v5351_v22  ;;  %5756 = vmatpush3.msra.mxu0 %v2482_v23 }
 0x515   : > { %5746 = vmatprep.subr.mxu1 %v5350_v24  ;;  %5757 = vmatprep.subr.mxu0 %v2481_v25 }
 0x516   : > { %5747 = vmatpush3.msra.mxu1 %v5350_v24  ;;  %5758 = vmatpush3.msra.mxu0 %v2481_v25  ;;  %v2853_v24 = vld [vmem:[#allocation27 + $0x30] sm:$0xff] }
 0x517   : > { %5749 = vmatmul.mubr.msk.f32.vlgmr.msra.gmra.mxu1 %vm2025_vm6, %v2391_v27  ;;  %5760 = vmatmul.mubr.msk.f32.vlgmr.msra.gmra.mxu0 %vm2025_vm6, %v2391_v27  ;;  %v2941_v25 = vld [vmem:[#allocation29 + $0x30] sm:$0xff] }
 0x518   : > { %5762 = vmatprep.subr.mxu1 %v2577_v26  ;;  %5770 = vmatprep.mubr.msk.f32.mxu1 %vm2025_vm6, %v2390_v19 }
 0x519   : > { %5763 = vmatpush3.msra.mxu1 %v2577_v26  ;;  %5773 = vmatprep.subr.mxu0 %v2683_v31 }
 0x51a   : > { %5764 = vmatprep.subr.mxu1 %v2576_v28  ;;  %5774 = vmatpush3.msra.mxu0 %v2683_v31  ;;  %v3026_v31 = vld [vmem:[#allocation27 + $0x58] sm:$0xff] }
 0x51b   : > { %5765 = vmatpush3.msra.mxu1 %v2576_v28  ;;  %5775 = vmatprep.subr.mxu0 %v2682_v33  ;;  %v2940_v28 = vld [vmem:[#allocation29 + $0x28] sm:$0xff] }
 0x51c   : > { %5766 = vmatprep.subr.mxu1 %v2575_v29  ;;  %5776 = vmatpush3.msra.mxu0 %v2682_v33 }
 0x51d   : > { %5767 = vmatpush3.msra.mxu1 %v2575_v29  ;;  %5777 = vmatprep.subr.mxu0 %v2681_v35  ;;  %v2851_v29 = vld [vmem:[#allocation27 + $0x20] sm:$0xff] }
 0x51e   : > { %5768 = vmatprep.subr.mxu1 %v2574_v30  ;;  %5778 = vmatpush3.msra.mxu0 %v2681_v35  ;;  %v3025_v35 = vld [vmem:[#allocation27 + $0x50] sm:$0xff] }
 0x51f   : > { %5769 = vmatpush3.msra.mxu1 %v2574_v30  ;;  %5779 = vmatprep.subr.mxu0 %v2680_v37  ;;  %v2939_v30 = vld [vmem:[#allocation29 + $0x20] sm:$0xff] }
 0x520   : > { %5771 = vmatmul.mubr.msk.f32.vlgmr.msra.gmra.mxu1 %vm2025_vm6, %v2391_v27  ;;  %5784 = vmatprep.subr.mxu1 %v2770_v32  ;;  %v2852_v27 = vld [vmem:[#allocation27 + $0x28] sm:$0xff] }
 0x521   : > { %5785 = vmatpush3.msra.mxu1 %v2770_v32  ;;  %5780 = vmatpush3.msra.mxu0 %v2680_v37  ;;  %v3114_v32 = vld [vmem:[#allocation29 + $0x58] sm:$0xff]  ;;  %v3024_v37 = vld [vmem:[#allocation27 + $0x48] sm:$0xff] }
 0x522   : > { %5786 = vmatprep.subr.mxu1 %v2769_v34  ;;  %5795 = vmatprep.subr.mxu0 %v2854_v39 }
 0x523   : > { %5787 = vmatpush3.msra.mxu1 %v2769_v34 }
 0x524   : > { %5788 = vmatprep.subr.mxu1 %v2768_v36 }
 0x525   : > { %5789 = vmatpush3.msra.mxu1 %v2768_v36  ;;  %v3113_v36 = vld [vmem:[#allocation29 + $0x50] sm:$0xff] }
 0x526   : > { %5790 = vmatprep.subr.mxu1 %v2767_v38 }
 0x527   : > { %5791 = vmatpush3.msra.mxu1 %v2767_v38  ;;  %v3112_v38 = vld [vmem:[#allocation29 + $0x48] sm:$0xff] }
 0x528   : > { %5806 = vmatprep.subr.mxu1 %v2942_v40 }
 0x5c4   : > { %v5717_v41 = vpop.f32.mrf.mxu0  ;;  %v5706_v58 = vpop.f32.mrf.mxu1 }
 0x5c5   : > { %v2217_v45 = vadd.f32 %v5717_v41, %v5337_v43  ;;  %v2136_v5 = vadd.f32 %v5706_v58, %v5336_v3 }
 0x5c6   : > { %v2207_v42 = vpop.f32.mrf.mxu0  ;;  %v2126_v59 = vpop.f32.mrf.mxu1 }
 0x5c7   : > { %v2216_v47 = vadd.f32 %v5337_v43, %v2207_v42  ;;  %v2135_v7 = vadd.f32 %v5336_v3, %v2126_v59  ;;  %v3227_v42 = vld [vmem:[#allocation30 + $0x18] sm:$0xff] }
 0x5c8   : > { %v3314_v43 = vld [vmem:[#allocation32 + $0x18] sm:$0xff] }
 0x5cd   : > { %v5739_v44 = vpop.f32.mrf.mxu0  ;;  %v5728_v61 = vpop.f32.mrf.mxu1 }
 0x5ce   : > { %v2389_v48 = vadd.f32 %v5739_v44, %v2217_v45  ;;  %v2307_v8 = vadd.f32 %v5728_v61, %v2136_v5  ;;  %v3226_v44 = vld [vmem:[#allocation30 + $0x10] sm:$0xff] }
 0x5cf   : > { %v2379_v46 = vpop.f32.mrf.mxu0  ;;  %v2297_v1 = vpop.f32.mrf.mxu1  ;;  %v3313_v45 = vld [vmem:[#allocation32 + $0x10] sm:$0xff] }
 0x5d0   : > { %v2388_v50 = vadd.f32 %v2379_v46, %v2216_v47  ;;  %v2306_v10 = vadd.f32 %v2297_v1, %v2135_v7  ;;  %v3225_v46 = vld [vmem:[#allocation30 + $0x8] sm:$0xff] }
 0x5d1   : > { %v3312_v47 = vld [vmem:[#allocation32 + $0x8] sm:$0xff] }
 0x5d7   : > { %v5761_v49 = vpop.f32.mrf.mxu0  ;;  %v5750_v2 = vpop.f32.mrf.mxu1 }
 0x5d8   : > { %v2561_v51 = vadd.f32 %v5761_v49, %v2389_v48  ;;  %v2479_v11 = vadd.f32 %v5750_v2, %v2307_v8  ;;  %v3224_v48 = vld [vmem:[#allocation30] sm:$0xff] }
 0x5d9   : > { %v2551_v52 = vpop.f32.mrf.mxu0  ;;  %v2469_v4 = vpop.f32.mrf.mxu1  ;;  %v3311_v49 = vld [vmem:[#allocation32] sm:$0xff] }
 0x5da   : > { %v2563_v53 = vsub.f32 0.0, %v2561_v51  ;;  %v2560_v54 = vadd.f32 %v2551_v52, %v2388_v50  ;;  %v2478_v14 = vadd.f32 %v2469_v4, %v2306_v10  ;;  %v7764_v50 = vld [vmem:[#allocation2 + $0x18] sm:$0xff]  ;;  %v3398_v51 = vld [vmem:[#allocation30 + $0x38] sm:$0xff] }
 0x5db   : > { %v3486_v52 = vld [vmem:[#allocation32 + $0x38] sm:$0xff] }
 0x5dc   : > { %v2566_v55 = vmul.f32 1.442695, %v2563_v53  ;;  %v2562_v56 = vsub.f32 0.0, %v2560_v54 }
 0x5de   : > { %6370 = vpow2.f32 %v2566_v55  ;;  %v2564_v57 = vmul.f32 1.442695, %v2562_v56  ;;  %v5362_v55 = vld [vmem:[%s8004_s8] ss:$0 sm:$0xff]  ;;  %s4950_s8 = sshll.u32 %s1455_s13, 4  ;;  %s7867_s8 = int_to_ptr.vmem [resolvable:$true] %s4950_s8 }
 0x5e0   : > { %6372 = vpow2.f32 %v2564_v57  ;;  %v5772_v6 = vpop.f32.mrf.mxu1 }
 0x5e1   : > { %v2657_v16 = vadd.f32 %v5772_v6, %v5358_v9 }
 0x5e2   : > { %v2651_v13 = vpop.f32.mrf.mxu1 }
 0x5e3   : > { %v2652_v20 = vadd.f32 %v5358_v9, %v2651_v13  ;;  %v5361_v13 = vld [vmem:[%s8005_s1] ss:$0 sm:$0xff]  ;;  %s5429_s1 = sshll.u32 %s7407_s22, 8  ;;  %s7183_s22 = smov [#allocation39]  }
 0x5eb   : > { %v6371_v60 = vpop.eup %6370 }
 0x5ec   : > { %v2569_v62 = vadd.f32 1.0, %v6371_v60 }
 0x5ed   : > { %v6373_v63 = vpop.eup %6372 }
 0x5ee   : > { %6374 = vrcp.f32 %v2569_v62  ;;  %v2568_v0 = vadd.f32 1.0, %v6373_v63 }
 0x5f0   : > { %6376 = vrcp.f32 %v2568_v0 }
 0x5fb   : > { %v6375_v12 = vpop.eup %6374 }
 0x5fc   : > { %v2573_v15 = vmul.f32 %v6375_v12, %v2479_v11 }
 0x5fd   : > { %v6377_v17 = vpop.eup %6376 }
 0x5fe   : > { %v2661_v18 = vadd.f32 %v2657_v16, %v2573_v15  ;;  %v2572_v19 = vmul.f32 %v6377_v17, %v2478_v14 }
 0x600   : > { %2663 = vst.msk [vmem:[#allocation2 + $0x28] sm:$0xff] %vm2025_vm6, %v2661_v18  ;;  %v2660_v21 = vadd.f32 %v2652_v20, %v2572_v19 }
 0x602   : > { %2662 = vst.msk [vmem:[#allocation2 + $0x20] sm:$0xff] %vm2025_vm6, %v2660_v21 }
 0x607   : > { %v7758_v41 = vld [vmem:[#allocation2 + $0x28] sm:$0xff] }
 0x609   : > { %v2678_v22 = vld [vmem:[#allocation2 + $0x1c] sm:$0xff]  ;;  %v2679_v23 = vld [vmem:[#allocation2 + $0x24] sm:$0xff] }
 0x60a   : > { %5781 = vmatprep.mubr.msk.f32.mxu0 %vm2025_vm6, %v2678_v22  ;;  %5792 = vmatprep.mubr.msk.f32.mxu1 %vm2025_vm6, %v2678_v22  ;;  %v2848_v26 = vld [vmem:[#allocation2 + $0x1e] sm:$0xff]  ;;  %v2849_v33 = vld [vmem:[#allocation2 + $0x26] sm:$0xff] }
 0x60b   : > { %5782 = vmatmul.mubr.msk.f32.vlgmr.msra.gmra.mxu0 %vm2025_vm6, %v2679_v23  ;;  %5793 = vmatmul.mubr.msk.f32.vlgmr.msra.gmra.mxu1 %vm2025_vm6, %v2679_v23  ;;  %v7752_v34 = vld [vmem:[#allocation2 + $0x20] sm:$0xff] }
 0x60c   : > { %5796 = vmatpush3.msra.mxu0 %v2854_v39  ;;  %5807 = vmatpush3.msra.mxu1 %v2942_v40  ;;  %v3023_v39 = vld [vmem:[#allocation27 + $0x40] sm:$0xff] }
 0x60d   : > { %5797 = vmatprep.subr.mxu0 %v2853_v24  ;;  %5803 = vmatprep.mubr.msk.f32.mxu0 %vm2025_vm6, %v2848_v26  ;;  %v3111_v40 = vld [vmem:[#allocation29 + $0x40] sm:$0xff] }
 0x60e   : > { %5808 = vmatprep.subr.mxu1 %v2941_v25  ;;  %5814 = vmatprep.mubr.msk.f32.mxu1 %vm2025_vm6, %v2848_v26 }
 0x60f   : > { %5798 = vmatpush3.msra.mxu0 %v2853_v24  ;;  %5809 = vmatpush3.msra.mxu1 %v2941_v25 }
 0x610   : > { %5799 = vmatprep.subr.mxu0 %v2852_v27  ;;  %5810 = vmatprep.subr.mxu1 %v2940_v28 }
 0x611   : > { %5800 = vmatpush3.msra.mxu0 %v2852_v27  ;;  %5811 = vmatpush3.msra.mxu1 %v2940_v28 }
 0x612   : > { %5801 = vmatprep.subr.mxu0 %v2851_v29  ;;  %5812 = vmatprep.subr.mxu1 %v2939_v30 }
 0x613   : > { %5802 = vmatpush3.msra.mxu0 %v2851_v29  ;;  %5813 = vmatpush3.msra.mxu1 %v2939_v30  ;;  %v3397_v30 = vld [vmem:[#allocation30 + $0x30] sm:$0xff] }
 0x614   : > { %5804 = vmatmul.mubr.msk.f32.vlgmr.msra.gmra.mxu0 %vm2025_vm6, %v2849_v33  ;;  %5815 = vmatmul.mubr.msk.f32.vlgmr.msra.gmra.mxu1 %vm2025_vm6, %v2849_v33  ;;  %v3396_v33 = vld [vmem:[#allocation30 + $0x28] sm:$0xff] }
 0x615   : > { %5817 = vmatprep.subr.mxu0 %v3026_v31  ;;  %5828 = vmatprep.subr.mxu1 %v3114_v32 }
 0x616   : > { %5818 = vmatpush3.msra.mxu0 %v3026_v31  ;;  %5825 = vmatprep.mubr.msk.f32.mxu0 %vm2025_vm6, %v7752_v34 }
 0x617   : > { %5829 = vmatpush3.msra.mxu1 %v3114_v32  ;;  %5836 = vmatprep.mubr.msk.f32.mxu1 %vm2025_vm6, %v7752_v34  ;;  %v3485_v32 = vld [vmem:[#allocation32 + $0x30] sm:$0xff] }
 0x618   : > { %5819 = vmatprep.subr.mxu0 %v3025_v35  ;;  %5830 = vmatprep.subr.mxu1 %v3113_v36 }
 0x619   : > { %5820 = vmatpush3.msra.mxu0 %v3025_v35  ;;  %5831 = vmatpush3.msra.mxu1 %v3113_v36  ;;  %v3395_v35 = vld [vmem:[#allocation30 + $0x20] sm:$0xff] }
 0x61a   : > { %5821 = vmatprep.subr.mxu0 %v3024_v37  ;;  %5832 = vmatprep.subr.mxu1 %v3112_v38  ;;  %v3483_v36 = vld [vmem:[#allocation32 + $0x20] sm:$0xff] }
 0x61b   : > { %5822 = vmatpush3.msra.mxu0 %v3024_v37  ;;  %5833 = vmatpush3.msra.mxu1 %v3112_v38  ;;  %v3570_v37 = vld [vmem:[#allocation30 + $0x58] sm:$0xff] }
 0x61c   : > { %5823 = vmatprep.subr.mxu0 %v3023_v39  ;;  %5834 = vmatprep.subr.mxu1 %v3111_v40  ;;  %v3658_v38 = vld [vmem:[#allocation32 + $0x58] sm:$0xff] }
 0x61d   : > { %5824 = vmatpush3.msra.mxu0 %v3023_v39  ;;  %5835 = vmatpush3.msra.mxu1 %v3111_v40  ;;  %v3569_v40 = vld [vmem:[#allocation30 + $0x50] sm:$0xff] }
 0x61e   : > { %5826 = vmatmul.mubr.msk.f32.vlgmr.msra.gmra.mxu0 %vm2025_vm6, %v7758_v41  ;;  %5837 = vmatmul.mubr.msk.f32.vlgmr.msra.gmra.mxu1 %vm2025_vm6, %v7758_v41 }
 0x61f   : > { %5839 = vmatprep.subr.mxu0 %v3227_v42  ;;  %5850 = vmatprep.subr.mxu1 %v3314_v43 }
 0x620   : > { %5840 = vmatpush3.msra.mxu0 %v3227_v42  ;;  %5851 = vmatpush3.msra.mxu1 %v3314_v43  ;;  %v3568_v42 = vld [vmem:[#allocation30 + $0x48] sm:$0xff] }
 0x621   : > { %5841 = vmatprep.subr.mxu0 %v3226_v44  ;;  %5852 = vmatprep.subr.mxu1 %v3313_v45  ;;  %v3656_v43 = vld [vmem:[#allocation32 + $0x48] sm:$0xff] }
 0x622   : > { %5842 = vmatpush3.msra.mxu0 %v3226_v44  ;;  %5853 = vmatpush3.msra.mxu1 %v3313_v45  ;;  %v3567_v44 = vld [vmem:[#allocation30 + $0x40] sm:$0xff] }
 0x623   : > { %5843 = vmatprep.subr.mxu0 %v3225_v46  ;;  %5854 = vmatprep.subr.mxu1 %v3312_v47  ;;  %v3655_v45 = vld [vmem:[#allocation32 + $0x40] sm:$0xff] }
 0x624   : > { %5844 = vmatpush3.msra.mxu0 %v3225_v46  ;;  %5855 = vmatpush3.msra.mxu1 %v3312_v47  ;;  %v3858_v47 = vld [vmem:[#allocation35 + $0x18] sm:$0xff] }
 0x625   : > { %5845 = vmatprep.subr.mxu0 %v3224_v48  ;;  %5856 = vmatprep.subr.mxu1 %v3311_v49 }
 0x626   : > { %5846 = vmatpush3.msra.mxu0 %v3224_v48  ;;  %5857 = vmatpush3.msra.mxu1 %v3311_v49  ;;  %v3771_v48 = vld [vmem:[#allocation33 + $0x18] sm:$0xff]  ;;  %v3857_v49 = vld [vmem:[#allocation35 + $0x10] sm:$0xff] }
 0x627   : > { %5847 = vmatprep.mubr.msk.f32.mxu0 %vm2025_vm6, %v7764_v50  ;;  %5858 = vmatprep.mubr.msk.f32.mxu1 %vm2025_vm6, %v7764_v50 }
 0x628   : > { %5861 = vmatprep.subr.mxu0 %v3398_v51  ;;  %5872 = vmatprep.subr.mxu1 %v3486_v52 }
 0x6cb   : > { %v5794_v53 = vpop.f32.mrf.mxu1  ;;  %v5783_v6 = vpop.f32.mrf.mxu0 }
 0x6cc   : > { %v2847_v57 = vadd.f32 %v5794_v53, %v5362_v55  ;;  %v2766_v16 = vadd.f32 %v5783_v6, %v5361_v13  ;;  %v3769_v53 = vld [vmem:[#allocation33 + $0x8] sm:$0xff] }
 0x6cd   : > { %v2837_v54 = vpop.f32.mrf.mxu1  ;;  %v2756_v10 = vpop.f32.mrf.mxu0 }
 0x6ce   : > { %v2846_v59 = vadd.f32 %v5362_v55, %v2837_v54  ;;  %v2765_v17 = vadd.f32 %v5361_v13, %v2756_v10  ;;  %v3855_v54 = vld [vmem:[#allocation35] sm:$0xff] }
 0x6cf   : > { %v3768_v55 = vld [vmem:[#allocation33] sm:$0xff] }
 0x6d4   : > { %v5816_v56 = vpop.f32.mrf.mxu1  ;;  %v5805_v12 = vpop.f32.mrf.mxu0 }
 0x6d5   : > { %v3019_v60 = vadd.f32 %v5816_v56, %v2847_v57  ;;  %v2937_v18 = vadd.f32 %v5805_v12, %v2766_v16  ;;  %v7796_v56 = vld [vmem:[#allocation2 + $0x10] sm:$0xff]  ;;  %v3942_v57 = vld [vmem:[#allocation33 + $0x38] sm:$0xff] }
 0x6d6   : > { %v3009_v58 = vpop.f32.mrf.mxu1  ;;  %v2927_v14 = vpop.f32.mrf.mxu0 }
 0x6d7   : > { %v3018_v62 = vadd.f32 %v3009_v58, %v2846_v59  ;;  %v2936_v20 = vadd.f32 %v2927_v14, %v2765_v17  ;;  %v4030_v58 = vld [vmem:[#allocation35 + $0x38] sm:$0xff]  ;;  %v3941_v59 = vld [vmem:[#allocation33 + $0x30] sm:$0xff] }
 0x6de   : > { %v5838_v61 = vpop.f32.mrf.mxu1  ;;  %v5827_v15 = vpop.f32.mrf.mxu0 }
 0x6df   : > { %v3191_v63 = vadd.f32 %v5838_v61, %v3019_v60  ;;  %v3109_v21 = vadd.f32 %v5827_v15, %v2937_v18  ;;  %v4029_v60 = vld [vmem:[#allocation35 + $0x30] sm:$0xff]  ;;  %v4028_v61 = vld [vmem:[#allocation35 + $0x28] sm:$0xff] }
 0x6e0   : > { %v3181_v0 = vpop.f32.mrf.mxu1  ;;  %v3099_v19 = vpop.f32.mrf.mxu0 }
 0x6e1   : > { %v3193_v1 = vsub.f32 0.0, %v3191_v63  ;;  %v3190_v2 = vadd.f32 %v3181_v0, %v3018_v62  ;;  %v3108_v24 = vadd.f32 %v3099_v19, %v2936_v20  ;;  %v3940_v62 = vld [vmem:[#allocation33 + $0x28] sm:$0xff]  ;;  %v4027_v63 = vld [vmem:[#allocation35 + $0x20] sm:$0xff] }
 0x6e2   : > { %v3939_v0 = vld [vmem:[#allocation33 + $0x20] sm:$0xff] }
 0x6e3   : > { %v3196_v3 = vmul.f32 1.442695, %v3193_v1  ;;  %v3192_v4 = vsub.f32 0.0, %v3190_v2  ;;  %v4114_v1 = vld [vmem:[#allocation33 + $0x58] sm:$0xff] }
 0x6e4   : > { %v4202_v2 = vld [vmem:[#allocation35 + $0x58] sm:$0xff] }
 0x6e5   : > { %6378 = vpow2.f32 %v3196_v3  ;;  %v3194_v5 = vmul.f32 1.442695, %v3192_v4 }
 0x6e7   : > { %6380 = vpow2.f32 %v3194_v5  ;;  %v5376_v5 = vld [vmem:[%s8006_s6] ss:$0 sm:$0xff]  ;;  %s7870_s6 = scalar_lea.hbm %s7384_s12, %s5429_s1 }
 0x6f2   : > { %v6379_v7 = vpop.eup %6378 }
 0x6f3   : > { %v3199_v8 = vadd.f32 1.0, %v6379_v7 }
 0x6f4   : > { %v6381_v9 = vpop.eup %6380 }
 0x6f5   : > { %6382 = vrcp.f32 %v3199_v8  ;;  %v3198_v11 = vadd.f32 1.0, %v6381_v9 }
 0x6f7   : > { %6384 = vrcp.f32 %v3198_v11 }
 0x702   : > { %v6383_v22 = vpop.eup %6382 }
 0x703   : > { %v3203_v23 = vmul.f32 %v6383_v22, %v3109_v21 }
 0x704   : > { %v6385_v25 = vpop.eup %6384 }
 0x705   : > { %v3205_v26 = vadd.f32 %v3203_v23, %v7758_v41  ;;  %v3202_v27 = vmul.f32 %v6385_v25, %v3108_v24  ;;  %v3657_v41 = vld [vmem:[#allocation32 + $0x50] sm:$0xff] }
 0x707   : > { %3207 = vst.msk [vmem:[#allocation2 + $0x28] sm:$0xff] %vm2025_vm6, %v3205_v26  ;;  %v3204_v28 = vadd.f32 %v3202_v27, %v7752_v34  ;;  %v3484_v34 = vld [vmem:[#allocation32 + $0x28] sm:$0xff]  ;;  %v5375_v27 = vld [vmem:[%s8007_s15] ss:$0 sm:$0xff]  ;;  %s7872_s15 = scalar_lea.sflag [#allocation5], %s1453_s23 }
 0x709   : > { %3206 = vst.msk [vmem:[#allocation2 + $0x20] sm:$0xff] %vm2025_vm6, %v3204_v28 }
 0x70e   : > { %v7790_v46 = vld [vmem:[#allocation2 + $0x28] sm:$0xff] }
 0x710   : > { %v7776_v29 = vld [vmem:[#allocation2 + $0x20] sm:$0xff] }
 0x711   : > { %v3392_v31 = vld [vmem:[#allocation2 + $0x1c] sm:$0xff]  ;;  %5848 = vmatmul.mubr.msk.f32.vlgmr.msra.gmra.mxu0 %vm2025_vm6, %v7776_v29  ;;  %5859 = vmatmul.mubr.msk.f32.vlgmr.msra.gmra.mxu1 %vm2025_vm6, %v7776_v29  ;;  %v3393_v39 = vld [vmem:[#allocation2 + $0x24] sm:$0xff] }
 0x712   : > { %5862 = vmatpush3.msra.mxu0 %v3398_v51  ;;  %5873 = vmatpush3.msra.mxu1 %v3486_v52  ;;  %v3770_v51 = vld [vmem:[#allocation33 + $0x10] sm:$0xff]  ;;  %v3856_v52 = vld [vmem:[#allocation35 + $0x8] sm:$0xff] }
 0x713   : > { %5863 = vmatprep.subr.mxu0 %v3397_v30  ;;  %5869 = vmatprep.mubr.msk.f32.mxu0 %vm2025_vm6, %v3392_v31 }
 0x714   : > { %5874 = vmatprep.subr.mxu1 %v3485_v32  ;;  %5880 = vmatprep.mubr.msk.f32.mxu1 %vm2025_vm6, %v3392_v31 }
 0x715   : > { %5864 = vmatpush3.msra.mxu0 %v3397_v30  ;;  %5875 = vmatpush3.msra.mxu1 %v3485_v32 }
 0x716   : > { %5865 = vmatprep.subr.mxu0 %v3396_v33  ;;  %5876 = vmatprep.subr.mxu1 %v3484_v34 }
 0x717   : > { %5866 = vmatpush3.msra.mxu0 %v3396_v33  ;;  %5877 = vmatpush3.msra.mxu1 %v3484_v34 }
 0x718   : > { %5867 = vmatprep.subr.mxu0 %v3395_v35  ;;  %5878 = vmatprep.subr.mxu1 %v3483_v36 }
 0x719   : > { %5868 = vmatpush3.msra.mxu0 %v3395_v35  ;;  %5879 = vmatpush3.msra.mxu1 %v3483_v36 }
 0x71a   : > { %5870 = vmatmul.mubr.msk.f32.vlgmr.msra.gmra.mxu0 %vm2025_vm6, %v3393_v39  ;;  %5881 = vmatmul.mubr.msk.f32.vlgmr.msra.gmra.mxu1 %vm2025_vm6, %v3393_v39 }
 0x71b   : > { %5883 = vmatprep.subr.mxu0 %v3570_v37  ;;  %5894 = vmatprep.subr.mxu1 %v3658_v38 }
 0x71c   : > { %5884 = vmatpush3.msra.mxu0 %v3570_v37  ;;  %5891 = vmatprep.mubr.msk.f32.mxu0 %vm2025_vm6, %v7776_v29 }
 0x71d   : > { %5895 = vmatpush3.msra.mxu1 %v3658_v38  ;;  %5902 = vmatprep.mubr.msk.f32.mxu1 %vm2025_vm6, %v7776_v29 }
 0x71e   : > { %5885 = vmatprep.subr.mxu0 %v3569_v40  ;;  %5896 = vmatprep.subr.mxu1 %v3657_v41 }
 0x71f   : > { %5886 = vmatpush3.msra.mxu0 %v3569_v40  ;;  %5897 = vmatpush3.msra.mxu1 %v3657_v41 }
 0x720   : > { %5887 = vmatprep.subr.mxu0 %v3568_v42  ;;  %5898 = vmatprep.subr.mxu1 %v3656_v43 }
 0x721   : > { %5888 = vmatpush3.msra.mxu0 %v3568_v42  ;;  %5899 = vmatpush3.msra.mxu1 %v3656_v43 }
 0x722   : > { %5889 = vmatprep.subr.mxu0 %v3567_v44  ;;  %5900 = vmatprep.subr.mxu1 %v3655_v45 }
 0x723   : > { %5890 = vmatpush3.msra.mxu0 %v3567_v44  ;;  %5901 = vmatpush3.msra.mxu1 %v3655_v45  ;;  %v4113_v45 = vld [vmem:[#allocation33 + $0x50] sm:$0xff] }
 0x724   : > { %5892 = vmatmul.mubr.msk.f32.vlgmr.msra.gmra.mxu0 %vm2025_vm6, %v7790_v46  ;;  %5903 = vmatmul.mubr.msk.f32.vlgmr.msra.gmra.mxu1 %vm2025_vm6, %v7790_v46 }
 0x725   : > { %5916 = vmatprep.subr.mxu1 %v3858_v47  ;;  %5905 = vmatprep.subr.mxu0 %v3771_v48 }
 0x726   : > { %5917 = vmatpush3.msra.mxu1 %v3858_v47  ;;  %5906 = vmatpush3.msra.mxu0 %v3771_v48  ;;  %v4201_v47 = vld [vmem:[#allocation35 + $0x50] sm:$0xff]  ;;  %v4111_v48 = vld [vmem:[#allocation33 + $0x40] sm:$0xff] }
 0x727   : > { %5918 = vmatprep.subr.mxu1 %v3857_v49  ;;  %5907 = vmatprep.subr.mxu0 %v3770_v51 }
 0x728   : > { %5919 = vmatpush3.msra.mxu1 %v3857_v49  ;;  %5908 = vmatpush3.msra.mxu0 %v3770_v51  ;;  %v4199_v49 = vld [vmem:[#allocation35 + $0x40] sm:$0xff] }
 0x729   : > { %5920 = vmatprep.subr.mxu1 %v3856_v52  ;;  %5909 = vmatprep.subr.mxu0 %v3769_v53 }
 0x72a   : > { %5921 = vmatpush3.msra.mxu1 %v3856_v52  ;;  %5910 = vmatpush3.msra.mxu0 %v3769_v53  ;;  %v4402_v52 = vld [vmem:[#allocation38 + $0x18] sm:$0xff]  ;;  %v4401_v53 = vld [vmem:[#allocation38 + $0x10] sm:$0xff] }
 0x72b   : > { %5922 = vmatprep.subr.mxu1 %v3855_v54  ;;  %5911 = vmatprep.subr.mxu0 %v3768_v55 }
 0x72c   : > { %5923 = vmatpush3.msra.mxu1 %v3855_v54  ;;  %5912 = vmatpush3.msra.mxu0 %v3768_v55  ;;  %v4400_v54 = vld [vmem:[#allocation38 + $0x8] sm:$0xff]  ;;  %v4399_v55 = vld [vmem:[#allocation38] sm:$0xff] }
 0x72d   : > { %5924 = vmatprep.mubr.msk.f32.mxu1 %vm2025_vm6, %v7796_v56  ;;  %5913 = vmatprep.mubr.msk.f32.mxu0 %vm2025_vm6, %v7796_v56 }
 0x72e   : > { %5925 = vmatmul.mubr.msk.f32.vlgmr.msra.gmra.mxu1 %vm2025_vm6, %v7764_v50  ;;  %5927 = vmatprep.subr.mxu0 %v3942_v57 }
 0x72f   : > { %5938 = vmatprep.subr.mxu1 %v4030_v58  ;;  %5914 = vmatmul.mubr.msk.f32.vlgmr.msra.gmra.mxu0 %vm2025_vm6, %v7764_v50 }
 0x730   : > { %5939 = vmatpush3.msra.mxu1 %v4030_v58  ;;  %5928 = vmatpush3.msra.mxu0 %v3942_v57  ;;  %v4315_v57 = vld [vmem:[#allocation36 + $0x18] sm:$0xff]  ;;  %v4310_v58 = vld [vmem:[#allocation2] sm:$0xff] }
 0x731   : > { %5940 = vmatprep.subr.mxu1 %v4029_v60  ;;  %5929 = vmatprep.subr.mxu0 %v3941_v59 }
 0x732   : > { %5941 = vmatpush3.msra.mxu1 %v4029_v60  ;;  %5930 = vmatpush3.msra.mxu0 %v3941_v59  ;;  %v4574_v59 = vld [vmem:[#allocation38 + $0x38] sm:$0xff]  ;;  %v4314_v60 = vld [vmem:[#allocation36 + $0x10] sm:$0xff] }
 0x733   : > { %5942 = vmatprep.subr.mxu1 %v4028_v61  ;;  %5931 = vmatprep.subr.mxu0 %v3940_v62 }
 0x734   : > { %5943 = vmatpush3.msra.mxu1 %v4028_v61  ;;  %5932 = vmatpush3.msra.mxu0 %v3940_v62  ;;  %v4311_v61 = vld [vmem:[#allocation2 + $0x8] sm:$0xff]  ;;  %v4573_v62 = vld [vmem:[#allocation38 + $0x30] sm:$0xff] }
 0x735   : > { %5944 = vmatprep.subr.mxu1 %v4027_v63  ;;  %5933 = vmatprep.subr.mxu0 %v3939_v0 }
 0x736   : > { %5945 = vmatpush3.msra.mxu1 %v4027_v63  ;;  %5934 = vmatpush3.msra.mxu0 %v3939_v0  ;;  %v4313_v63 = vld [vmem:[#allocation36 + $0x8] sm:$0xff] }
 0x737   : > { %5935 = vmatprep.mubr.msk.f32.mxu0 %vm2025_vm6, %v7764_v50  ;;  %5946 = vmatprep.mubr.msk.f32.mxu1 %vm2025_vm6, %v7764_v50  ;;  %v4572_v0 = vld [vmem:[#allocation38 + $0x28] sm:$0xff] }
 0x738   : > { %5949 = vmatprep.subr.mxu0 %v4114_v1  ;;  %5960 = vmatprep.subr.mxu1 %v4202_v2 }
 0x7d1   : > { %v5860_v3 = vpop.f32.mrf.mxu1  ;;  %v5849_v20 = vpop.f32.mrf.mxu0 }
 0x7d2   : > { %v3391_v7 = vadd.f32 %v5860_v3, %v5376_v5  ;;  %v3310_v31 = vadd.f32 %v5849_v20, %v5375_v27  ;;  %v4486_v3 = vld [vmem:[#allocation36 + $0x38] sm:$0xff] }
 0x7d3   : > { %v3381_v4 = vpop.f32.mrf.mxu1  ;;  %v3300_v24 = vpop.f32.mrf.mxu0 }
 0x7d4   : > { %v3390_v9 = vadd.f32 %v5376_v5, %v3381_v4  ;;  %v3309_v32 = vadd.f32 %v5375_v27, %v3300_v24  ;;  %v4485_v4 = vld [vmem:[#allocation36 + $0x30] sm:$0xff]  ;;  %v4484_v5 = vld [vmem:[#allocation36 + $0x28] sm:$0xff] }
 0x7da   : > { %v5882_v6 = vpop.f32.mrf.mxu1  ;;  %v5871_v26 = vpop.f32.mrf.mxu0 }
 0x7db   : > { %v3563_v10 = vadd.f32 %v5882_v6, %v3391_v7  ;;  %v3481_v33 = vadd.f32 %v5871_v26, %v3310_v31  ;;  %v4483_v6 = vld [vmem:[#allocation36 + $0x20] sm:$0xff]  ;;  %v4658_v7 = vld [vmem:[#allocation36 + $0x58] sm:$0xff] }
 0x7dc   : > { %v3553_v8 = vpop.f32.mrf.mxu1  ;;  %v3471_v28 = vpop.f32.mrf.mxu0 }
 0x7dd   : > { %v3562_v12 = vadd.f32 %v3553_v8, %v3390_v9  ;;  %v3480_v35 = vadd.f32 %v3471_v28, %v3309_v32  ;;  %v4746_v8 = vld [vmem:[#allocation38 + $0x58] sm:$0xff]  ;;  %v4745_v9 = vld [vmem:[#allocation38 + $0x50] sm:$0xff] }
 0x7e4   : > { %v5904_v11 = vpop.f32.mrf.mxu1  ;;  %v5893_v30 = vpop.f32.mrf.mxu0 }
 0x7e5   : > { %v3735_v13 = vadd.f32 %v5904_v11, %v3563_v10  ;;  %v3653_v36 = vadd.f32 %v5893_v30, %v3481_v33  ;;  %v4657_v10 = vld [vmem:[#allocation36 + $0x50] sm:$0xff]  ;;  %v4744_v11 = vld [vmem:[#allocation38 + $0x48] sm:$0xff] }
 0x7e6   : > { %v3725_v14 = vpop.f32.mrf.mxu1  ;;  %v3643_v34 = vpop.f32.mrf.mxu0 }
 0x7e7   : > { %v3737_v15 = vsub.f32 0.0, %v3735_v13  ;;  %v3734_v16 = vadd.f32 %v3725_v14, %v3562_v12  ;;  %v3652_v39 = vadd.f32 %v3643_v34, %v3480_v35  ;;  %v4656_v12 = vld [vmem:[#allocation36 + $0x48] sm:$0xff]  ;;  %v4655_v13 = vld [vmem:[#allocation36 + $0x40] sm:$0xff] }
 0x7e9   : > { %v3740_v17 = vmul.f32 1.442695, %v3737_v15  ;;  %v3736_v18 = vsub.f32 0.0, %v3734_v16  ;;  %v5390_v15 = vld [vmem:[%s8008_s0] ss:$0 sm:$0xff]  ;;  %s7008_s0 = scalar_lea.vmem %s7867_s8, 256 }
 0x7ea   : > { %p7009_p3 = scmp.ne.s32.totalorder %s7867_s8, %s7008_s0 }
 0x7eb   : > { %6386 = vpow2.f32 %v3740_v17  ;;  %v3738_v19 = vmul.f32 1.442695, %v3736_v18 }
 0x7ec   : > { %p7010_p9 = pnand %p7009_p3, %p8011_p4 }
 0x7ed   : > { %6388 = vpow2.f32 %v3738_v19 }
 0x7ee   : > { %v5926_v14 = vpop.f32.mrf.mxu1  ;;  %p7011_p7 = pneg %p7010_p9 }
 0x7ef   : > { %v3935_v17 = vadd.f32 %v5926_v14, %v5390_v15  ;;  %v5915_v31 = vpop.f32.mrf.mxu0 }
 0x7f1   : > { %v3844_v33 = vpop.f32.mrf.mxu0 }
 0x7f8   : > { %v6387_v21 = vpop.eup %6386 }
 0x7f9   : > { %v3743_v22 = vadd.f32 1.0, %v6387_v21 }
 0x7fa   : > { %v6389_v23 = vpop.eup %6388 }
 0x7fb   : > { %6390 = vrcp.f32 %v3743_v22  ;;  %v3742_v25 = vadd.f32 1.0, %v6389_v23 }
 0x7fd   : > { %6392 = vrcp.f32 %v3742_v25 }
 0x808   : > { %v6391_v37 = vpop.eup %6390 }
 0x809   : > { %v3747_v38 = vmul.f32 %v6391_v37, %v3653_v36 }
 0x80a   : > { %v6393_v40 = vpop.eup %6392 }
 0x80b   : > { %v3749_v41 = vadd.f32 %v3747_v38, %v7790_v46  ;;  %v3746_v42 = vmul.f32 %v6393_v40, %v3652_v39  ;;  %v4112_v46 = vld [vmem:[#allocation33 + $0x48] sm:$0xff]  ;;  %v5389_v38 = vld [vmem:[%s8009_s26] ss:$0 sm:$0xff]  ;;  %s7012_s26 = sshll.u32 %s7183_s22, 4  ;;  %s7013_s26 = int_to_ptr.vmem [resolvable:$false] %s7012_s26 }
 0x80c   : > { %v3854_v40 = vadd.f32 %v5915_v31, %v5389_v38  ;;  %p7015_p13 = scmp.lt.s32.totalorder %s7867_s8, %s7013_s26 }
 0x80d   : > { %3751 = vst.msk [vmem:[#allocation2 + $0x28] sm:$0xff] %vm2025_vm6, %v3749_v41  ;;  %v3748_v43 = vadd.f32 %v3746_v42, %v7776_v29  ;;  %v4200_v29 = vld [vmem:[#allocation35 + $0x48] sm:$0xff]  ;;  %v3853_v42 = vadd.f32 %v5389_v38, %v3844_v33  ;;  %v5417_v38 = vld [vmem:[%s7379_s4] ss:$0 sm:$0xff] }
 0x80f   : > { %3750 = vst.msk [vmem:[#allocation2 + $0x20] sm:$0xff] %vm2025_vm6, %v3748_v43 }
 0x814   : > { %v7826_v51 = vld [vmem:[#allocation2 + $0x28] sm:$0xff] }
 0x816   : > { %v7816_v44 = vld [vmem:[#allocation2 + $0x20] sm:$0xff] }
 0x817   : > { %5936 = vmatmul.mubr.msk.f32.vlgmr.msra.gmra.mxu0 %vm2025_vm6, %v7816_v44  ;;  %5947 = vmatmul.mubr.msk.f32.vlgmr.msra.gmra.mxu1 %vm2025_vm6, %v7816_v44 }
 0x818   : > { %5950 = vmatpush3.msra.mxu0 %v4114_v1  ;;  %5961 = vmatpush3.msra.mxu1 %v4202_v2  ;;  %v4312_v1 = vld [vmem:[#allocation36] sm:$0xff] }
 0x819   : > { %5951 = vmatprep.subr.mxu0 %v4113_v45  ;;  %5957 = vmatprep.mubr.msk.f32.mxu0 %vm2025_vm6, %v7816_v44  ;;  %v4571_v2 = vld [vmem:[#allocation38 + $0x20] sm:$0xff] }
 0x81a   : > { %5962 = vmatprep.subr.mxu1 %v4201_v47  ;;  %5968 = vmatprep.mubr.msk.f32.mxu1 %vm2025_vm6, %v7816_v44 }
 0x81b   : > { %5952 = vmatpush3.msra.mxu0 %v4113_v45  ;;  %5963 = vmatpush3.msra.mxu1 %v4201_v47 }
 0x81c   : > { %5953 = vmatprep.subr.mxu0 %v4112_v46  ;;  %5964 = vmatprep.subr.mxu1 %v4200_v29 }
 0x81d   : > { %5954 = vmatpush3.msra.mxu0 %v4112_v46  ;;  %5965 = vmatpush3.msra.mxu1 %v4200_v29 }
 0x81e   : > { %5955 = vmatprep.subr.mxu0 %v4111_v48  ;;  %5966 = vmatprep.subr.mxu1 %v4199_v49 }
 0x81f   : > { %5956 = vmatpush3.msra.mxu0 %v4111_v48  ;;  %5967 = vmatpush3.msra.mxu1 %v4199_v49 }
 0x820   : > { %5958 = vmatmul.mubr.msk.f32.vlgmr.msra.gmra.mxu0 %vm2025_vm6, %v7826_v51  ;;  %5969 = vmatmul.mubr.msk.f32.vlgmr.msra.gmra.mxu1 %vm2025_vm6, %v7826_v51 }
 0x821   : > { %5982 = vmatprep.subr.mxu1 %v4402_v52  ;;  %5971 = vmatprep.subr.mxu0 %v4315_v57 }
 0x822   : > { %5983 = vmatpush3.msra.mxu1 %v4402_v52  ;;  %5972 = vmatpush3.msra.mxu0 %v4315_v57 }
 0x823   : > { %5984 = vmatprep.subr.mxu1 %v4401_v53  ;;  %5990 = vmatprep.mubr.msk.f32.mxu1 %vm2025_vm6, %v4310_v58 }
 0x824   : > { %5985 = vmatpush3.msra.mxu1 %v4401_v53  ;;  %5973 = vmatprep.subr.mxu0 %v4314_v60 }
 0x825   : > { %5986 = vmatprep.subr.mxu1 %v4400_v54  ;;  %5974 = vmatpush3.msra.mxu0 %v4314_v60  ;;  %v4843_v60 = vld [vmem:[%s7374_s3 + $0x8] sm:$0xff] }
 0x826   : > { %5987 = vmatpush3.msra.mxu1 %v4400_v54  ;;  %5975 = vmatprep.subr.mxu0 %v4313_v63 }
 0x827   : > { %5988 = vmatprep.subr.mxu1 %v4399_v55  ;;  %5976 = vmatpush3.msra.mxu0 %v4313_v63  ;;  %v5404_v63 = vld [vmem:[%s7369_s5] ss:$0 sm:$0xff] }
 0x828   : > { %5989 = vmatpush3.msra.mxu1 %v4399_v55  ;;  %5977 = vmatprep.subr.mxu0 %v4312_v1 }
 0x829   : > { %6004 = vmatprep.subr.mxu1 %v4574_v59  ;;  %5991 = vmatmul.mubr.msk.f32.vlgmr.msra.gmra.mxu1 %vm2025_vm6, %v4311_v61 }
 0x82a   : > { %6005 = vmatpush3.msra.mxu1 %v4574_v59  ;;  %5978 = vmatpush3.msra.mxu0 %v4312_v1  ;;  %v4844_v59 = vld [vmem:[%s7374_s3 + $0x10] sm:$0xff] }
 0x82b   : > { %6006 = vmatprep.subr.mxu1 %v4573_v62  ;;  %5979 = vmatprep.mubr.msk.f32.mxu0 %vm2025_vm6, %v4310_v58 }
 0x82c   : > { %6007 = vmatpush3.msra.mxu1 %v4573_v62  ;;  %5993 = vmatprep.subr.mxu0 %v4486_v3 }
 0x82d   : > { %6008 = vmatprep.subr.mxu1 %v4572_v0  ;;  %5980 = vmatmul.mubr.msk.f32.vlgmr.msra.gmra.mxu0 %vm2025_vm6, %v4311_v61 }
 0x82e   : > { %6009 = vmatpush3.msra.mxu1 %v4572_v0  ;;  %5994 = vmatpush3.msra.mxu0 %v4486_v3 }
 0x82f   : > { %6010 = vmatprep.subr.mxu1 %v4571_v2  ;;  %6012 = vmatprep.mubr.msk.f32.mxu1 %vm2025_vm6, %v7796_v56 }
 0x830   : > { %6011 = vmatpush3.msra.mxu1 %v4571_v2  ;;  %5995 = vmatprep.subr.mxu0 %v4485_v4 }
 0x831   : > { %6013 = vmatmul.mubr.msk.f32.vlgmr.msra.gmra.mxu1 %vm2025_vm6, %v7764_v50  ;;  %5996 = vmatpush3.msra.mxu0 %v4485_v4 }
 0x832   : > { %6001 = vmatprep.mubr.msk.f32.mxu0 %vm2025_vm6, %v7796_v56  ;;  %5997 = vmatprep.subr.mxu0 %v4484_v5  ;;  %v4743_v56 = vld [vmem:[#allocation38 + $0x40] sm:$0xff] }
 0x833   : > { %5998 = vmatpush3.msra.mxu0 %v4484_v5  ;;  %6026 = vmatprep.subr.mxu1 %v4746_v8 }
 0x834   : > { %5999 = vmatprep.subr.mxu0 %v4483_v6  ;;  %6027 = vmatpush3.msra.mxu1 %v4746_v8 }
 0x835   : > { %6000 = vmatpush3.msra.mxu0 %v4483_v6  ;;  %6028 = vmatprep.subr.mxu1 %v4745_v9 }
 0x836   : > { %6015 = vmatprep.subr.mxu0 %v4658_v7  ;;  %6002 = vmatmul.mubr.msk.f32.vlgmr.msra.gmra.mxu0 %vm2025_vm6, %v7764_v50  ;;  %v3925_v50 = vpop.f32.mrf.mxu1 }
 0x837   : > { %6016 = vmatpush3.msra.mxu0 %v4658_v7  ;;  %6029 = vmatpush3.msra.mxu1 %v4745_v9  ;;  %v3934_v19 = vadd.f32 %v5390_v15, %v3925_v50 }
 0x838   : > { %6017 = vmatprep.subr.mxu0 %v4657_v10  ;;  %6030 = vmatprep.subr.mxu1 %v4744_v11 }
 0x839   : > { %6018 = vmatpush3.msra.mxu0 %v4657_v10  ;;  %6031 = vmatpush3.msra.mxu1 %v4744_v11 }
 0x83a   : > { %6019 = vmatprep.subr.mxu0 %v4656_v12  ;;  %6032 = vmatprep.subr.mxu1 %v4743_v56 }
 0x83b   : > { %6020 = vmatpush3.msra.mxu0 %v4656_v12  ;;  %6033 = vmatpush3.msra.mxu1 %v4743_v56 }
 0x83c   : > { %6021 = vmatprep.subr.mxu0 %v4655_v13 }
 0x83d   : > { %6022 = vmatpush3.msra.mxu0 %v4655_v13 }
 0x8d7   : > { %v5948_v16 = vpop.f32.mrf.mxu1  ;;  %v5937_v37 = vpop.f32.mrf.mxu0 }
 0x8d8   : > { %v4107_v20 = vadd.f32 %v5948_v16, %v3935_v17  ;;  %v4025_v43 = vadd.f32 %v5937_v37, %v3854_v40 }
 0x8d9   : > { %v4097_v18 = vpop.f32.mrf.mxu1  ;;  %v4015_v39 = vpop.f32.mrf.mxu0 }
 0x8da   : > { %v4106_v22 = vadd.f32 %v4097_v18, %v3934_v19  ;;  %v4024_v47 = vadd.f32 %v4015_v39, %v3853_v42  ;;  %v5403_v19 = vld [vmem:[%s8010_s2] ss:$0 sm:$0xff]  ;;  %s7014_s2 = scalar_lea.vmem %s7013_s26, 512 }
 0x8db   : > { %p7016_p8 = scmp.lt.s32.totalorder %s7014_s2, %s7008_s0 }
 0x8dd   : > { %p7017_p5 = por %p7016_p8, %p7015_p13 }
 0x8df   : > { %p7018_p6 = pnand %p7017_p5, %p7011_p7 }
 0x8e0   : > { %v5970_v21 = vpop.f32.mrf.mxu1  ;;  %v5959_v41 = vpop.f32.mrf.mxu0 }
 0x8e1   : > { %v4279_v23 = vadd.f32 %v5970_v21, %v4107_v20  ;;  %v4197_v46 = vadd.f32 %v5959_v41, %v4025_v43 }
 0x8e2   : > { %v4269_v24 = vpop.f32.mrf.mxu1  ;;  %v4187_v45 = vpop.f32.mrf.mxu0 }
 0x8e3   : > { %v4281_v25 = vsub.f32 0.0, %v4279_v23  ;;  %v4278_v26 = vadd.f32 %v4269_v24, %v4106_v22  ;;  %v4196_v49 = vadd.f32 %v4187_v45, %v4024_v47 }
 0x8e5   : > { %v4284_v27 = vmul.f32 1.442695, %v4281_v25  ;;  %v4280_v28 = vsub.f32 0.0, %v4278_v26 }
 0x8e7   : > { %6394 = vpow2.f32 %v4284_v27  ;;  %v4282_v30 = vmul.f32 1.442695, %v4280_v28 }
 0x8e9   : > { %6396 = vpow2.f32 %v4282_v30  ;;  %v5992_v61 = vpop.f32.mrf.mxu1 }
 0x8ea   : > { %v4479_v1 = vadd.f32 %v5992_v61, %v5404_v63 }
 0x8eb   : > { %v4469_v62 = vpop.f32.mrf.mxu1 }
 0x8ec   : > { %v4478_v2 = vadd.f32 %v5404_v63, %v4469_v62 }
 0x8ed   : > { %v5981_v13 = vpop.f32.mrf.mxu0 }
 0x8ee   : > { %v4398_v21 = vadd.f32 %v5981_v13, %v5403_v19 }
 0x8ef   : > { %v4388_v14 = vpop.f32.mrf.mxu0 }
 0x8f0   : > { %v4397_v22 = vadd.f32 %v5403_v19, %v4388_v14 }
 0x8f1   : > { %v6014_v0 = vpop.f32.mrf.mxu1 }
 0x8f2   : > { %v4651_v4 = vadd.f32 %v6014_v0, %v4479_v1 }
 0x8f3   : > { %v4641_v3 = vpop.f32.mrf.mxu1 }
 0x8f4   : > { %v6395_v32 = vpop.eup %6394  ;;  %v4650_v6 = vadd.f32 %v4641_v3, %v4478_v2 }
 0x8f5   : > { %v4287_v34 = vadd.f32 1.0, %v6395_v32 }
 0x8f6   : > { %v6397_v35 = vpop.eup %6396  ;;  %v6003_v17 = vpop.f32.mrf.mxu0 }
 0x8f7   : > { %6398 = vrcp.f32 %v4287_v34  ;;  %v4286_v36 = vadd.f32 1.0, %v6397_v35  ;;  %v4569_v24 = vadd.f32 %v6003_v17, %v4398_v21 }
 0x8f8   : > { %v4559_v20 = vpop.f32.mrf.mxu0 }
 0x8f9   : > { %6400 = vrcp.f32 %v4286_v36  ;;  %v4568_v25 = vadd.f32 %v4559_v20, %v4397_v22 }
 0x904   : > { %v6399_v29 = vpop.eup %6398 }
 0x905   : > { %v4291_v48 = vmul.f32 %v6399_v29, %v4197_v46 }
 0x906   : > { %v6401_v52 = vpop.eup %6400 }
 0x907   : > { %v4293_v53 = vadd.f32 %v4291_v48, %v7826_v51  ;;  %v4290_v54 = vmul.f32 %v6401_v52, %v4196_v49  ;;  %v4845_v51 = vld [vmem:[%s7374_s3 + $0x18] sm:$0xff] }
 0x908   : > { %6037 = vmatprep.subr.mxu0 %v4845_v51 }
 0x909   : > { %4295 = vst.msk [vmem:[#allocation2 + $0x28] sm:$0xff] %vm2025_vm6, %v4293_v53  ;;  %v4292_v55 = vadd.f32 %v4290_v54, %v7816_v44  ;;  %v4842_v44 = vld [vmem:[%s7374_s3] sm:$0xff] }
 0x90b   : > { %4294 = vst.msk [vmem:[#allocation2 + $0x20] sm:$0xff] %vm2025_vm6, %v4292_v55 }
 0x910   : > { %v4653_v58 = vld [vmem:[#allocation2 + $0x28] sm:$0xff] }
 0x912   : > { %v4652_v57 = vld [vmem:[#allocation2 + $0x20] sm:$0xff] }
 0x913   : > { %6023 = vmatprep.mubr.msk.f32.mxu0 %vm2025_vm6, %v4652_v57  ;;  %6034 = vmatprep.mubr.msk.f32.mxu1 %vm2025_vm6, %v4652_v57 }
 0x914   : > { %6024 = vmatmul.mubr.msk.f32.vlgmr.msra.gmra.mxu0 %vm2025_vm6, %v4653_v58  ;;  %6035 = vmatmul.mubr.msk.f32.vlgmr.msra.gmra.mxu1 %vm2025_vm6, %v4653_v58 }
 0x915   : > { %6038 = vmatpush3.msra.mxu0 %v4845_v51 }
 0x916   : > { %6039 = vmatprep.subr.mxu0 %v4844_v59 }
 0x917   : > { %6040 = vmatpush3.msra.mxu0 %v4844_v59 }
 0x918   : > { %6041 = vmatprep.subr.mxu0 %v4843_v60 }
 0x919   : > { %6042 = vmatpush3.msra.mxu0 %v4843_v60 }
 0x91a   : > { %6043 = vmatprep.subr.mxu0 %v4842_v44 }
 0x91b   : > { %6044 = vmatpush3.msra.mxu0 %v4842_v44 }
 0x9d4   : > { %v6036_v5 = vpop.f32.mrf.mxu1  ;;  %v6025_v23 = vpop.f32.mrf.mxu0 }
 0x9d5   : > { %v4823_v7 = vadd.f32 %v6036_v5, %v4651_v4  ;;  %v4741_v27 = vadd.f32 %v6025_v23, %v4569_v24 }
 0x9d6   : > { %v4813_v8 = vpop.f32.mrf.mxu1  ;;  %v4731_v26 = vpop.f32.mrf.mxu0 }
 0x9d7   : > { %v4825_v9 = vsub.f32 0.0, %v4823_v7  ;;  %v4822_v10 = vadd.f32 %v4813_v8, %v4650_v6  ;;  %v4740_v31 = vadd.f32 %v4731_v26, %v4568_v25 }
 0x9d9   : > { %v4828_v11 = vmul.f32 1.442695, %v4825_v9  ;;  %v4824_v12 = vsub.f32 0.0, %v4822_v10 }
 0x9db   : > { %6402 = vpow2.f32 %v4828_v11  ;;  %v4826_v56 = vmul.f32 1.442695, %v4824_v12 }
 0x9dd   : > { %6404 = vpow2.f32 %v4826_v56 }
 0x9e8   : > { %v6403_v50 = vpop.eup %6402 }
 0x9e9   : > { %v4831_v15 = vadd.f32 1.0, %v6403_v50 }
 0x9ea   : > { %v6405_v16 = vpop.eup %6404 }
 0x9eb   : > { %6406 = vrcp.f32 %v4831_v15  ;;  %v4830_v18 = vadd.f32 1.0, %v6405_v16 }
 0x9ed   : > { %6408 = vrcp.f32 %v4830_v18 }
 0x9f8   : > { %v6407_v28 = vpop.eup %6406 }
 0x9f9   : > { %v4835_v30 = vmul.f32 %v6407_v28, %v4741_v27 }
 0x9fa   : > { %v6409_v32 = vpop.eup %6408 }
 0x9fb   : > { %v4837_v33 = vadd.f32 %v4835_v30, %v4653_v58  ;;  %v4834_v34 = vmul.f32 %v6409_v32, %v4740_v31 }
 0x9fd   : > { %4839 = vst.msk [vmem:[#allocation2 + $0x28] sm:$0xff] %vm2025_vm6, %v4837_v33  ;;  %v4836_v35 = vadd.f32 %v4834_v34, %v4652_v57 }
 0x9ff   : > { %4838 = vst.msk [vmem:[#allocation2 + $0x20] sm:$0xff] %vm2025_vm6, %v4836_v35 }
 0xa04   : > { %v4841_v37 = vld [vmem:[#allocation2 + $0x28] sm:$0xff] }
 0xa06   : > { %v4840_v36 = vld [vmem:[#allocation2 + $0x20] sm:$0xff] }
 0xa07   : > { %6045 = vmatprep.mubr.msk.f32.mxu0 %vm2025_vm6, %v4840_v36 }
 0xa08   : > { %6046 = vmatmul.mubr.msk.f32.vlgmr.msra.gmra.mxu0 %vm2025_vm6, %v4841_v37 }
 0xac8   : > { %v6047_v39 = vpop.f32.mrf.mxu0 }
 0xac9   : > { %v4931_v40 = vadd.f32 %v6047_v39, %v5417_v38 }
 0xaca   : > { %v4925_v41 = vpop.f32.mrf.mxu0 }
 0xacb   : > { %4935 = vst [vmem:[%s1455_s13 + $0x8] sm:$0xff] %v4931_v40  ;;  %v4926_v42 = vadd.f32 %v5417_v38, %v4925_v41 }
 0xacd   : > { %4934 = vst [vmem:[%s1455_s13] sm:$0xff] %v4926_v42 }
 0xace   : > { %7021 = shalt.err (!%p7018_p6)
}
 0xacf   : > { %s7022_s23 = scalar_lea.hbm %s7870_s6, 256  ;;  %s7026_s28 = scalar_lea.hbm %s7384_s12, 512 }
 0xad0   : > { %p7023_p12 = scmp.ne.s32.totalorder %s7870_s6, %s7022_s23  ;;  %p7027_p0 = scmp.lt.s32.totalorder %s7870_s6, %s7384_s12 }
 0xad1   : > { %p7028_p1 = scmp.lt.s32.totalorder %s7026_s28, %s7022_s23 }
 0xad2   : > { %p7024_p10 = pnand %p7023_p12, %p8011_p4 }
 0xad3   : > { %p7029_p2 = por %p7028_p1, %p7027_p0 }
 0xad4   : > { %p7025_p11 = pneg %p7024_p10 }
 0xad6   : > { %p7030_p3 = pnand %p7029_p2, %p7025_p11 }
 0xad8   : > { %7033 = shalt.err (!%p7030_p3)
}
 0xad9   : > { %s7184_s13 = smov 128   ;;  %s7185_s1 = smov 8  }
 0xada   : > { %6140 = dma.vmem_to_hbm [thread:$0]  (%p8011_p4), %s7867_s8, 256, %s7870_s6, %s7872_s15, %s7184_s13, %s7184_s13, %s7185_s1  }
 0xadb PF: > { %s8012_s0 = sld [smem:[#allocation78_spill]]  ;;  %p6262_p9 = scmp.ge.s32.totalorder %s7116_s18, 2 }
 0xadc   : > { %s8013_s22 = sld [smem:[#allocation82_spill]] }
 0xae1   : > { %s4965_s26 = sand.u32 1, %s8012_s0  }
 0xae2   : > { %p8014_p7 = scmp.ne.s32.totalorder %s8013_s22, 0  ;;  %s4966_s2 = scalar_lea.sflag [#allocation5], %s4965_s26 }
 0xae4   : > { %p6213_p13 = pnand %p6262_p9, %p8014_p7 }
 0xae6   : > { %p6214_p8 = pneg %p6213_p13 }
 0xae8   : > { %7099 = dma.done.wait (%p6214_p8), %s4966_s2, 256  }
 0xae9   : > { %7101 = vsyncadd (%p6214_p8), %s4966_s2, 4294967040  ;;  %s8015_s18 = sld [smem:[#allocation80_spill]]  ;;  %s8018_s15 = smov %s7108_s16 }
 0xaea   : > { %s8016_s23 = sld [smem:[#allocation79_spill]] }
 0xaeb   : > { %s8017_s0 = sld [smem:[#allocation81_spill]] }
 0xaef   : > { %p99_p5 = scmp.ge.s32.totalorder %s8015_s18, 4  }
 0xaf0   : > { %s8019_s16 = smov %s8016_s23 }
 0xaf1   :  { %101 = sbr.rel (!%p99_p5) target bundleno = 84 (0x54), region = 359 }
 0xaf6   :  { %4971 = vsyncpa [#allocation4], 1 }
 0xaf7   :  { %4973 = vsyncpa [#allocation4 + $0x1], 1 }
 0xaf8   :  { %4974 = vsyncpa [#allocation7], 1 }
 0xaf9   :  { %4975 = vsyncpa [#allocation10], 1 }
 0xafa   :  { %4976 = vsyncpa [#allocation13], 1 }
 0xafb   :  { %4977 = vsyncpa [#allocation16], 1 }
 0xafc   :  { %4978 = vsyncpa [#allocation19], 1 }
 0xafd   :  { %4979 = vsyncpa [#allocation22], 1 }
 0xafe   :  { %4980 = vsyncpa [#allocation25], 1 }
 0xaff   :  { %4981 = vsyncpa [#allocation28], 1 }
 0xb00   :  { %4982 = vsyncpa [#allocation31], 1 }
 0xb01   :  { %4983 = vsyncpa [#allocation34], 1 }
 0xb02   :  { %4984 = vsyncpa [#allocation37], 1 }
 0xb03   :  { %4985 = vsyncpa [#allocation5], 1 }
 0xb04   :  { %4987 = vsyncpa [#allocation5 + $0x1], 1 }

</bundles_post_ra>
